<compile_context>
chip_gen: v6e
topology: v6e:2x2x1
jax: 0.10.0
libtpu: 0.0.40
codegen_flags: <defaults>
</compile_context>

<pallas_src>
import functools
import math

import jax
import jax.numpy as jnp
from jax.experimental import pallas as pl
from jax.experimental.pallas import tpu as pltpu


_LANE = 128                       # lane width; transposed tile dims are 128-multiples
_BYPASS_BYTES = 1 << 20           # below this, plain XLA transpose wins
_STEP_TARGET_BYTES = 4 << 20      # aim for ~4 MiB of HBM traffic per grid step
_MAX_NB = 8                       # cap on batches folded per grid step (static unroll)


@functools.lru_cache(maxsize=None)
def _vmem_budget_and_limit():
    """Returns (tile_budget_bytes, vmem_limit_bytes), generation aware."""
    try:
        cap = int(pltpu.get_tpu_info().vmem_capacity_bytes)
    except Exception:
        cap = 64 * 1024 * 1024                       # conservative (v7x-sized)
    limit = min(cap // 2, 64 * 1024 * 1024)          # scoped VMEM we request
    # Leave >= 8 MiB headroom for compiler-internal scratch / relayouts.
    budget = max(8 * 1024 * 1024,
                 min(limit - 8 * 1024 * 1024, 48 * 1024 * 1024))
    return budget, limit


def _choose_tiles(B, S, C, itemsize, budget):
    """Pick (nb, tS, tC).  tS/tC are 128-multiples (cdiv grid masks boundaries);
    nb folds batches into one step when per-batch slabs are small.
    Assumes S >= 128 and C >= 128 (guaranteed by the wrapper bypass)."""
    s_floor = (S // _LANE) * _LANE
    c_floor = (C // _LANE) * _LANE
    # Double-buffered input + output tiles: 4 * nb * tS * tC * itemsize bytes.
    budget_elems = budget // (4 * itemsize)

    # Prefer taking all of C per block (fully contiguous input DMA when C is a
    # 128-multiple, fewest C-blocks otherwise) with the largest tS that fits.
    desired_tC = C if C % _LANE == 0 else c_floor
    tS = tC = None
    for cand in (1024, 512, 256, _LANE):
        ts = min(cand, s_floor)
        if ts * desired_tC <= budget_elems:
            tS, tC = ts, desired_tC
            break
    if tS is None:
        # C is huge: keep a healthy tS and tile C from the budget (strided DMA).
        tS = min(512, s_floor)
        tC = max(_LANE, (budget_elems // tS) // _LANE * _LANE)

    # Fold several batches into one grid step while the slab is small.
    hbm_per_batch = 2 * tS * tC * itemsize
    nb = min(B, _MAX_NB,
             max(1, _STEP_TARGET_BYTES // hbm_per_batch),
             max(1, budget // (4 * tS * tC * itemsize)))
    return nb, tS, tC


def _unflatten_kernel(x_ref, o_ref):
    # x_ref: (nb, tS, tC) input tile; o_ref: (nb, tC, tS) output tile.
    # The 2-D transpose is an XLU op; its issue slot is separate from
    # load/store, so it stays hidden under the streaming DMA (HBM-bound).
    # nb is a small static constant -> static unroll.
    for b in range(x_ref.shape[0]):
        o_ref[b, :, :] = jnp.transpose(x_ref[b, :, :], (1, 0))


def _unflatten_pallas(x):
    """x: (B, S, C) with S, C >= 128.  Returns (B, C, S)."""
    B, S, C = x.shape
    itemsize = x.dtype.itemsize
    budget, vmem_limit = _vmem_budget_and_limit()
    nb, tS, tC = _choose_tiles(B, S, C, itemsize, budget)

    n_b = pl.cdiv(B, nb)
    n_c = pl.cdiv(C, tC)
    n_s = pl.cdiv(S, tS)

    # Largest-extent grid axis leads so the v7x megacore split stays balanced
    # even when B == 1.  All axes are independent ("parallel").
    extents = {"b": n_b, "c": n_c, "s": n_s}
    order = sorted(extents, key=lambda k: -extents[k])
    pos = {k: i for i, k in enumerate(order)}
    pb, pc, ps = pos["b"], pos["c"], pos["s"]

    def in_map(*g):
        return (g[pb], g[ps], g[pc])

    def out_map(*g):
        return (g[pb], g[pc], g[ps])

    grid = tuple(extents[k] for k in order)

    return pl.pallas_call(
        _unflatten_kernel,
        out_shape=jax.ShapeDtypeStruct((B, C, S), x.dtype),
        grid_spec=pltpu.PrefetchScalarGridSpec(
            num_scalar_prefetch=0,
            grid=grid,
            in_specs=[pl.BlockSpec((nb, tS, tC), in_map)],
            out_specs=pl.BlockSpec((nb, tC, tS), out_map),
        ),
        compiler_params=pltpu.CompilerParams(
            dimension_semantics=("parallel", "parallel", "parallel"),
            vmem_limit_bytes=vmem_limit,
        ),
        cost_estimate=pl.CostEstimate(
            flops=0,
            transcendentals=0,
            bytes_accessed=2 * B * S * C * itemsize,
        ),
    )(x)


def unflatten(x: jax.Array) -> jax.Array:
    """JAX/Pallas equivalent of Unflatten.forward.

    Args:
      x: array of shape (B, S, C), S must be a perfect square.
    Returns:
      array of shape (B, C, H, W) with H = W = sqrt(S), where
      out[b, c, h, w] == x[b, h * W + w, c]   (identical to PyTorch semantics).
    """
    assert x.ndim == 3, "expected a 3-D input (B, S, C)"
    B, S, C = x.shape
    hw = int(math.sqrt(S))
    assert hw * hw == S, "sequence length must be a perfect square"

    total_bytes = B * S * C * x.dtype.itemsize
    # Bypass: a standalone transpose can never beat the HBM roofline; for
    # small slabs (or sub-128 transposed dims, which would force sub-lane
    # tiles) the pallas_call launch overhead dominates.  Let XLA handle those.
    if total_bytes < _BYPASS_BYTES or S < _LANE or C < _LANE:
        return jnp.transpose(x, (0, 2, 1)).reshape(B, C, hw, hw)

    out = _unflatten_pallas(x)              # (B, C, S) -- no pad / slice passes
    return out.reshape(B, C, hw, hw)        # metadata-only reshape


def unflatten_reference(x: jax.Array) -> jax.Array:
    """Plain-JAX reference mirroring the PyTorch forward exactly."""
    B, S, C = x.shape
    hw = int(math.sqrt(S))
    return jnp.transpose(x, (0, 2, 1)).reshape(B, C, hw, hw)


if __name__ == "__main__":
    key = jax.random.PRNGKey(0)
    k1, k2, k3, k4 = jax.random.split(key, 4)

    # 1) Tiny shape (original toy test): takes the jnp fast path.
    x_small = jax.random.normal(k1, (2, 16, 8), dtype=jnp.float32)
    out_small = jax.block_until_ready(unflatten(x_small))
    assert out_small.shape == (2, 8, 4, 4)
    assert out_small.dtype == x_small.dtype
    assert jnp.array_equal(out_small, unflatten_reference(x_small))

    # 2) Aligned shape: Pallas path, batches folded into one step
    #    (S=1024 -> 32x32, C=256).
    x_aligned = jax.random.normal(k2, (2, 1024, 256), dtype=jnp.float32)
    out_aligned = jax.block_until_ready(unflatten(x_aligned))
    assert out_aligned.shape == (2, 256, 32, 32)
    assert out_aligned.dtype == x_aligned.dtype
    assert jnp.array_equal(out_aligned, unflatten_reference(x_aligned))

    # 3) Ragged S: masked boundary block along S, no wrapper pad/slice
    #    (S=196 -> 14x14).
    x_ragged_s = jax.random.normal(k3, (4, 196, 640), dtype=jnp.float32)
    out_ragged_s = jax.block_until_ready(unflatten(x_ragged_s))
    assert out_ragged_s.shape == (4, 640, 14, 14)
    assert out_ragged_s.dtype == x_ragged_s.dtype
    assert jnp.array_equal(out_ragged_s, unflatten_reference(x_ragged_s))

    # 4) Ragged C: masked boundary block along C, no wrapper pad/slice
    #    (C=192, S=1024 -> 32x32).
    x_ragged_c = jax.random.normal(k4, (2, 1024, 192), dtype=jnp.float32)
    out_ragged_c = jax.block_until_ready(unflatten(x_ragged_c))
    assert out_ragged_c.shape == (2, 192, 32, 32)
    assert out_ragged_c.dtype == x_ragged_c.dtype
    assert jnp.array_equal(out_ragged_c, unflatten_reference(x_ragged_c))

    print("KERNEL_OK")
</pallas_src>

<mosaic_0001>
module attributes {stable_mosaic.version = 11 : i64} {
  func.func @_unflatten_kernel(%arg0: i32, %arg1: i32, %arg2: i32, %arg3: memref<2x1024x256xf32, #tpu.memory_space<vmem>>, %arg4: memref<2x256x1024xf32, #tpu.memory_space<vmem>>) attributes {dimension_semantics = [#tpu.dimension_semantics<parallel>, #tpu.dimension_semantics<parallel>, #tpu.dimension_semantics<parallel>], iteration_bounds = array<i64: 1, 1, 1>, scalar_prefetch = 0 : i64, scratch_operands = 0 : i64, tpu.core_type = #tpu.core_type<tc>, window_params = [{transform_indices = @transform_0, window_bounds = array<i64: 2, 1024, 256>}, {transform_indices = @transform_1, window_bounds = array<i64: 2, 256, 1024>}]} {
    %c0 = arith.constant 0 : index
    %c0_0 = arith.constant 0 : index
    %c0_1 = arith.constant 0 : index
    %0 = vector.load %arg3[%c0, %c0_0, %c0_1] : memref<2x1024x256xf32, #tpu.memory_space<vmem>>, vector<1x1024x256xf32>
    %1 = vector.shape_cast %0 : vector<1x1024x256xf32> to vector<1024x256xf32>
    %2 = tpu.transpose %1, [1, 0] : vector<1024x256xf32> -> vector<256x1024xf32>
    %c0_2 = arith.constant 0 : index
    %c0_3 = arith.constant 0 : index
    %c0_4 = arith.constant 0 : index
    %3 = vector.load %arg4[%c0_2, %c0_3, %c0_4] : memref<2x256x1024xf32, #tpu.memory_space<vmem>>, vector<1x256x1024xf32>
    %4 = vector.shape_cast %3 : vector<1x256x1024xf32> to vector<256x1024xf32>
    %5 = vector.shape_cast %2 : vector<256x1024xf32> to vector<1x256x1024xf32>
    tpu.vector_store %arg4[%c0_2, %c0_3, %c0_4], %5 {strides = array<i32>} : memref<2x256x1024xf32, #tpu.memory_space<vmem>>, vector<1x256x1024xf32>,
    %c1 = arith.constant 1 : index
    %c0_5 = arith.constant 0 : index
    %c0_6 = arith.constant 0 : index
    %6 = vector.load %arg3[%c1, %c0_5, %c0_6] : memref<2x1024x256xf32, #tpu.memory_space<vmem>>, vector<1x1024x256xf32>
    %7 = vector.shape_cast %6 : vector<1x1024x256xf32> to vector<1024x256xf32>
    %8 = tpu.transpose %7, [1, 0] : vector<1024x256xf32> -> vector<256x1024xf32>
    %c1_7 = arith.constant 1 : index
    %c0_8 = arith.constant 0 : index
    %c0_9 = arith.constant 0 : index
    %9 = vector.load %arg4[%c1_7, %c0_8, %c0_9] : memref<2x256x1024xf32, #tpu.memory_space<vmem>>, vector<1x256x1024xf32>
    %10 = vector.shape_cast %9 : vector<1x256x1024xf32> to vector<256x1024xf32>
    %11 = vector.shape_cast %8 : vector<256x1024xf32> to vector<1x256x1024xf32>
    tpu.vector_store %arg4[%c1_7, %c0_8, %c0_9], %11 {strides = array<i32>} : memref<2x256x1024xf32, #tpu.memory_space<vmem>>, vector<1x256x1024xf32>,
    return
  }
  func.func @transform_0(%arg0: i32, %arg1: i32, %arg2: i32) -> (i32, i32, i32) {
    %c0_i32 = arith.constant 0 : i32
    return %arg0, %arg2, %arg1 : i32, i32, i32
  }
  func.func @transform_1(%arg0: i32, %arg1: i32, %arg2: i32) -> (i32, i32, i32) {
    %c0_i32 = arith.constant 0 : i32
    return %arg0, %arg1, %arg2 : i32, i32, i32
  }
}

</mosaic_0001>

<bundles_post_ra>
// kernel: tpu_custom_call.1
= control target key start
LH: loop header
LB: loop body
LE: loop exit
PB: predicated region body
PF: predicated region fallthrough
CT: control target
= control target key end

     0   :  { %6 = vsyncpa [#allocation3], 0  ;;  %s2162_s0 = inlined_call_operand.hbm [shape: f32[2,1024,256], index: 0, kind: input, shape index: {}]   ;;  %s2163_s1 = inlined_call_operand.hbm [shape: f32[2,256,1024], index: 1, kind: output, shape index: {}]  }
   0x1   :  { %7 = vsyncpa [#allocation4], 0  ;;  %s2140_s6 = smov [#allocation2]  }
   0x2   :  { %s13_s7 = sshll.u32 %s2140_s6, 4  ;;  %s14_s7 = int_to_ptr.vmem [resolvable:$true] %s13_s7 }
   0x3   :  { %s2104_s8 = scalar_lea.vmem %s14_s7, 65536  ;;  %p2109_p1 = scmp.lt.s32.totalorder %s14_s7, %s14_s7 }
   0x4   :  { %p2105_p0 = scmp.ne.s32.totalorder %s14_s7, %s2104_s8  ;;  %p2110_p2 = scmp.lt.s32.totalorder %s2104_s8, %s2104_s8 }
   0x6   :  { %p2111_p3 = por %p2110_p2, %p2109_p1 }
   0x8   :  { %p2112_p4 = pnand %p2111_p3, %p2105_p0 }
   0xa   :  { %2115 = shalt.err (!%p2112_p4)
}
   0xb   :  { %s2141_s9 = smov 256   ;;  %s2142_s10 = smov 16  }
   0xc   :  { %19 = dma.hbm_to_vmem [thread:$0]  %s2162_s0, 65536, %s14_s7, [#allocation3], %s2141_s9, %s2141_s9, %s2142_s10  }
   0xd   :  { %2136 = dma.done.wait [#allocation3], 65536  }
   0xe   :  { %2137 = vsyncadd [#allocation3], 4294901760  ;;  %v24_v0 = vld [vmem:[#allocation2 + $0x8] sm:$0xff]  ;;  %v23_v1 = vld [vmem:[#allocation2] sm:$0xff]  ;;  %s2143_s0 = smov [#allocation5]  }
   0xf   :  { %311 = vxpose.xlu1.b32.start [1/16] %v24_v0, 128  ;;  %279 = vxpose.xlu0.b32.start [1/16] %v23_v1, 128  ;;  %v26_v2 = vld [vmem:[#allocation2 + $0x18] sm:$0xff]  ;;  %v25_v3 = vld [vmem:[#allocation2 + $0x10] sm:$0xff]  ;;  %v28_v4 = vld [vmem:[#allocation2 + $0x28] sm:$0xff]  ;;  %s2078_s13 = sshll.u32 %s2143_s0, 4  ;;  %s2079_s13 = int_to_ptr.vmem [resolvable:$true] %s2078_s13 }
  0x10   :  { %v27_v5 = vld [vmem:[#allocation2 + $0x20] sm:$0xff]  ;;  %v30_v6 = vld [vmem:[#allocation2 + $0x38] sm:$0xff]  ;;  %v29_v7 = vld [vmem:[#allocation2 + $0x30] sm:$0xff]  ;;  %s2116_s14 = scalar_lea.vmem %s2079_s13, 65536  ;;  %p2121_p6 = scmp.lt.s32.totalorder %s2079_s13, %s2079_s13 }
  0x11   :  { %v32_v8 = vld [vmem:[#allocation2 + $0x48] sm:$0xff]  ;;  %v31_v9 = vld [vmem:[#allocation2 + $0x40] sm:$0xff]  ;;  %v34_v10 = vld [vmem:[#allocation2 + $0x58] sm:$0xff]  ;;  %p2117_p5 = scmp.ne.s32.totalorder %s2079_s13, %s2116_s14  ;;  %p2122_p7 = scmp.lt.s32.totalorder %s2116_s14, %s2116_s14 }
  0x12   :  { %v33_v11 = vld [vmem:[#allocation2 + $0x50] sm:$0xff]  ;;  %v36_v12 = vld [vmem:[#allocation2 + $0x68] sm:$0xff]  ;;  %v35_v13 = vld [vmem:[#allocation2 + $0x60] sm:$0xff] }
  0x13   :  { %312 = vxpose.xlu1.b32.cont [2/16] %v26_v2, 128  ;;  %280 = vxpose.xlu0.b32.cont [2/16] %v25_v3, 128  ;;  %v38_v14 = vld [vmem:[#allocation2 + $0x78] sm:$0xff]  ;;  %v37_v15 = vld [vmem:[#allocation2 + $0x70] sm:$0xff]  ;;  %v40_v16 = vld [vmem:[#allocation2 + $0x88] sm:$0xff]  ;;  %p2123_p8 = por %p2122_p7, %p2121_p6 }
  0x14   :  { %v39_v17 = vld [vmem:[#allocation2 + $0x80] sm:$0xff]  ;;  %v42_v18 = vld [vmem:[#allocation2 + $0x98] sm:$0xff]  ;;  %v41_v19 = vld [vmem:[#allocation2 + $0x90] sm:$0xff] }
  0x15   :  { %v44_v20 = vld [vmem:[#allocation2 + $0xa8] sm:$0xff]  ;;  %v43_v21 = vld [vmem:[#allocation2 + $0xa0] sm:$0xff]  ;;  %v46_v22 = vld [vmem:[#allocation2 + $0xb8] sm:$0xff]  ;;  %p2124_p9 = pnand %p2123_p8, %p2117_p5 }
  0x16   :  { %v45_v23 = vld [vmem:[#allocation2 + $0xb0] sm:$0xff]  ;;  %v48_v24 = vld [vmem:[#allocation2 + $0xc8] sm:$0xff]  ;;  %v47_v25 = vld [vmem:[#allocation2 + $0xc0] sm:$0xff] }
  0x17   :  { %313 = vxpose.xlu1.b32.cont [3/16] %v28_v4, 128  ;;  %281 = vxpose.xlu0.b32.cont [3/16] %v27_v5, 128  ;;  %v50_v26 = vld [vmem:[#allocation2 + $0xd8] sm:$0xff]  ;;  %v49_v27 = vld [vmem:[#allocation2 + $0xd0] sm:$0xff]  ;;  %v52_v28 = vld [vmem:[#allocation2 + $0xe8] sm:$0xff] }
  0x18   :  { %v51_v29 = vld [vmem:[#allocation2 + $0xe0] sm:$0xff]  ;;  %v54_v30 = vld [vmem:[#allocation2 + $0xf8] sm:$0xff]  ;;  %v53_v31 = vld [vmem:[#allocation2 + $0xf0] sm:$0xff] }
  0x19   :  { %v56_v32 = vld [vmem:[#allocation2 + $0x108] sm:$0xff]  ;;  %v55_v33 = vld [vmem:[#allocation2 + $0x100] sm:$0xff]  ;;  %v58_v34 = vld [vmem:[#allocation2 + $0x118] sm:$0xff] }
  0x1a   :  { %v57_v35 = vld [vmem:[#allocation2 + $0x110] sm:$0xff]  ;;  %v60_v36 = vld [vmem:[#allocation2 + $0x128] sm:$0xff]  ;;  %v59_v37 = vld [vmem:[#allocation2 + $0x120] sm:$0xff] }
  0x1b   :  { %314 = vxpose.xlu1.b32.cont [4/16] %v30_v6, 128  ;;  %282 = vxpose.xlu0.b32.cont [4/16] %v29_v7, 128  ;;  %v62_v38 = vld [vmem:[#allocation2 + $0x138] sm:$0xff]  ;;  %v61_v39 = vld [vmem:[#allocation2 + $0x130] sm:$0xff]  ;;  %v64_v40 = vld [vmem:[#allocation2 + $0x148] sm:$0xff] }
  0x1c   :  { %v63_v41 = vld [vmem:[#allocation2 + $0x140] sm:$0xff]  ;;  %v66_v42 = vld [vmem:[#allocation2 + $0x158] sm:$0xff]  ;;  %v65_v43 = vld [vmem:[#allocation2 + $0x150] sm:$0xff] }
  0x1d   :  { %v68_v44 = vld [vmem:[#allocation2 + $0x168] sm:$0xff]  ;;  %v67_v45 = vld [vmem:[#allocation2 + $0x160] sm:$0xff]  ;;  %v70_v46 = vld [vmem:[#allocation2 + $0x178] sm:$0xff] }
  0x1e   :  { %v69_v47 = vld [vmem:[#allocation2 + $0x170] sm:$0xff]  ;;  %v72_v48 = vld [vmem:[#allocation2 + $0x188] sm:$0xff]  ;;  %v71_v49 = vld [vmem:[#allocation2 + $0x180] sm:$0xff] }
  0x1f   :  { %315 = vxpose.xlu1.b32.cont [5/16] %v32_v8, 128  ;;  %283 = vxpose.xlu0.b32.cont [5/16] %v31_v9, 128  ;;  %v74_v50 = vld [vmem:[#allocation2 + $0x198] sm:$0xff]  ;;  %v73_v51 = vld [vmem:[#allocation2 + $0x190] sm:$0xff]  ;;  %v76_v52 = vld [vmem:[#allocation2 + $0x1a8] sm:$0xff] }
  0x20   :  { %v75_v53 = vld [vmem:[#allocation2 + $0x1a0] sm:$0xff]  ;;  %v78_v54 = vld [vmem:[#allocation2 + $0x1b8] sm:$0xff]  ;;  %v77_v55 = vld [vmem:[#allocation2 + $0x1b0] sm:$0xff] }
  0x21   :  { %v80_v56 = vld [vmem:[#allocation2 + $0x1c8] sm:$0xff]  ;;  %v79_v57 = vld [vmem:[#allocation2 + $0x1c0] sm:$0xff]  ;;  %v82_v58 = vld [vmem:[#allocation2 + $0x1d8] sm:$0xff] }
  0x22   :  { %v81_v59 = vld [vmem:[#allocation2 + $0x1d0] sm:$0xff]  ;;  %v84_v60 = vld [vmem:[#allocation2 + $0x1e8] sm:$0xff]  ;;  %v83_v61 = vld [vmem:[#allocation2 + $0x1e0] sm:$0xff] }
  0x23   :  { %316 = vxpose.xlu1.b32.cont [6/16] %v34_v10, 128  ;;  %284 = vxpose.xlu0.b32.cont [6/16] %v33_v11, 128  ;;  %v86_v62 = vld [vmem:[#allocation2 + $0x1f8] sm:$0xff]  ;;  %v85_v63 = vld [vmem:[#allocation2 + $0x1f0] sm:$0xff]  ;;  %v88_v2 = vld [vmem:[#allocation2 + $0x208] sm:$0xff] }
  0x24   :  { %v87_v3 = vld [vmem:[#allocation2 + $0x200] sm:$0xff]  ;;  %v90_v6 = vld [vmem:[#allocation2 + $0x218] sm:$0xff]  ;;  %v89_v7 = vld [vmem:[#allocation2 + $0x210] sm:$0xff] }
  0x25   :  { %v92_v10 = vld [vmem:[#allocation2 + $0x228] sm:$0xff]  ;;  %v91_v11 = vld [vmem:[#allocation2 + $0x220] sm:$0xff] }
  0x27   :  { %317 = vxpose.xlu1.b32.cont [7/16] %v36_v12, 128  ;;  %285 = vxpose.xlu0.b32.cont [7/16] %v35_v13, 128 }
  0x2b   :  { %318 = vxpose.xlu1.b32.cont [8/16] %v38_v14, 128  ;;  %286 = vxpose.xlu0.b32.cont [8/16] %v37_v15, 128  ;;  %v94_v14 = vld [vmem:[#allocation2 + $0x238] sm:$0xff]  ;;  %v93_v15 = vld [vmem:[#allocation2 + $0x230] sm:$0xff] }
  0x2f   :  { %319 = vxpose.xlu1.b32.cont [9/16] %v40_v16, 128  ;;  %287 = vxpose.xlu0.b32.cont [9/16] %v39_v17, 128 }
  0x33   :  { %320 = vxpose.xlu1.b32.cont [10/16] %v42_v18, 128  ;;  %288 = vxpose.xlu0.b32.cont [10/16] %v41_v19, 128  ;;  %v96_v18 = vld [vmem:[#allocation2 + $0x248] sm:$0xff]  ;;  %v95_v19 = vld [vmem:[#allocation2 + $0x240] sm:$0xff] }
  0x37   :  { %321 = vxpose.xlu1.b32.cont [11/16] %v44_v20, 128  ;;  %289 = vxpose.xlu0.b32.cont [11/16] %v43_v21, 128 }
  0x3b   :  { %322 = vxpose.xlu1.b32.cont [12/16] %v46_v22, 128  ;;  %290 = vxpose.xlu0.b32.cont [12/16] %v45_v23, 128  ;;  %v98_v22 = vld [vmem:[#allocation2 + $0x258] sm:$0xff]  ;;  %v97_v23 = vld [vmem:[#allocation2 + $0x250] sm:$0xff] }
  0x3f   :  { %323 = vxpose.xlu1.b32.cont [13/16] %v48_v24, 128  ;;  %291 = vxpose.xlu0.b32.cont [13/16] %v47_v25, 128 }
  0x43   :  { %324 = vxpose.xlu1.b32.cont [14/16] %v50_v26, 128  ;;  %292 = vxpose.xlu0.b32.cont [14/16] %v49_v27, 128  ;;  %v100_v26 = vld [vmem:[#allocation2 + $0x268] sm:$0xff]  ;;  %v99_v27 = vld [vmem:[#allocation2 + $0x260] sm:$0xff] }
  0x47   :  { %325 = vxpose.xlu1.b32.cont [15/16] %v52_v28, 128  ;;  %293 = vxpose.xlu0.b32.cont [15/16] %v51_v29, 128 }
  0x4b   :  { %326 = vxpose.xlu1.b32.end [16/16] %v54_v30, 128  ;;  %294 = vxpose.xlu0.b32.end [16/16] %v53_v31, 128  ;;  %v102_v30 = vld [vmem:[#allocation2 + $0x278] sm:$0xff]  ;;  %v101_v31 = vld [vmem:[#allocation2 + $0x270] sm:$0xff] }
  0x4f   :  { %375 = vxpose.xlu1.b32.start [1/16] %v56_v32, 128  ;;  %343 = vxpose.xlu0.b32.start [1/16] %v55_v33, 128 }
  0x53   :  { %376 = vxpose.xlu1.b32.cont [2/16] %v58_v34, 128  ;;  %344 = vxpose.xlu0.b32.cont [2/16] %v57_v35, 128  ;;  %v104_v34 = vld [vmem:[#allocation2 + $0x288] sm:$0xff]  ;;  %v103_v35 = vld [vmem:[#allocation2 + $0x280] sm:$0xff] }
  0x57   :  { %377 = vxpose.xlu1.b32.cont [3/16] %v60_v36, 128  ;;  %345 = vxpose.xlu0.b32.cont [3/16] %v59_v37, 128 }
  0x5b   :  { %378 = vxpose.xlu1.b32.cont [4/16] %v62_v38, 128  ;;  %346 = vxpose.xlu0.b32.cont [4/16] %v61_v39, 128  ;;  %v106_v38 = vld [vmem:[#allocation2 + $0x298] sm:$0xff]  ;;  %v105_v39 = vld [vmem:[#allocation2 + $0x290] sm:$0xff] }
  0x5f   :  { %379 = vxpose.xlu1.b32.cont [5/16] %v64_v40, 128  ;;  %347 = vxpose.xlu0.b32.cont [5/16] %v63_v41, 128 }
  0x63   :  { %380 = vxpose.xlu1.b32.cont [6/16] %v66_v42, 128  ;;  %348 = vxpose.xlu0.b32.cont [6/16] %v65_v43, 128  ;;  %v108_v42 = vld [vmem:[#allocation2 + $0x2a8] sm:$0xff]  ;;  %v107_v43 = vld [vmem:[#allocation2 + $0x2a0] sm:$0xff] }
  0x67   :  { %381 = vxpose.xlu1.b32.cont [7/16] %v68_v44, 128  ;;  %349 = vxpose.xlu0.b32.cont [7/16] %v67_v45, 128 }
  0x6b   :  { %382 = vxpose.xlu1.b32.cont [8/16] %v70_v46, 128  ;;  %350 = vxpose.xlu0.b32.cont [8/16] %v69_v47, 128  ;;  %v110_v46 = vld [vmem:[#allocation2 + $0x2b8] sm:$0xff]  ;;  %v109_v47 = vld [vmem:[#allocation2 + $0x2b0] sm:$0xff] }
  0x6f   :  { %383 = vxpose.xlu1.b32.cont [9/16] %v72_v48, 128  ;;  %351 = vxpose.xlu0.b32.cont [9/16] %v71_v49, 128 }
  0x73   :  { %384 = vxpose.xlu1.b32.cont [10/16] %v74_v50, 128  ;;  %352 = vxpose.xlu0.b32.cont [10/16] %v73_v51, 128  ;;  %v112_v50 = vld [vmem:[#allocation2 + $0x2c8] sm:$0xff]  ;;  %v111_v51 = vld [vmem:[#allocation2 + $0x2c0] sm:$0xff] }
  0x77   :  { %385 = vxpose.xlu1.b32.cont [11/16] %v76_v52, 128  ;;  %353 = vxpose.xlu0.b32.cont [11/16] %v75_v53, 128 }
  0x7b   :  { %386 = vxpose.xlu1.b32.cont [12/16] %v78_v54, 128  ;;  %354 = vxpose.xlu0.b32.cont [12/16] %v77_v55, 128  ;;  %v114_v54 = vld [vmem:[#allocation2 + $0x2d8] sm:$0xff]  ;;  %v113_v55 = vld [vmem:[#allocation2 + $0x2d0] sm:$0xff] }
  0x7f   :  { %387 = vxpose.xlu1.b32.cont [13/16] %v80_v56, 128  ;;  %355 = vxpose.xlu0.b32.cont [13/16] %v79_v57, 128 }
  0x83   :  { %388 = vxpose.xlu1.b32.cont [14/16] %v82_v58, 128  ;;  %356 = vxpose.xlu0.b32.cont [14/16] %v81_v59, 128  ;;  %v116_v58 = vld [vmem:[#allocation2 + $0x2e8] sm:$0xff]  ;;  %v115_v59 = vld [vmem:[#allocation2 + $0x2e0] sm:$0xff] }
  0x87   :  { %389 = vxpose.xlu1.b32.cont [15/16] %v84_v60, 128  ;;  %357 = vxpose.xlu0.b32.cont [15/16] %v83_v61, 128 }
  0x8b   :  { %390 = vxpose.xlu1.b32.end [16/16] %v86_v62, 128  ;;  %v327_v0 = vpop.trf.xlu1  ;;  %358 = vxpose.xlu0.b32.end [16/16] %v85_v63, 128  ;;  %v295_v1 = vpop.trf.xlu0  ;;  %v118_v62 = vld [vmem:[#allocation2 + $0x2f8] sm:$0xff]  ;;  %v117_v63 = vld [vmem:[#allocation2 + $0x2f0] sm:$0xff] }
  0x8c   :  { %919 = vst [vmem:[#allocation5 + $0x400] sm:$0xff] %v327_v0  ;;  %791 = vst [vmem:[#allocation5] sm:$0xff] %v295_v1 }
  0x8f   :  { %439 = vxpose.xlu1.b32.start [1/16] %v88_v2, 128  ;;  %v328_v4 = vpop.trf.xlu1  ;;  %407 = vxpose.xlu0.b32.start [1/16] %v87_v3, 128  ;;  %v296_v5 = vpop.trf.xlu0  ;;  %v120_v2 = vld [vmem:[#allocation2 + $0x308] sm:$0xff]  ;;  %v119_v3 = vld [vmem:[#allocation2 + $0x300] sm:$0xff] }
  0x90   :  { %927 = vst [vmem:[#allocation5 + $0x440] sm:$0xff] %v328_v4  ;;  %799 = vst [vmem:[#allocation5 + $0x40] sm:$0xff] %v296_v5 }
  0x93   :  { %440 = vxpose.xlu1.b32.cont [2/16] %v90_v6, 128  ;;  %v329_v8 = vpop.trf.xlu1  ;;  %408 = vxpose.xlu0.b32.cont [2/16] %v89_v7, 128  ;;  %v297_v9 = vpop.trf.xlu0  ;;  %v122_v6 = vld [vmem:[#allocation2 + $0x318] sm:$0xff]  ;;  %v121_v7 = vld [vmem:[#allocation2 + $0x310] sm:$0xff] }
  0x94   :  { %935 = vst [vmem:[#allocation5 + $0x480] sm:$0xff] %v329_v8  ;;  %807 = vst [vmem:[#allocation5 + $0x80] sm:$0xff] %v297_v9 }
  0x97   :  { %441 = vxpose.xlu1.b32.cont [3/16] %v92_v10, 128  ;;  %v330_v12 = vpop.trf.xlu1  ;;  %409 = vxpose.xlu0.b32.cont [3/16] %v91_v11, 128  ;;  %v298_v13 = vpop.trf.xlu0  ;;  %v124_v10 = vld [vmem:[#allocation2 + $0x328] sm:$0xff]  ;;  %v123_v11 = vld [vmem:[#allocation2 + $0x320] sm:$0xff] }
  0x98   :  { %943 = vst [vmem:[#allocation5 + $0x4c0] sm:$0xff] %v330_v12  ;;  %815 = vst [vmem:[#allocation5 + $0xc0] sm:$0xff] %v298_v13 }
  0x9b   :  { %442 = vxpose.xlu1.b32.cont [4/16] %v94_v14, 128  ;;  %v331_v16 = vpop.trf.xlu1  ;;  %410 = vxpose.xlu0.b32.cont [4/16] %v93_v15, 128  ;;  %v299_v17 = vpop.trf.xlu0  ;;  %v126_v14 = vld [vmem:[#allocation2 + $0x338] sm:$0xff]  ;;  %v125_v15 = vld [vmem:[#allocation2 + $0x330] sm:$0xff] }
  0x9c   :  { %951 = vst [vmem:[#allocation5 + $0x500] sm:$0xff] %v331_v16  ;;  %823 = vst [vmem:[#allocation5 + $0x100] sm:$0xff] %v299_v17 }
  0x9f   :  { %443 = vxpose.xlu1.b32.cont [5/16] %v96_v18, 128  ;;  %v332_v20 = vpop.trf.xlu1  ;;  %411 = vxpose.xlu0.b32.cont [5/16] %v95_v19, 128  ;;  %v300_v21 = vpop.trf.xlu0  ;;  %v128_v18 = vld [vmem:[#allocation2 + $0x348] sm:$0xff]  ;;  %v127_v19 = vld [vmem:[#allocation2 + $0x340] sm:$0xff] }
  0xa0   :  { %959 = vst [vmem:[#allocation5 + $0x540] sm:$0xff] %v332_v20  ;;  %831 = vst [vmem:[#allocation5 + $0x140] sm:$0xff] %v300_v21 }
  0xa3   :  { %444 = vxpose.xlu1.b32.cont [6/16] %v98_v22, 128  ;;  %v333_v24 = vpop.trf.xlu1  ;;  %412 = vxpose.xlu0.b32.cont [6/16] %v97_v23, 128  ;;  %v301_v25 = vpop.trf.xlu0  ;;  %v130_v22 = vld [vmem:[#allocation2 + $0x358] sm:$0xff]  ;;  %v129_v23 = vld [vmem:[#allocation2 + $0x350] sm:$0xff] }
  0xa4   :  { %967 = vst [vmem:[#allocation5 + $0x580] sm:$0xff] %v333_v24  ;;  %839 = vst [vmem:[#allocation5 + $0x180] sm:$0xff] %v301_v25 }
  0xa7   :  { %445 = vxpose.xlu1.b32.cont [7/16] %v100_v26, 128  ;;  %v334_v28 = vpop.trf.xlu1  ;;  %413 = vxpose.xlu0.b32.cont [7/16] %v99_v27, 128  ;;  %v302_v29 = vpop.trf.xlu0  ;;  %v132_v26 = vld [vmem:[#allocation2 + $0x368] sm:$0xff]  ;;  %v131_v27 = vld [vmem:[#allocation2 + $0x360] sm:$0xff] }
  0xa8   :  { %975 = vst [vmem:[#allocation5 + $0x5c0] sm:$0xff] %v334_v28  ;;  %847 = vst [vmem:[#allocation5 + $0x1c0] sm:$0xff] %v302_v29 }
  0xab   :  { %446 = vxpose.xlu1.b32.cont [8/16] %v102_v30, 128  ;;  %v335_v32 = vpop.trf.xlu1  ;;  %414 = vxpose.xlu0.b32.cont [8/16] %v101_v31, 128  ;;  %v303_v33 = vpop.trf.xlu0  ;;  %v134_v30 = vld [vmem:[#allocation2 + $0x378] sm:$0xff]  ;;  %v133_v31 = vld [vmem:[#allocation2 + $0x370] sm:$0xff] }
  0xac   :  { %983 = vst [vmem:[#allocation5 + $0x600] sm:$0xff] %v335_v32  ;;  %855 = vst [vmem:[#allocation5 + $0x200] sm:$0xff] %v303_v33 }
  0xaf   :  { %447 = vxpose.xlu1.b32.cont [9/16] %v104_v34, 128  ;;  %v336_v36 = vpop.trf.xlu1  ;;  %415 = vxpose.xlu0.b32.cont [9/16] %v103_v35, 128  ;;  %v304_v37 = vpop.trf.xlu0  ;;  %v136_v34 = vld [vmem:[#allocation2 + $0x388] sm:$0xff]  ;;  %v135_v35 = vld [vmem:[#allocation2 + $0x380] sm:$0xff] }
  0xb0   :  { %991 = vst [vmem:[#allocation5 + $0x640] sm:$0xff] %v336_v36  ;;  %863 = vst [vmem:[#allocation5 + $0x240] sm:$0xff] %v304_v37 }
  0xb3   :  { %448 = vxpose.xlu1.b32.cont [10/16] %v106_v38, 128  ;;  %v337_v40 = vpop.trf.xlu1  ;;  %416 = vxpose.xlu0.b32.cont [10/16] %v105_v39, 128  ;;  %v305_v41 = vpop.trf.xlu0  ;;  %v138_v38 = vld [vmem:[#allocation2 + $0x398] sm:$0xff]  ;;  %v137_v39 = vld [vmem:[#allocation2 + $0x390] sm:$0xff] }
  0xb4   :  { %999 = vst [vmem:[#allocation5 + $0x680] sm:$0xff] %v337_v40  ;;  %871 = vst [vmem:[#allocation5 + $0x280] sm:$0xff] %v305_v41 }
  0xb7   :  { %449 = vxpose.xlu1.b32.cont [11/16] %v108_v42, 128  ;;  %v338_v44 = vpop.trf.xlu1  ;;  %417 = vxpose.xlu0.b32.cont [11/16] %v107_v43, 128  ;;  %v306_v45 = vpop.trf.xlu0  ;;  %v140_v42 = vld [vmem:[#allocation2 + $0x3a8] sm:$0xff]  ;;  %v139_v43 = vld [vmem:[#allocation2 + $0x3a0] sm:$0xff] }
  0xb8   :  { %1007 = vst [vmem:[#allocation5 + $0x6c0] sm:$0xff] %v338_v44  ;;  %879 = vst [vmem:[#allocation5 + $0x2c0] sm:$0xff] %v306_v45 }
  0xbb   :  { %450 = vxpose.xlu1.b32.cont [12/16] %v110_v46, 128  ;;  %v339_v48 = vpop.trf.xlu1  ;;  %418 = vxpose.xlu0.b32.cont [12/16] %v109_v47, 128  ;;  %v307_v49 = vpop.trf.xlu0  ;;  %v142_v46 = vld [vmem:[#allocation2 + $0x3b8] sm:$0xff]  ;;  %v141_v47 = vld [vmem:[#allocation2 + $0x3b0] sm:$0xff] }
  0xbc   :  { %1015 = vst [vmem:[#allocation5 + $0x700] sm:$0xff] %v339_v48  ;;  %887 = vst [vmem:[#allocation5 + $0x300] sm:$0xff] %v307_v49 }
  0xbf   :  { %451 = vxpose.xlu1.b32.cont [13/16] %v112_v50, 128  ;;  %v340_v52 = vpop.trf.xlu1  ;;  %419 = vxpose.xlu0.b32.cont [13/16] %v111_v51, 128  ;;  %v308_v53 = vpop.trf.xlu0  ;;  %v144_v50 = vld [vmem:[#allocation2 + $0x3c8] sm:$0xff]  ;;  %v143_v51 = vld [vmem:[#allocation2 + $0x3c0] sm:$0xff] }
  0xc0   :  { %1023 = vst [vmem:[#allocation5 + $0x740] sm:$0xff] %v340_v52  ;;  %895 = vst [vmem:[#allocation5 + $0x340] sm:$0xff] %v308_v53 }
  0xc3   :  { %452 = vxpose.xlu1.b32.cont [14/16] %v114_v54, 128  ;;  %v341_v56 = vpop.trf.xlu1  ;;  %420 = vxpose.xlu0.b32.cont [14/16] %v113_v55, 128  ;;  %v309_v57 = vpop.trf.xlu0  ;;  %v146_v54 = vld [vmem:[#allocation2 + $0x3d8] sm:$0xff]  ;;  %v145_v55 = vld [vmem:[#allocation2 + $0x3d0] sm:$0xff] }
  0xc4   :  { %1031 = vst [vmem:[#allocation5 + $0x780] sm:$0xff] %v341_v56  ;;  %903 = vst [vmem:[#allocation5 + $0x380] sm:$0xff] %v309_v57 }
  0xc7   :  { %453 = vxpose.xlu1.b32.cont [15/16] %v116_v58, 128  ;;  %v342_v60 = vpop.trf.xlu1  ;;  %421 = vxpose.xlu0.b32.cont [15/16] %v115_v59, 128  ;;  %v310_v61 = vpop.trf.xlu0  ;;  %v148_v58 = vld [vmem:[#allocation2 + $0x3e8] sm:$0xff]  ;;  %v147_v59 = vld [vmem:[#allocation2 + $0x3e0] sm:$0xff] }
  0xc8   :  { %1039 = vst [vmem:[#allocation5 + $0x7c0] sm:$0xff] %v342_v60  ;;  %911 = vst [vmem:[#allocation5 + $0x3c0] sm:$0xff] %v310_v61 }
  0xcb   :  { %454 = vxpose.xlu1.b32.end [16/16] %v118_v62, 128  ;;  %v391_v0 = vpop.trf.xlu1  ;;  %422 = vxpose.xlu0.b32.end [16/16] %v117_v63, 128  ;;  %v359_v1 = vpop.trf.xlu0  ;;  %v150_v62 = vld [vmem:[#allocation2 + $0x3f8] sm:$0xff]  ;;  %v149_v63 = vld [vmem:[#allocation2 + $0x3f0] sm:$0xff] }
  0xcc   :  { %920 = vst [vmem:[#allocation5 + $0x408] sm:$0xff] %v391_v0  ;;  %792 = vst [vmem:[#allocation5 + $0x8] sm:$0xff] %v359_v1 }
  0xcf   :  { %503 = vxpose.xlu1.b32.start [1/16] %v120_v2, 128  ;;  %v392_v4 = vpop.trf.xlu1  ;;  %471 = vxpose.xlu0.b32.start [1/16] %v119_v3, 128  ;;  %v360_v5 = vpop.trf.xlu0  ;;  %v152_v2 = vld [vmem:[#allocation2 + $0x408] sm:$0xff]  ;;  %v151_v3 = vld [vmem:[#allocation2 + $0x400] sm:$0xff] }
  0xd0   :  { %928 = vst [vmem:[#allocation5 + $0x448] sm:$0xff] %v392_v4  ;;  %800 = vst [vmem:[#allocation5 + $0x48] sm:$0xff] %v360_v5 }
  0xd3   :  { %504 = vxpose.xlu1.b32.cont [2/16] %v122_v6, 128  ;;  %v393_v8 = vpop.trf.xlu1  ;;  %472 = vxpose.xlu0.b32.cont [2/16] %v121_v7, 128  ;;  %v361_v9 = vpop.trf.xlu0  ;;  %v154_v6 = vld [vmem:[#allocation2 + $0x418] sm:$0xff]  ;;  %v153_v7 = vld [vmem:[#allocation2 + $0x410] sm:$0xff] }
  0xd4   :  { %936 = vst [vmem:[#allocation5 + $0x488] sm:$0xff] %v393_v8  ;;  %808 = vst [vmem:[#allocation5 + $0x88] sm:$0xff] %v361_v9 }
  0xd7   :  { %505 = vxpose.xlu1.b32.cont [3/16] %v124_v10, 128  ;;  %v394_v12 = vpop.trf.xlu1  ;;  %473 = vxpose.xlu0.b32.cont [3/16] %v123_v11, 128  ;;  %v362_v13 = vpop.trf.xlu0  ;;  %v156_v10 = vld [vmem:[#allocation2 + $0x428] sm:$0xff]  ;;  %v155_v11 = vld [vmem:[#allocation2 + $0x420] sm:$0xff] }
  0xd8   :  { %944 = vst [vmem:[#allocation5 + $0x4c8] sm:$0xff] %v394_v12  ;;  %816 = vst [vmem:[#allocation5 + $0xc8] sm:$0xff] %v362_v13 }
  0xdb   :  { %506 = vxpose.xlu1.b32.cont [4/16] %v126_v14, 128  ;;  %v395_v16 = vpop.trf.xlu1  ;;  %474 = vxpose.xlu0.b32.cont [4/16] %v125_v15, 128  ;;  %v363_v17 = vpop.trf.xlu0  ;;  %v158_v14 = vld [vmem:[#allocation2 + $0x438] sm:$0xff]  ;;  %v157_v15 = vld [vmem:[#allocation2 + $0x430] sm:$0xff] }
  0xdc   :  { %952 = vst [vmem:[#allocation5 + $0x508] sm:$0xff] %v395_v16  ;;  %824 = vst [vmem:[#allocation5 + $0x108] sm:$0xff] %v363_v17 }
  0xdf   :  { %507 = vxpose.xlu1.b32.cont [5/16] %v128_v18, 128  ;;  %v396_v20 = vpop.trf.xlu1  ;;  %475 = vxpose.xlu0.b32.cont [5/16] %v127_v19, 128  ;;  %v364_v21 = vpop.trf.xlu0  ;;  %v160_v18 = vld [vmem:[#allocation2 + $0x448] sm:$0xff]  ;;  %v159_v19 = vld [vmem:[#allocation2 + $0x440] sm:$0xff] }
  0xe0   :  { %960 = vst [vmem:[#allocation5 + $0x548] sm:$0xff] %v396_v20  ;;  %832 = vst [vmem:[#allocation5 + $0x148] sm:$0xff] %v364_v21 }
  0xe3   :  { %508 = vxpose.xlu1.b32.cont [6/16] %v130_v22, 128  ;;  %v397_v24 = vpop.trf.xlu1  ;;  %476 = vxpose.xlu0.b32.cont [6/16] %v129_v23, 128  ;;  %v365_v25 = vpop.trf.xlu0  ;;  %v162_v22 = vld [vmem:[#allocation2 + $0x458] sm:$0xff]  ;;  %v161_v23 = vld [vmem:[#allocation2 + $0x450] sm:$0xff] }
  0xe4   :  { %968 = vst [vmem:[#allocation5 + $0x588] sm:$0xff] %v397_v24  ;;  %840 = vst [vmem:[#allocation5 + $0x188] sm:$0xff] %v365_v25 }
  0xe7   :  { %509 = vxpose.xlu1.b32.cont [7/16] %v132_v26, 128  ;;  %v398_v28 = vpop.trf.xlu1  ;;  %477 = vxpose.xlu0.b32.cont [7/16] %v131_v27, 128  ;;  %v366_v29 = vpop.trf.xlu0  ;;  %v164_v26 = vld [vmem:[#allocation2 + $0x468] sm:$0xff]  ;;  %v163_v27 = vld [vmem:[#allocation2 + $0x460] sm:$0xff] }
  0xe8   :  { %976 = vst [vmem:[#allocation5 + $0x5c8] sm:$0xff] %v398_v28  ;;  %848 = vst [vmem:[#allocation5 + $0x1c8] sm:$0xff] %v366_v29 }
  0xeb   :  { %510 = vxpose.xlu1.b32.cont [8/16] %v134_v30, 128  ;;  %v399_v32 = vpop.trf.xlu1  ;;  %478 = vxpose.xlu0.b32.cont [8/16] %v133_v31, 128  ;;  %v367_v33 = vpop.trf.xlu0  ;;  %v166_v30 = vld [vmem:[#allocation2 + $0x478] sm:$0xff]  ;;  %v165_v31 = vld [vmem:[#allocation2 + $0x470] sm:$0xff] }
  0xec   :  { %984 = vst [vmem:[#allocation5 + $0x608] sm:$0xff] %v399_v32  ;;  %856 = vst [vmem:[#allocation5 + $0x208] sm:$0xff] %v367_v33 }
  0xef   :  { %511 = vxpose.xlu1.b32.cont [9/16] %v136_v34, 128  ;;  %v400_v36 = vpop.trf.xlu1  ;;  %479 = vxpose.xlu0.b32.cont [9/16] %v135_v35, 128  ;;  %v368_v37 = vpop.trf.xlu0  ;;  %v168_v34 = vld [vmem:[#allocation2 + $0x488] sm:$0xff]  ;;  %v167_v35 = vld [vmem:[#allocation2 + $0x480] sm:$0xff] }
  0xf0   :  { %992 = vst [vmem:[#allocation5 + $0x648] sm:$0xff] %v400_v36  ;;  %864 = vst [vmem:[#allocation5 + $0x248] sm:$0xff] %v368_v37 }
  0xf3   :  { %512 = vxpose.xlu1.b32.cont [10/16] %v138_v38, 128  ;;  %v401_v40 = vpop.trf.xlu1  ;;  %480 = vxpose.xlu0.b32.cont [10/16] %v137_v39, 128  ;;  %v369_v41 = vpop.trf.xlu0  ;;  %v170_v38 = vld [vmem:[#allocation2 + $0x498] sm:$0xff]  ;;  %v169_v39 = vld [vmem:[#allocation2 + $0x490] sm:$0xff] }
  0xf4   :  { %1000 = vst [vmem:[#allocation5 + $0x688] sm:$0xff] %v401_v40  ;;  %872 = vst [vmem:[#allocation5 + $0x288] sm:$0xff] %v369_v41 }
  0xf7   :  { %513 = vxpose.xlu1.b32.cont [11/16] %v140_v42, 128  ;;  %v402_v44 = vpop.trf.xlu1  ;;  %481 = vxpose.xlu0.b32.cont [11/16] %v139_v43, 128  ;;  %v370_v45 = vpop.trf.xlu0  ;;  %v172_v42 = vld [vmem:[#allocation2 + $0x4a8] sm:$0xff]  ;;  %v171_v43 = vld [vmem:[#allocation2 + $0x4a0] sm:$0xff] }
  0xf8   :  { %1008 = vst [vmem:[#allocation5 + $0x6c8] sm:$0xff] %v402_v44  ;;  %880 = vst [vmem:[#allocation5 + $0x2c8] sm:$0xff] %v370_v45 }
  0xfb   :  { %514 = vxpose.xlu1.b32.cont [12/16] %v142_v46, 128  ;;  %v403_v48 = vpop.trf.xlu1  ;;  %482 = vxpose.xlu0.b32.cont [12/16] %v141_v47, 128  ;;  %v371_v49 = vpop.trf.xlu0  ;;  %v174_v46 = vld [vmem:[#allocation2 + $0x4b8] sm:$0xff]  ;;  %v173_v47 = vld [vmem:[#allocation2 + $0x4b0] sm:$0xff] }
  0xfc   :  { %1016 = vst [vmem:[#allocation5 + $0x708] sm:$0xff] %v403_v48  ;;  %888 = vst [vmem:[#allocation5 + $0x308] sm:$0xff] %v371_v49 }
  0xff   :  { %515 = vxpose.xlu1.b32.cont [13/16] %v144_v50, 128  ;;  %v404_v52 = vpop.trf.xlu1  ;;  %483 = vxpose.xlu0.b32.cont [13/16] %v143_v51, 128  ;;  %v372_v53 = vpop.trf.xlu0  ;;  %v176_v50 = vld [vmem:[#allocation2 + $0x4c8] sm:$0xff]  ;;  %v175_v51 = vld [vmem:[#allocation2 + $0x4c0] sm:$0xff] }
 0x100   :  { %1024 = vst [vmem:[#allocation5 + $0x748] sm:$0xff] %v404_v52  ;;  %896 = vst [vmem:[#allocation5 + $0x348] sm:$0xff] %v372_v53 }
 0x103   :  { %516 = vxpose.xlu1.b32.cont [14/16] %v146_v54, 128  ;;  %v405_v56 = vpop.trf.xlu1  ;;  %484 = vxpose.xlu0.b32.cont [14/16] %v145_v55, 128  ;;  %v373_v57 = vpop.trf.xlu0  ;;  %v178_v54 = vld [vmem:[#allocation2 + $0x4d8] sm:$0xff]  ;;  %v177_v55 = vld [vmem:[#allocation2 + $0x4d0] sm:$0xff] }
 0x104   :  { %1032 = vst [vmem:[#allocation5 + $0x788] sm:$0xff] %v405_v56  ;;  %904 = vst [vmem:[#allocation5 + $0x388] sm:$0xff] %v373_v57 }
 0x107   :  { %517 = vxpose.xlu1.b32.cont [15/16] %v148_v58, 128  ;;  %v406_v60 = vpop.trf.xlu1  ;;  %485 = vxpose.xlu0.b32.cont [15/16] %v147_v59, 128  ;;  %v374_v61 = vpop.trf.xlu0  ;;  %v180_v58 = vld [vmem:[#allocation2 + $0x4e8] sm:$0xff]  ;;  %v179_v59 = vld [vmem:[#allocation2 + $0x4e0] sm:$0xff] }
 0x108   :  { %1040 = vst [vmem:[#allocation5 + $0x7c8] sm:$0xff] %v406_v60  ;;  %912 = vst [vmem:[#allocation5 + $0x3c8] sm:$0xff] %v374_v61 }
 0x10b   :  { %518 = vxpose.xlu1.b32.end [16/16] %v150_v62, 128  ;;  %v455_v0 = vpop.trf.xlu1  ;;  %486 = vxpose.xlu0.b32.end [16/16] %v149_v63, 128  ;;  %v423_v1 = vpop.trf.xlu0  ;;  %v182_v62 = vld [vmem:[#allocation2 + $0x4f8] sm:$0xff]  ;;  %v181_v63 = vld [vmem:[#allocation2 + $0x4f0] sm:$0xff] }
 0x10c   :  { %921 = vst [vmem:[#allocation5 + $0x410] sm:$0xff] %v455_v0  ;;  %793 = vst [vmem:[#allocation5 + $0x10] sm:$0xff] %v423_v1 }
 0x10f   :  { %567 = vxpose.xlu1.b32.start [1/16] %v152_v2, 128  ;;  %v456_v4 = vpop.trf.xlu1  ;;  %535 = vxpose.xlu0.b32.start [1/16] %v151_v3, 128  ;;  %v424_v5 = vpop.trf.xlu0  ;;  %v184_v2 = vld [vmem:[#allocation2 + $0x508] sm:$0xff]  ;;  %v183_v3 = vld [vmem:[#allocation2 + $0x500] sm:$0xff] }
 0x110   :  { %929 = vst [vmem:[#allocation5 + $0x450] sm:$0xff] %v456_v4  ;;  %801 = vst [vmem:[#allocation5 + $0x50] sm:$0xff] %v424_v5 }
 0x113   :  { %568 = vxpose.xlu1.b32.cont [2/16] %v154_v6, 128  ;;  %v457_v8 = vpop.trf.xlu1  ;;  %536 = vxpose.xlu0.b32.cont [2/16] %v153_v7, 128  ;;  %v425_v9 = vpop.trf.xlu0  ;;  %v186_v6 = vld [vmem:[#allocation2 + $0x518] sm:$0xff]  ;;  %v185_v7 = vld [vmem:[#allocation2 + $0x510] sm:$0xff] }
 0x114   :  { %937 = vst [vmem:[#allocation5 + $0x490] sm:$0xff] %v457_v8  ;;  %809 = vst [vmem:[#allocation5 + $0x90] sm:$0xff] %v425_v9 }
 0x117   :  { %569 = vxpose.xlu1.b32.cont [3/16] %v156_v10, 128  ;;  %v458_v12 = vpop.trf.xlu1  ;;  %537 = vxpose.xlu0.b32.cont [3/16] %v155_v11, 128  ;;  %v426_v13 = vpop.trf.xlu0  ;;  %v188_v10 = vld [vmem:[#allocation2 + $0x528] sm:$0xff]  ;;  %v187_v11 = vld [vmem:[#allocation2 + $0x520] sm:$0xff] }
 0x118   :  { %945 = vst [vmem:[#allocation5 + $0x4d0] sm:$0xff] %v458_v12  ;;  %817 = vst [vmem:[#allocation5 + $0xd0] sm:$0xff] %v426_v13 }
 0x11b   :  { %570 = vxpose.xlu1.b32.cont [4/16] %v158_v14, 128  ;;  %v459_v16 = vpop.trf.xlu1  ;;  %538 = vxpose.xlu0.b32.cont [4/16] %v157_v15, 128  ;;  %v427_v17 = vpop.trf.xlu0  ;;  %v190_v14 = vld [vmem:[#allocation2 + $0x538] sm:$0xff]  ;;  %v189_v15 = vld [vmem:[#allocation2 + $0x530] sm:$0xff] }
 0x11c   :  { %953 = vst [vmem:[#allocation5 + $0x510] sm:$0xff] %v459_v16  ;;  %825 = vst [vmem:[#allocation5 + $0x110] sm:$0xff] %v427_v17 }
 0x11f   :  { %571 = vxpose.xlu1.b32.cont [5/16] %v160_v18, 128  ;;  %v460_v20 = vpop.trf.xlu1  ;;  %539 = vxpose.xlu0.b32.cont [5/16] %v159_v19, 128  ;;  %v428_v21 = vpop.trf.xlu0  ;;  %v192_v18 = vld [vmem:[#allocation2 + $0x548] sm:$0xff]  ;;  %v191_v19 = vld [vmem:[#allocation2 + $0x540] sm:$0xff] }
 0x120   :  { %961 = vst [vmem:[#allocation5 + $0x550] sm:$0xff] %v460_v20  ;;  %833 = vst [vmem:[#allocation5 + $0x150] sm:$0xff] %v428_v21 }
 0x123   :  { %572 = vxpose.xlu1.b32.cont [6/16] %v162_v22, 128  ;;  %v461_v24 = vpop.trf.xlu1  ;;  %540 = vxpose.xlu0.b32.cont [6/16] %v161_v23, 128  ;;  %v429_v25 = vpop.trf.xlu0  ;;  %v194_v22 = vld [vmem:[#allocation2 + $0x558] sm:$0xff]  ;;  %v193_v23 = vld [vmem:[#allocation2 + $0x550] sm:$0xff] }
 0x124   :  { %969 = vst [vmem:[#allocation5 + $0x590] sm:$0xff] %v461_v24  ;;  %841 = vst [vmem:[#allocation5 + $0x190] sm:$0xff] %v429_v25 }
 0x127   :  { %573 = vxpose.xlu1.b32.cont [7/16] %v164_v26, 128  ;;  %v462_v28 = vpop.trf.xlu1  ;;  %541 = vxpose.xlu0.b32.cont [7/16] %v163_v27, 128  ;;  %v430_v29 = vpop.trf.xlu0  ;;  %v196_v26 = vld [vmem:[#allocation2 + $0x568] sm:$0xff]  ;;  %v195_v27 = vld [vmem:[#allocation2 + $0x560] sm:$0xff] }
 0x128   :  { %977 = vst [vmem:[#allocation5 + $0x5d0] sm:$0xff] %v462_v28  ;;  %849 = vst [vmem:[#allocation5 + $0x1d0] sm:$0xff] %v430_v29 }
 0x12b   :  { %574 = vxpose.xlu1.b32.cont [8/16] %v166_v30, 128  ;;  %v463_v32 = vpop.trf.xlu1  ;;  %542 = vxpose.xlu0.b32.cont [8/16] %v165_v31, 128  ;;  %v431_v33 = vpop.trf.xlu0  ;;  %v198_v30 = vld [vmem:[#allocation2 + $0x578] sm:$0xff]  ;;  %v197_v31 = vld [vmem:[#allocation2 + $0x570] sm:$0xff] }
 0x12c   :  { %985 = vst [vmem:[#allocation5 + $0x610] sm:$0xff] %v463_v32  ;;  %857 = vst [vmem:[#allocation5 + $0x210] sm:$0xff] %v431_v33 }
 0x12f   :  { %575 = vxpose.xlu1.b32.cont [9/16] %v168_v34, 128  ;;  %v464_v36 = vpop.trf.xlu1  ;;  %543 = vxpose.xlu0.b32.cont [9/16] %v167_v35, 128  ;;  %v432_v37 = vpop.trf.xlu0  ;;  %v200_v34 = vld [vmem:[#allocation2 + $0x588] sm:$0xff]  ;;  %v199_v35 = vld [vmem:[#allocation2 + $0x580] sm:$0xff] }
 0x130   :  { %993 = vst [vmem:[#allocation5 + $0x650] sm:$0xff] %v464_v36  ;;  %865 = vst [vmem:[#allocation5 + $0x250] sm:$0xff] %v432_v37 }
 0x133   :  { %576 = vxpose.xlu1.b32.cont [10/16] %v170_v38, 128  ;;  %v465_v40 = vpop.trf.xlu1  ;;  %544 = vxpose.xlu0.b32.cont [10/16] %v169_v39, 128  ;;  %v433_v41 = vpop.trf.xlu0  ;;  %v202_v38 = vld [vmem:[#allocation2 + $0x598] sm:$0xff]  ;;  %v201_v39 = vld [vmem:[#allocation2 + $0x590] sm:$0xff] }
 0x134   :  { %1001 = vst [vmem:[#allocation5 + $0x690] sm:$0xff] %v465_v40  ;;  %873 = vst [vmem:[#allocation5 + $0x290] sm:$0xff] %v433_v41 }
 0x137   :  { %577 = vxpose.xlu1.b32.cont [11/16] %v172_v42, 128  ;;  %v466_v44 = vpop.trf.xlu1  ;;  %545 = vxpose.xlu0.b32.cont [11/16] %v171_v43, 128  ;;  %v434_v45 = vpop.trf.xlu0  ;;  %v204_v42 = vld [vmem:[#allocation2 + $0x5a8] sm:$0xff]  ;;  %v203_v43 = vld [vmem:[#allocation2 + $0x5a0] sm:$0xff] }
 0x138   :  { %1009 = vst [vmem:[#allocation5 + $0x6d0] sm:$0xff] %v466_v44  ;;  %881 = vst [vmem:[#allocation5 + $0x2d0] sm:$0xff] %v434_v45 }
 0x13b   :  { %578 = vxpose.xlu1.b32.cont [12/16] %v174_v46, 128  ;;  %v467_v48 = vpop.trf.xlu1  ;;  %546 = vxpose.xlu0.b32.cont [12/16] %v173_v47, 128  ;;  %v435_v49 = vpop.trf.xlu0  ;;  %v206_v46 = vld [vmem:[#allocation2 + $0x5b8] sm:$0xff]  ;;  %v205_v47 = vld [vmem:[#allocation2 + $0x5b0] sm:$0xff] }
 0x13c   :  { %1017 = vst [vmem:[#allocation5 + $0x710] sm:$0xff] %v467_v48  ;;  %889 = vst [vmem:[#allocation5 + $0x310] sm:$0xff] %v435_v49 }
 0x13f   :  { %579 = vxpose.xlu1.b32.cont [13/16] %v176_v50, 128  ;;  %v468_v52 = vpop.trf.xlu1  ;;  %547 = vxpose.xlu0.b32.cont [13/16] %v175_v51, 128  ;;  %v436_v53 = vpop.trf.xlu0  ;;  %v208_v50 = vld [vmem:[#allocation2 + $0x5c8] sm:$0xff]  ;;  %v207_v51 = vld [vmem:[#allocation2 + $0x5c0] sm:$0xff] }
 0x140   :  { %1025 = vst [vmem:[#allocation5 + $0x750] sm:$0xff] %v468_v52  ;;  %897 = vst [vmem:[#allocation5 + $0x350] sm:$0xff] %v436_v53 }
 0x143   :  { %580 = vxpose.xlu1.b32.cont [14/16] %v178_v54, 128  ;;  %v469_v56 = vpop.trf.xlu1  ;;  %548 = vxpose.xlu0.b32.cont [14/16] %v177_v55, 128  ;;  %v437_v57 = vpop.trf.xlu0  ;;  %v210_v54 = vld [vmem:[#allocation2 + $0x5d8] sm:$0xff]  ;;  %v209_v55 = vld [vmem:[#allocation2 + $0x5d0] sm:$0xff] }
 0x144   :  { %1033 = vst [vmem:[#allocation5 + $0x790] sm:$0xff] %v469_v56  ;;  %905 = vst [vmem:[#allocation5 + $0x390] sm:$0xff] %v437_v57 }
 0x147   :  { %581 = vxpose.xlu1.b32.cont [15/16] %v180_v58, 128  ;;  %v470_v60 = vpop.trf.xlu1  ;;  %549 = vxpose.xlu0.b32.cont [15/16] %v179_v59, 128  ;;  %v438_v61 = vpop.trf.xlu0  ;;  %v212_v58 = vld [vmem:[#allocation2 + $0x5e8] sm:$0xff]  ;;  %v211_v59 = vld [vmem:[#allocation2 + $0x5e0] sm:$0xff] }
 0x148   :  { %1041 = vst [vmem:[#allocation5 + $0x7d0] sm:$0xff] %v470_v60  ;;  %913 = vst [vmem:[#allocation5 + $0x3d0] sm:$0xff] %v438_v61 }
 0x14b   :  { %582 = vxpose.xlu1.b32.end [16/16] %v182_v62, 128  ;;  %v519_v0 = vpop.trf.xlu1  ;;  %550 = vxpose.xlu0.b32.end [16/16] %v181_v63, 128  ;;  %v487_v1 = vpop.trf.xlu0  ;;  %v214_v62 = vld [vmem:[#allocation2 + $0x5f8] sm:$0xff]  ;;  %v213_v63 = vld [vmem:[#allocation2 + $0x5f0] sm:$0xff] }
 0x14c   :  { %922 = vst [vmem:[#allocation5 + $0x418] sm:$0xff] %v519_v0  ;;  %794 = vst [vmem:[#allocation5 + $0x18] sm:$0xff] %v487_v1 }
 0x14f   :  { %631 = vxpose.xlu1.b32.start [1/16] %v184_v2, 128  ;;  %v520_v4 = vpop.trf.xlu1  ;;  %599 = vxpose.xlu0.b32.start [1/16] %v183_v3, 128  ;;  %v488_v5 = vpop.trf.xlu0  ;;  %v216_v2 = vld [vmem:[#allocation2 + $0x608] sm:$0xff]  ;;  %v215_v3 = vld [vmem:[#allocation2 + $0x600] sm:$0xff] }
 0x150   :  { %930 = vst [vmem:[#allocation5 + $0x458] sm:$0xff] %v520_v4  ;;  %802 = vst [vmem:[#allocation5 + $0x58] sm:$0xff] %v488_v5 }
 0x153   :  { %632 = vxpose.xlu1.b32.cont [2/16] %v186_v6, 128  ;;  %v521_v8 = vpop.trf.xlu1  ;;  %600 = vxpose.xlu0.b32.cont [2/16] %v185_v7, 128  ;;  %v489_v9 = vpop.trf.xlu0  ;;  %v218_v6 = vld [vmem:[#allocation2 + $0x618] sm:$0xff]  ;;  %v217_v7 = vld [vmem:[#allocation2 + $0x610] sm:$0xff] }
 0x154   :  { %938 = vst [vmem:[#allocation5 + $0x498] sm:$0xff] %v521_v8  ;;  %810 = vst [vmem:[#allocation5 + $0x98] sm:$0xff] %v489_v9 }
 0x157   :  { %633 = vxpose.xlu1.b32.cont [3/16] %v188_v10, 128  ;;  %v522_v12 = vpop.trf.xlu1  ;;  %601 = vxpose.xlu0.b32.cont [3/16] %v187_v11, 128  ;;  %v490_v13 = vpop.trf.xlu0  ;;  %v220_v10 = vld [vmem:[#allocation2 + $0x628] sm:$0xff]  ;;  %v219_v11 = vld [vmem:[#allocation2 + $0x620] sm:$0xff] }
 0x158   :  { %946 = vst [vmem:[#allocation5 + $0x4d8] sm:$0xff] %v522_v12  ;;  %818 = vst [vmem:[#allocation5 + $0xd8] sm:$0xff] %v490_v13 }
 0x15b   :  { %634 = vxpose.xlu1.b32.cont [4/16] %v190_v14, 128  ;;  %v523_v16 = vpop.trf.xlu1  ;;  %602 = vxpose.xlu0.b32.cont [4/16] %v189_v15, 128  ;;  %v491_v17 = vpop.trf.xlu0  ;;  %v222_v14 = vld [vmem:[#allocation2 + $0x638] sm:$0xff]  ;;  %v221_v15 = vld [vmem:[#allocation2 + $0x630] sm:$0xff] }
 0x15c   :  { %954 = vst [vmem:[#allocation5 + $0x518] sm:$0xff] %v523_v16  ;;  %826 = vst [vmem:[#allocation5 + $0x118] sm:$0xff] %v491_v17 }
 0x15f   :  { %635 = vxpose.xlu1.b32.cont [5/16] %v192_v18, 128  ;;  %v524_v20 = vpop.trf.xlu1  ;;  %603 = vxpose.xlu0.b32.cont [5/16] %v191_v19, 128  ;;  %v492_v21 = vpop.trf.xlu0  ;;  %v224_v18 = vld [vmem:[#allocation2 + $0x648] sm:$0xff]  ;;  %v223_v19 = vld [vmem:[#allocation2 + $0x640] sm:$0xff] }
 0x160   :  { %962 = vst [vmem:[#allocation5 + $0x558] sm:$0xff] %v524_v20  ;;  %834 = vst [vmem:[#allocation5 + $0x158] sm:$0xff] %v492_v21 }
 0x163   :  { %636 = vxpose.xlu1.b32.cont [6/16] %v194_v22, 128  ;;  %v525_v24 = vpop.trf.xlu1  ;;  %604 = vxpose.xlu0.b32.cont [6/16] %v193_v23, 128  ;;  %v493_v25 = vpop.trf.xlu0  ;;  %v226_v22 = vld [vmem:[#allocation2 + $0x658] sm:$0xff]  ;;  %v225_v23 = vld [vmem:[#allocation2 + $0x650] sm:$0xff] }
 0x164   :  { %970 = vst [vmem:[#allocation5 + $0x598] sm:$0xff] %v525_v24  ;;  %842 = vst [vmem:[#allocation5 + $0x198] sm:$0xff] %v493_v25 }
 0x167   :  { %637 = vxpose.xlu1.b32.cont [7/16] %v196_v26, 128  ;;  %v526_v28 = vpop.trf.xlu1  ;;  %605 = vxpose.xlu0.b32.cont [7/16] %v195_v27, 128  ;;  %v494_v29 = vpop.trf.xlu0  ;;  %v228_v26 = vld [vmem:[#allocation2 + $0x668] sm:$0xff]  ;;  %v227_v27 = vld [vmem:[#allocation2 + $0x660] sm:$0xff] }
 0x168   :  { %978 = vst [vmem:[#allocation5 + $0x5d8] sm:$0xff] %v526_v28  ;;  %850 = vst [vmem:[#allocation5 + $0x1d8] sm:$0xff] %v494_v29 }
 0x16b   :  { %638 = vxpose.xlu1.b32.cont [8/16] %v198_v30, 128  ;;  %v527_v32 = vpop.trf.xlu1  ;;  %606 = vxpose.xlu0.b32.cont [8/16] %v197_v31, 128  ;;  %v495_v33 = vpop.trf.xlu0  ;;  %v230_v30 = vld [vmem:[#allocation2 + $0x678] sm:$0xff]  ;;  %v229_v31 = vld [vmem:[#allocation2 + $0x670] sm:$0xff] }
 0x16c   :  { %986 = vst [vmem:[#allocation5 + $0x618] sm:$0xff] %v527_v32  ;;  %858 = vst [vmem:[#allocation5 + $0x218] sm:$0xff] %v495_v33 }
 0x16f   :  { %639 = vxpose.xlu1.b32.cont [9/16] %v200_v34, 128  ;;  %v528_v36 = vpop.trf.xlu1  ;;  %607 = vxpose.xlu0.b32.cont [9/16] %v199_v35, 128  ;;  %v496_v37 = vpop.trf.xlu0  ;;  %v232_v34 = vld [vmem:[#allocation2 + $0x688] sm:$0xff]  ;;  %v231_v35 = vld [vmem:[#allocation2 + $0x680] sm:$0xff] }
 0x170   :  { %994 = vst [vmem:[#allocation5 + $0x658] sm:$0xff] %v528_v36  ;;  %866 = vst [vmem:[#allocation5 + $0x258] sm:$0xff] %v496_v37 }
 0x173   :  { %640 = vxpose.xlu1.b32.cont [10/16] %v202_v38, 128  ;;  %v529_v40 = vpop.trf.xlu1  ;;  %608 = vxpose.xlu0.b32.cont [10/16] %v201_v39, 128  ;;  %v497_v41 = vpop.trf.xlu0  ;;  %v234_v38 = vld [vmem:[#allocation2 + $0x698] sm:$0xff]  ;;  %v233_v39 = vld [vmem:[#allocation2 + $0x690] sm:$0xff] }
 0x174   :  { %1002 = vst [vmem:[#allocation5 + $0x698] sm:$0xff] %v529_v40  ;;  %874 = vst [vmem:[#allocation5 + $0x298] sm:$0xff] %v497_v41 }
 0x177   :  { %641 = vxpose.xlu1.b32.cont [11/16] %v204_v42, 128  ;;  %v530_v44 = vpop.trf.xlu1  ;;  %609 = vxpose.xlu0.b32.cont [11/16] %v203_v43, 128  ;;  %v498_v45 = vpop.trf.xlu0  ;;  %v236_v42 = vld [vmem:[#allocation2 + $0x6a8] sm:$0xff]  ;;  %v235_v43 = vld [vmem:[#allocation2 + $0x6a0] sm:$0xff] }
 0x178   :  { %1010 = vst [vmem:[#allocation5 + $0x6d8] sm:$0xff] %v530_v44  ;;  %882 = vst [vmem:[#allocation5 + $0x2d8] sm:$0xff] %v498_v45 }
 0x17b   :  { %642 = vxpose.xlu1.b32.cont [12/16] %v206_v46, 128  ;;  %v531_v48 = vpop.trf.xlu1  ;;  %610 = vxpose.xlu0.b32.cont [12/16] %v205_v47, 128  ;;  %v499_v49 = vpop.trf.xlu0  ;;  %v238_v46 = vld [vmem:[#allocation2 + $0x6b8] sm:$0xff]  ;;  %v237_v47 = vld [vmem:[#allocation2 + $0x6b0] sm:$0xff] }
 0x17c   :  { %1018 = vst [vmem:[#allocation5 + $0x718] sm:$0xff] %v531_v48  ;;  %890 = vst [vmem:[#allocation5 + $0x318] sm:$0xff] %v499_v49 }
 0x17f   :  { %643 = vxpose.xlu1.b32.cont [13/16] %v208_v50, 128  ;;  %v532_v52 = vpop.trf.xlu1  ;;  %611 = vxpose.xlu0.b32.cont [13/16] %v207_v51, 128  ;;  %v500_v53 = vpop.trf.xlu0  ;;  %v240_v50 = vld [vmem:[#allocation2 + $0x6c8] sm:$0xff]  ;;  %v239_v51 = vld [vmem:[#allocation2 + $0x6c0] sm:$0xff] }
 0x180   :  { %1026 = vst [vmem:[#allocation5 + $0x758] sm:$0xff] %v532_v52  ;;  %898 = vst [vmem:[#allocation5 + $0x358] sm:$0xff] %v500_v53 }
 0x183   :  { %644 = vxpose.xlu1.b32.cont [14/16] %v210_v54, 128  ;;  %v533_v56 = vpop.trf.xlu1  ;;  %612 = vxpose.xlu0.b32.cont [14/16] %v209_v55, 128  ;;  %v501_v57 = vpop.trf.xlu0  ;;  %v242_v54 = vld [vmem:[#allocation2 + $0x6d8] sm:$0xff]  ;;  %v241_v55 = vld [vmem:[#allocation2 + $0x6d0] sm:$0xff] }
 0x184   :  { %1034 = vst [vmem:[#allocation5 + $0x798] sm:$0xff] %v533_v56  ;;  %906 = vst [vmem:[#allocation5 + $0x398] sm:$0xff] %v501_v57 }
 0x187   :  { %645 = vxpose.xlu1.b32.cont [15/16] %v212_v58, 128  ;;  %v534_v60 = vpop.trf.xlu1  ;;  %613 = vxpose.xlu0.b32.cont [15/16] %v211_v59, 128  ;;  %v502_v61 = vpop.trf.xlu0  ;;  %v244_v58 = vld [vmem:[#allocation2 + $0x6e8] sm:$0xff]  ;;  %v243_v59 = vld [vmem:[#allocation2 + $0x6e0] sm:$0xff] }
 0x188   :  { %1042 = vst [vmem:[#allocation5 + $0x7d8] sm:$0xff] %v534_v60  ;;  %914 = vst [vmem:[#allocation5 + $0x3d8] sm:$0xff] %v502_v61 }
 0x18b   :  { %646 = vxpose.xlu1.b32.end [16/16] %v214_v62, 128  ;;  %v583_v0 = vpop.trf.xlu1  ;;  %614 = vxpose.xlu0.b32.end [16/16] %v213_v63, 128  ;;  %v551_v1 = vpop.trf.xlu0  ;;  %v246_v62 = vld [vmem:[#allocation2 + $0x6f8] sm:$0xff]  ;;  %v245_v63 = vld [vmem:[#allocation2 + $0x6f0] sm:$0xff] }
 0x18c   :  { %923 = vst [vmem:[#allocation5 + $0x420] sm:$0xff] %v583_v0  ;;  %795 = vst [vmem:[#allocation5 + $0x20] sm:$0xff] %v551_v1 }
 0x18f   :  { %695 = vxpose.xlu1.b32.start [1/16] %v216_v2, 128  ;;  %v584_v4 = vpop.trf.xlu1  ;;  %663 = vxpose.xlu0.b32.start [1/16] %v215_v3, 128  ;;  %v552_v5 = vpop.trf.xlu0  ;;  %v248_v2 = vld [vmem:[#allocation2 + $0x708] sm:$0xff]  ;;  %v247_v3 = vld [vmem:[#allocation2 + $0x700] sm:$0xff] }
 0x190   :  { %931 = vst [vmem:[#allocation5 + $0x460] sm:$0xff] %v584_v4  ;;  %803 = vst [vmem:[#allocation5 + $0x60] sm:$0xff] %v552_v5 }
 0x193   :  { %696 = vxpose.xlu1.b32.cont [2/16] %v218_v6, 128  ;;  %v585_v8 = vpop.trf.xlu1  ;;  %664 = vxpose.xlu0.b32.cont [2/16] %v217_v7, 128  ;;  %v553_v9 = vpop.trf.xlu0  ;;  %v250_v6 = vld [vmem:[#allocation2 + $0x718] sm:$0xff]  ;;  %v249_v7 = vld [vmem:[#allocation2 + $0x710] sm:$0xff] }
 0x194   :  { %939 = vst [vmem:[#allocation5 + $0x4a0] sm:$0xff] %v585_v8  ;;  %811 = vst [vmem:[#allocation5 + $0xa0] sm:$0xff] %v553_v9 }
 0x197   :  { %697 = vxpose.xlu1.b32.cont [3/16] %v220_v10, 128  ;;  %v586_v12 = vpop.trf.xlu1  ;;  %665 = vxpose.xlu0.b32.cont [3/16] %v219_v11, 128  ;;  %v554_v13 = vpop.trf.xlu0  ;;  %v252_v10 = vld [vmem:[#allocation2 + $0x728] sm:$0xff]  ;;  %v251_v11 = vld [vmem:[#allocation2 + $0x720] sm:$0xff] }
 0x198   :  { %947 = vst [vmem:[#allocation5 + $0x4e0] sm:$0xff] %v586_v12  ;;  %819 = vst [vmem:[#allocation5 + $0xe0] sm:$0xff] %v554_v13 }
 0x19b   :  { %698 = vxpose.xlu1.b32.cont [4/16] %v222_v14, 128  ;;  %v587_v16 = vpop.trf.xlu1  ;;  %666 = vxpose.xlu0.b32.cont [4/16] %v221_v15, 128  ;;  %v555_v17 = vpop.trf.xlu0  ;;  %v254_v14 = vld [vmem:[#allocation2 + $0x738] sm:$0xff]  ;;  %v253_v15 = vld [vmem:[#allocation2 + $0x730] sm:$0xff] }
 0x19c   :  { %955 = vst [vmem:[#allocation5 + $0x520] sm:$0xff] %v587_v16  ;;  %827 = vst [vmem:[#allocation5 + $0x120] sm:$0xff] %v555_v17 }
 0x19f   :  { %699 = vxpose.xlu1.b32.cont [5/16] %v224_v18, 128  ;;  %v588_v20 = vpop.trf.xlu1  ;;  %667 = vxpose.xlu0.b32.cont [5/16] %v223_v19, 128  ;;  %v556_v21 = vpop.trf.xlu0  ;;  %v256_v18 = vld [vmem:[#allocation2 + $0x748] sm:$0xff]  ;;  %v255_v19 = vld [vmem:[#allocation2 + $0x740] sm:$0xff] }
 0x1a0   :  { %963 = vst [vmem:[#allocation5 + $0x560] sm:$0xff] %v588_v20  ;;  %835 = vst [vmem:[#allocation5 + $0x160] sm:$0xff] %v556_v21 }
 0x1a3   :  { %700 = vxpose.xlu1.b32.cont [6/16] %v226_v22, 128  ;;  %v589_v24 = vpop.trf.xlu1  ;;  %668 = vxpose.xlu0.b32.cont [6/16] %v225_v23, 128  ;;  %v557_v25 = vpop.trf.xlu0  ;;  %v258_v22 = vld [vmem:[#allocation2 + $0x758] sm:$0xff]  ;;  %v257_v23 = vld [vmem:[#allocation2 + $0x750] sm:$0xff] }
 0x1a4   :  { %971 = vst [vmem:[#allocation5 + $0x5a0] sm:$0xff] %v589_v24  ;;  %843 = vst [vmem:[#allocation5 + $0x1a0] sm:$0xff] %v557_v25 }
 0x1a7   :  { %701 = vxpose.xlu1.b32.cont [7/16] %v228_v26, 128  ;;  %v590_v28 = vpop.trf.xlu1  ;;  %669 = vxpose.xlu0.b32.cont [7/16] %v227_v27, 128  ;;  %v558_v29 = vpop.trf.xlu0  ;;  %v260_v26 = vld [vmem:[#allocation2 + $0x768] sm:$0xff]  ;;  %v259_v27 = vld [vmem:[#allocation2 + $0x760] sm:$0xff] }
 0x1a8   :  { %979 = vst [vmem:[#allocation5 + $0x5e0] sm:$0xff] %v590_v28  ;;  %851 = vst [vmem:[#allocation5 + $0x1e0] sm:$0xff] %v558_v29 }
 0x1ab   :  { %702 = vxpose.xlu1.b32.cont [8/16] %v230_v30, 128  ;;  %v591_v32 = vpop.trf.xlu1  ;;  %670 = vxpose.xlu0.b32.cont [8/16] %v229_v31, 128  ;;  %v559_v33 = vpop.trf.xlu0  ;;  %v262_v30 = vld [vmem:[#allocation2 + $0x778] sm:$0xff]  ;;  %v261_v31 = vld [vmem:[#allocation2 + $0x770] sm:$0xff] }
 0x1ac   :  { %987 = vst [vmem:[#allocation5 + $0x620] sm:$0xff] %v591_v32  ;;  %859 = vst [vmem:[#allocation5 + $0x220] sm:$0xff] %v559_v33 }
 0x1af   :  { %703 = vxpose.xlu1.b32.cont [9/16] %v232_v34, 128  ;;  %v592_v36 = vpop.trf.xlu1  ;;  %671 = vxpose.xlu0.b32.cont [9/16] %v231_v35, 128  ;;  %v560_v37 = vpop.trf.xlu0  ;;  %v264_v34 = vld [vmem:[#allocation2 + $0x788] sm:$0xff]  ;;  %v263_v35 = vld [vmem:[#allocation2 + $0x780] sm:$0xff] }
 0x1b0   :  { %995 = vst [vmem:[#allocation5 + $0x660] sm:$0xff] %v592_v36  ;;  %867 = vst [vmem:[#allocation5 + $0x260] sm:$0xff] %v560_v37 }
 0x1b3   :  { %704 = vxpose.xlu1.b32.cont [10/16] %v234_v38, 128  ;;  %v593_v40 = vpop.trf.xlu1  ;;  %672 = vxpose.xlu0.b32.cont [10/16] %v233_v39, 128  ;;  %v561_v41 = vpop.trf.xlu0  ;;  %v266_v38 = vld [vmem:[#allocation2 + $0x798] sm:$0xff]  ;;  %v265_v39 = vld [vmem:[#allocation2 + $0x790] sm:$0xff] }
 0x1b4   :  { %1003 = vst [vmem:[#allocation5 + $0x6a0] sm:$0xff] %v593_v40  ;;  %875 = vst [vmem:[#allocation5 + $0x2a0] sm:$0xff] %v561_v41 }
 0x1b7   :  { %705 = vxpose.xlu1.b32.cont [11/16] %v236_v42, 128  ;;  %v594_v44 = vpop.trf.xlu1  ;;  %673 = vxpose.xlu0.b32.cont [11/16] %v235_v43, 128  ;;  %v562_v45 = vpop.trf.xlu0  ;;  %v268_v42 = vld [vmem:[#allocation2 + $0x7a8] sm:$0xff]  ;;  %v267_v43 = vld [vmem:[#allocation2 + $0x7a0] sm:$0xff] }
 0x1b8   :  { %1011 = vst [vmem:[#allocation5 + $0x6e0] sm:$0xff] %v594_v44  ;;  %883 = vst [vmem:[#allocation5 + $0x2e0] sm:$0xff] %v562_v45 }
 0x1bb   :  { %706 = vxpose.xlu1.b32.cont [12/16] %v238_v46, 128  ;;  %v595_v48 = vpop.trf.xlu1  ;;  %674 = vxpose.xlu0.b32.cont [12/16] %v237_v47, 128  ;;  %v563_v49 = vpop.trf.xlu0  ;;  %v270_v46 = vld [vmem:[#allocation2 + $0x7b8] sm:$0xff]  ;;  %v269_v47 = vld [vmem:[#allocation2 + $0x7b0] sm:$0xff] }
 0x1bc   :  { %1019 = vst [vmem:[#allocation5 + $0x720] sm:$0xff] %v595_v48  ;;  %891 = vst [vmem:[#allocation5 + $0x320] sm:$0xff] %v563_v49 }
 0x1bf   :  { %707 = vxpose.xlu1.b32.cont [13/16] %v240_v50, 128  ;;  %v596_v52 = vpop.trf.xlu1  ;;  %675 = vxpose.xlu0.b32.cont [13/16] %v239_v51, 128  ;;  %v564_v53 = vpop.trf.xlu0  ;;  %v272_v50 = vld [vmem:[#allocation2 + $0x7c8] sm:$0xff]  ;;  %v271_v51 = vld [vmem:[#allocation2 + $0x7c0] sm:$0xff] }
 0x1c0   :  { %1027 = vst [vmem:[#allocation5 + $0x760] sm:$0xff] %v596_v52  ;;  %899 = vst [vmem:[#allocation5 + $0x360] sm:$0xff] %v564_v53 }
 0x1c3   :  { %708 = vxpose.xlu1.b32.cont [14/16] %v242_v54, 128  ;;  %v597_v56 = vpop.trf.xlu1  ;;  %676 = vxpose.xlu0.b32.cont [14/16] %v241_v55, 128  ;;  %v565_v57 = vpop.trf.xlu0  ;;  %v274_v54 = vld [vmem:[#allocation2 + $0x7d8] sm:$0xff]  ;;  %v273_v55 = vld [vmem:[#allocation2 + $0x7d0] sm:$0xff] }
 0x1c4   :  { %1035 = vst [vmem:[#allocation5 + $0x7a0] sm:$0xff] %v597_v56  ;;  %907 = vst [vmem:[#allocation5 + $0x3a0] sm:$0xff] %v565_v57 }
 0x1c7   :  { %709 = vxpose.xlu1.b32.cont [15/16] %v244_v58, 128  ;;  %v598_v60 = vpop.trf.xlu1  ;;  %677 = vxpose.xlu0.b32.cont [15/16] %v243_v59, 128  ;;  %v566_v61 = vpop.trf.xlu0  ;;  %v276_v58 = vld [vmem:[#allocation2 + $0x7e8] sm:$0xff]  ;;  %v275_v59 = vld [vmem:[#allocation2 + $0x7e0] sm:$0xff] }
 0x1c8   :  { %1043 = vst [vmem:[#allocation5 + $0x7e0] sm:$0xff] %v598_v60  ;;  %915 = vst [vmem:[#allocation5 + $0x3e0] sm:$0xff] %v566_v61 }
 0x1cb   :  { %710 = vxpose.xlu1.b32.end [16/16] %v246_v62, 128  ;;  %v647_v0 = vpop.trf.xlu1  ;;  %678 = vxpose.xlu0.b32.end [16/16] %v245_v63, 128  ;;  %v615_v1 = vpop.trf.xlu0  ;;  %v278_v62 = vld [vmem:[#allocation2 + $0x7f8] sm:$0xff]  ;;  %v277_v63 = vld [vmem:[#allocation2 + $0x7f0] sm:$0xff] }
 0x1cc   :  { %924 = vst [vmem:[#allocation5 + $0x428] sm:$0xff] %v647_v0  ;;  %796 = vst [vmem:[#allocation5 + $0x28] sm:$0xff] %v615_v1 }
 0x1cf   :  { %759 = vxpose.xlu1.b32.start [1/16] %v248_v2, 128  ;;  %v648_v4 = vpop.trf.xlu1  ;;  %727 = vxpose.xlu0.b32.start [1/16] %v247_v3, 128  ;;  %v616_v5 = vpop.trf.xlu0  ;;  %v1049_v2 = vld [vmem:[#allocation2 + $0x808] sm:$0xff]  ;;  %v1048_v3 = vld [vmem:[#allocation2 + $0x800] sm:$0xff] }
 0x1d0   :  { %932 = vst [vmem:[#allocation5 + $0x468] sm:$0xff] %v648_v4  ;;  %804 = vst [vmem:[#allocation5 + $0x68] sm:$0xff] %v616_v5 }
 0x1d3   :  { %760 = vxpose.xlu1.b32.cont [2/16] %v250_v6, 128  ;;  %v649_v8 = vpop.trf.xlu1  ;;  %728 = vxpose.xlu0.b32.cont [2/16] %v249_v7, 128  ;;  %v617_v9 = vpop.trf.xlu0  ;;  %v1051_v6 = vld [vmem:[#allocation2 + $0x818] sm:$0xff]  ;;  %v1050_v7 = vld [vmem:[#allocation2 + $0x810] sm:$0xff] }
 0x1d4   :  { %940 = vst [vmem:[#allocation5 + $0x4a8] sm:$0xff] %v649_v8  ;;  %812 = vst [vmem:[#allocation5 + $0xa8] sm:$0xff] %v617_v9 }
 0x1d7   :  { %761 = vxpose.xlu1.b32.cont [3/16] %v252_v10, 128  ;;  %v650_v12 = vpop.trf.xlu1  ;;  %729 = vxpose.xlu0.b32.cont [3/16] %v251_v11, 128  ;;  %v618_v13 = vpop.trf.xlu0  ;;  %v1053_v10 = vld [vmem:[#allocation2 + $0x828] sm:$0xff]  ;;  %v1052_v11 = vld [vmem:[#allocation2 + $0x820] sm:$0xff] }
 0x1d8   :  { %948 = vst [vmem:[#allocation5 + $0x4e8] sm:$0xff] %v650_v12  ;;  %820 = vst [vmem:[#allocation5 + $0xe8] sm:$0xff] %v618_v13 }
 0x1db   :  { %762 = vxpose.xlu1.b32.cont [4/16] %v254_v14, 128  ;;  %v651_v16 = vpop.trf.xlu1  ;;  %730 = vxpose.xlu0.b32.cont [4/16] %v253_v15, 128  ;;  %v619_v17 = vpop.trf.xlu0  ;;  %v1055_v14 = vld [vmem:[#allocation2 + $0x838] sm:$0xff]  ;;  %v1054_v15 = vld [vmem:[#allocation2 + $0x830] sm:$0xff] }
 0x1dc   :  { %956 = vst [vmem:[#allocation5 + $0x528] sm:$0xff] %v651_v16  ;;  %828 = vst [vmem:[#allocation5 + $0x128] sm:$0xff] %v619_v17 }
 0x1df   :  { %763 = vxpose.xlu1.b32.cont [5/16] %v256_v18, 128  ;;  %v652_v20 = vpop.trf.xlu1  ;;  %731 = vxpose.xlu0.b32.cont [5/16] %v255_v19, 128  ;;  %v620_v21 = vpop.trf.xlu0  ;;  %v1057_v18 = vld [vmem:[#allocation2 + $0x848] sm:$0xff]  ;;  %v1056_v19 = vld [vmem:[#allocation2 + $0x840] sm:$0xff] }
 0x1e0   :  { %964 = vst [vmem:[#allocation5 + $0x568] sm:$0xff] %v652_v20  ;;  %836 = vst [vmem:[#allocation5 + $0x168] sm:$0xff] %v620_v21 }
 0x1e3   :  { %764 = vxpose.xlu1.b32.cont [6/16] %v258_v22, 128  ;;  %v653_v24 = vpop.trf.xlu1  ;;  %732 = vxpose.xlu0.b32.cont [6/16] %v257_v23, 128  ;;  %v621_v25 = vpop.trf.xlu0  ;;  %v1059_v22 = vld [vmem:[#allocation2 + $0x858] sm:$0xff]  ;;  %v1058_v23 = vld [vmem:[#allocation2 + $0x850] sm:$0xff] }
 0x1e4   :  { %972 = vst [vmem:[#allocation5 + $0x5a8] sm:$0xff] %v653_v24  ;;  %844 = vst [vmem:[#allocation5 + $0x1a8] sm:$0xff] %v621_v25 }
 0x1e7   :  { %765 = vxpose.xlu1.b32.cont [7/16] %v260_v26, 128  ;;  %v654_v28 = vpop.trf.xlu1  ;;  %733 = vxpose.xlu0.b32.cont [7/16] %v259_v27, 128  ;;  %v622_v29 = vpop.trf.xlu0  ;;  %v1061_v26 = vld [vmem:[#allocation2 + $0x868] sm:$0xff]  ;;  %v1060_v27 = vld [vmem:[#allocation2 + $0x860] sm:$0xff] }
 0x1e8   :  { %980 = vst [vmem:[#allocation5 + $0x5e8] sm:$0xff] %v654_v28  ;;  %852 = vst [vmem:[#allocation5 + $0x1e8] sm:$0xff] %v622_v29 }
 0x1eb   :  { %766 = vxpose.xlu1.b32.cont [8/16] %v262_v30, 128  ;;  %v655_v32 = vpop.trf.xlu1  ;;  %734 = vxpose.xlu0.b32.cont [8/16] %v261_v31, 128  ;;  %v623_v33 = vpop.trf.xlu0  ;;  %v1063_v30 = vld [vmem:[#allocation2 + $0x878] sm:$0xff]  ;;  %v1062_v31 = vld [vmem:[#allocation2 + $0x870] sm:$0xff] }
 0x1ec   :  { %988 = vst [vmem:[#allocation5 + $0x628] sm:$0xff] %v655_v32  ;;  %860 = vst [vmem:[#allocation5 + $0x228] sm:$0xff] %v623_v33 }
 0x1ef   :  { %767 = vxpose.xlu1.b32.cont [9/16] %v264_v34, 128  ;;  %v656_v36 = vpop.trf.xlu1  ;;  %735 = vxpose.xlu0.b32.cont [9/16] %v263_v35, 128  ;;  %v624_v37 = vpop.trf.xlu0  ;;  %v1065_v34 = vld [vmem:[#allocation2 + $0x888] sm:$0xff]  ;;  %v1064_v35 = vld [vmem:[#allocation2 + $0x880] sm:$0xff] }
 0x1f0   :  { %996 = vst [vmem:[#allocation5 + $0x668] sm:$0xff] %v656_v36  ;;  %868 = vst [vmem:[#allocation5 + $0x268] sm:$0xff] %v624_v37 }
 0x1f3   :  { %768 = vxpose.xlu1.b32.cont [10/16] %v266_v38, 128  ;;  %v657_v40 = vpop.trf.xlu1  ;;  %736 = vxpose.xlu0.b32.cont [10/16] %v265_v39, 128  ;;  %v625_v41 = vpop.trf.xlu0  ;;  %v1067_v38 = vld [vmem:[#allocation2 + $0x898] sm:$0xff]  ;;  %v1066_v39 = vld [vmem:[#allocation2 + $0x890] sm:$0xff] }
 0x1f4   :  { %1004 = vst [vmem:[#allocation5 + $0x6a8] sm:$0xff] %v657_v40  ;;  %876 = vst [vmem:[#allocation5 + $0x2a8] sm:$0xff] %v625_v41 }
 0x1f7   :  { %769 = vxpose.xlu1.b32.cont [11/16] %v268_v42, 128  ;;  %v658_v44 = vpop.trf.xlu1  ;;  %737 = vxpose.xlu0.b32.cont [11/16] %v267_v43, 128  ;;  %v626_v45 = vpop.trf.xlu0  ;;  %v1069_v42 = vld [vmem:[#allocation2 + $0x8a8] sm:$0xff]  ;;  %v1068_v43 = vld [vmem:[#allocation2 + $0x8a0] sm:$0xff] }
 0x1f8   :  { %1012 = vst [vmem:[#allocation5 + $0x6e8] sm:$0xff] %v658_v44  ;;  %884 = vst [vmem:[#allocation5 + $0x2e8] sm:$0xff] %v626_v45 }
 0x1fb   :  { %770 = vxpose.xlu1.b32.cont [12/16] %v270_v46, 128  ;;  %v659_v48 = vpop.trf.xlu1  ;;  %738 = vxpose.xlu0.b32.cont [12/16] %v269_v47, 128  ;;  %v627_v49 = vpop.trf.xlu0  ;;  %v1071_v46 = vld [vmem:[#allocation2 + $0x8b8] sm:$0xff]  ;;  %v1070_v47 = vld [vmem:[#allocation2 + $0x8b0] sm:$0xff] }
 0x1fc   :  { %1020 = vst [vmem:[#allocation5 + $0x728] sm:$0xff] %v659_v48  ;;  %892 = vst [vmem:[#allocation5 + $0x328] sm:$0xff] %v627_v49 }
 0x1ff   :  { %771 = vxpose.xlu1.b32.cont [13/16] %v272_v50, 128  ;;  %v660_v52 = vpop.trf.xlu1  ;;  %739 = vxpose.xlu0.b32.cont [13/16] %v271_v51, 128  ;;  %v628_v53 = vpop.trf.xlu0  ;;  %v1073_v50 = vld [vmem:[#allocation2 + $0x8c8] sm:$0xff]  ;;  %v1072_v51 = vld [vmem:[#allocation2 + $0x8c0] sm:$0xff] }
 0x200   :  { %1028 = vst [vmem:[#allocation5 + $0x768] sm:$0xff] %v660_v52  ;;  %900 = vst [vmem:[#allocation5 + $0x368] sm:$0xff] %v628_v53 }
 0x203   :  { %772 = vxpose.xlu1.b32.cont [14/16] %v274_v54, 128  ;;  %v661_v56 = vpop.trf.xlu1  ;;  %740 = vxpose.xlu0.b32.cont [14/16] %v273_v55, 128  ;;  %v629_v57 = vpop.trf.xlu0  ;;  %v1075_v54 = vld [vmem:[#allocation2 + $0x8d8] sm:$0xff]  ;;  %v1074_v55 = vld [vmem:[#allocation2 + $0x8d0] sm:$0xff] }
 0x204   :  { %1036 = vst [vmem:[#allocation5 + $0x7a8] sm:$0xff] %v661_v56  ;;  %908 = vst [vmem:[#allocation5 + $0x3a8] sm:$0xff] %v629_v57 }
 0x207   :  { %773 = vxpose.xlu1.b32.cont [15/16] %v276_v58, 128  ;;  %v662_v60 = vpop.trf.xlu1  ;;  %741 = vxpose.xlu0.b32.cont [15/16] %v275_v59, 128  ;;  %v630_v61 = vpop.trf.xlu0  ;;  %v1077_v58 = vld [vmem:[#allocation2 + $0x8e8] sm:$0xff]  ;;  %v1076_v59 = vld [vmem:[#allocation2 + $0x8e0] sm:$0xff] }
 0x208   :  { %1044 = vst [vmem:[#allocation5 + $0x7e8] sm:$0xff] %v662_v60  ;;  %916 = vst [vmem:[#allocation5 + $0x3e8] sm:$0xff] %v630_v61 }
 0x20b   :  { %774 = vxpose.xlu1.b32.end [16/16] %v278_v62, 128  ;;  %v711_v0 = vpop.trf.xlu1  ;;  %742 = vxpose.xlu0.b32.end [16/16] %v277_v63, 128  ;;  %v679_v1 = vpop.trf.xlu0  ;;  %v1079_v62 = vld [vmem:[#allocation2 + $0x8f8] sm:$0xff]  ;;  %v1078_v63 = vld [vmem:[#allocation2 + $0x8f0] sm:$0xff] }
 0x20c   :  { %925 = vst [vmem:[#allocation5 + $0x430] sm:$0xff] %v711_v0  ;;  %797 = vst [vmem:[#allocation5 + $0x30] sm:$0xff] %v679_v1 }
 0x20f   :  { %1336 = vxpose.xlu1.b32.start [1/16] %v1049_v2, 128  ;;  %v712_v4 = vpop.trf.xlu1  ;;  %1304 = vxpose.xlu0.b32.start [1/16] %v1048_v3, 128  ;;  %v680_v5 = vpop.trf.xlu0  ;;  %v1081_v2 = vld [vmem:[#allocation2 + $0x908] sm:$0xff]  ;;  %v1080_v3 = vld [vmem:[#allocation2 + $0x900] sm:$0xff] }
 0x210   :  { %933 = vst [vmem:[#allocation5 + $0x470] sm:$0xff] %v712_v4  ;;  %805 = vst [vmem:[#allocation5 + $0x70] sm:$0xff] %v680_v5 }
 0x213   :  { %1337 = vxpose.xlu1.b32.cont [2/16] %v1051_v6, 128  ;;  %v713_v8 = vpop.trf.xlu1  ;;  %1305 = vxpose.xlu0.b32.cont [2/16] %v1050_v7, 128  ;;  %v681_v9 = vpop.trf.xlu0  ;;  %v1083_v6 = vld [vmem:[#allocation2 + $0x918] sm:$0xff]  ;;  %v1082_v7 = vld [vmem:[#allocation2 + $0x910] sm:$0xff] }
 0x214   :  { %941 = vst [vmem:[#allocation5 + $0x4b0] sm:$0xff] %v713_v8  ;;  %813 = vst [vmem:[#allocation5 + $0xb0] sm:$0xff] %v681_v9 }
 0x217   :  { %1338 = vxpose.xlu1.b32.cont [3/16] %v1053_v10, 128  ;;  %v714_v12 = vpop.trf.xlu1  ;;  %1306 = vxpose.xlu0.b32.cont [3/16] %v1052_v11, 128  ;;  %v682_v13 = vpop.trf.xlu0  ;;  %v1085_v10 = vld [vmem:[#allocation2 + $0x928] sm:$0xff]  ;;  %v1084_v11 = vld [vmem:[#allocation2 + $0x920] sm:$0xff] }
 0x218   :  { %949 = vst [vmem:[#allocation5 + $0x4f0] sm:$0xff] %v714_v12  ;;  %821 = vst [vmem:[#allocation5 + $0xf0] sm:$0xff] %v682_v13 }
 0x21b   :  { %1339 = vxpose.xlu1.b32.cont [4/16] %v1055_v14, 128  ;;  %v715_v16 = vpop.trf.xlu1  ;;  %1307 = vxpose.xlu0.b32.cont [4/16] %v1054_v15, 128  ;;  %v683_v17 = vpop.trf.xlu0  ;;  %v1087_v14 = vld [vmem:[#allocation2 + $0x938] sm:$0xff]  ;;  %v1086_v15 = vld [vmem:[#allocation2 + $0x930] sm:$0xff] }
 0x21c   :  { %957 = vst [vmem:[#allocation5 + $0x530] sm:$0xff] %v715_v16  ;;  %829 = vst [vmem:[#allocation5 + $0x130] sm:$0xff] %v683_v17 }
 0x21f   :  { %1340 = vxpose.xlu1.b32.cont [5/16] %v1057_v18, 128  ;;  %v716_v20 = vpop.trf.xlu1  ;;  %1308 = vxpose.xlu0.b32.cont [5/16] %v1056_v19, 128  ;;  %v684_v21 = vpop.trf.xlu0  ;;  %v1089_v18 = vld [vmem:[#allocation2 + $0x948] sm:$0xff]  ;;  %v1088_v19 = vld [vmem:[#allocation2 + $0x940] sm:$0xff] }
 0x220   :  { %965 = vst [vmem:[#allocation5 + $0x570] sm:$0xff] %v716_v20  ;;  %837 = vst [vmem:[#allocation5 + $0x170] sm:$0xff] %v684_v21 }
 0x223   :  { %1341 = vxpose.xlu1.b32.cont [6/16] %v1059_v22, 128  ;;  %v717_v24 = vpop.trf.xlu1  ;;  %1309 = vxpose.xlu0.b32.cont [6/16] %v1058_v23, 128  ;;  %v685_v25 = vpop.trf.xlu0  ;;  %v1091_v22 = vld [vmem:[#allocation2 + $0x958] sm:$0xff]  ;;  %v1090_v23 = vld [vmem:[#allocation2 + $0x950] sm:$0xff] }
 0x224   :  { %973 = vst [vmem:[#allocation5 + $0x5b0] sm:$0xff] %v717_v24  ;;  %845 = vst [vmem:[#allocation5 + $0x1b0] sm:$0xff] %v685_v25 }
 0x227   :  { %1342 = vxpose.xlu1.b32.cont [7/16] %v1061_v26, 128  ;;  %v718_v28 = vpop.trf.xlu1  ;;  %1310 = vxpose.xlu0.b32.cont [7/16] %v1060_v27, 128  ;;  %v686_v29 = vpop.trf.xlu0  ;;  %v1093_v26 = vld [vmem:[#allocation2 + $0x968] sm:$0xff]  ;;  %v1092_v27 = vld [vmem:[#allocation2 + $0x960] sm:$0xff] }
 0x228   :  { %981 = vst [vmem:[#allocation5 + $0x5f0] sm:$0xff] %v718_v28  ;;  %853 = vst [vmem:[#allocation5 + $0x1f0] sm:$0xff] %v686_v29 }
 0x22b   :  { %1343 = vxpose.xlu1.b32.cont [8/16] %v1063_v30, 128  ;;  %v719_v32 = vpop.trf.xlu1  ;;  %1311 = vxpose.xlu0.b32.cont [8/16] %v1062_v31, 128  ;;  %v687_v33 = vpop.trf.xlu0  ;;  %v1095_v30 = vld [vmem:[#allocation2 + $0x978] sm:$0xff]  ;;  %v1094_v31 = vld [vmem:[#allocation2 + $0x970] sm:$0xff] }
 0x22c   :  { %989 = vst [vmem:[#allocation5 + $0x630] sm:$0xff] %v719_v32  ;;  %861 = vst [vmem:[#allocation5 + $0x230] sm:$0xff] %v687_v33 }
 0x22f   :  { %1344 = vxpose.xlu1.b32.cont [9/16] %v1065_v34, 128  ;;  %v720_v36 = vpop.trf.xlu1  ;;  %1312 = vxpose.xlu0.b32.cont [9/16] %v1064_v35, 128  ;;  %v688_v37 = vpop.trf.xlu0  ;;  %v1097_v34 = vld [vmem:[#allocation2 + $0x988] sm:$0xff]  ;;  %v1096_v35 = vld [vmem:[#allocation2 + $0x980] sm:$0xff] }
 0x230   :  { %997 = vst [vmem:[#allocation5 + $0x670] sm:$0xff] %v720_v36  ;;  %869 = vst [vmem:[#allocation5 + $0x270] sm:$0xff] %v688_v37 }
 0x233   :  { %1345 = vxpose.xlu1.b32.cont [10/16] %v1067_v38, 128  ;;  %v721_v40 = vpop.trf.xlu1  ;;  %1313 = vxpose.xlu0.b32.cont [10/16] %v1066_v39, 128  ;;  %v689_v41 = vpop.trf.xlu0  ;;  %v1099_v38 = vld [vmem:[#allocation2 + $0x998] sm:$0xff]  ;;  %v1098_v39 = vld [vmem:[#allocation2 + $0x990] sm:$0xff] }
 0x234   :  { %1005 = vst [vmem:[#allocation5 + $0x6b0] sm:$0xff] %v721_v40  ;;  %877 = vst [vmem:[#allocation5 + $0x2b0] sm:$0xff] %v689_v41 }
 0x237   :  { %1346 = vxpose.xlu1.b32.cont [11/16] %v1069_v42, 128  ;;  %v722_v44 = vpop.trf.xlu1  ;;  %1314 = vxpose.xlu0.b32.cont [11/16] %v1068_v43, 128  ;;  %v690_v45 = vpop.trf.xlu0  ;;  %v1101_v42 = vld [vmem:[#allocation2 + $0x9a8] sm:$0xff]  ;;  %v1100_v43 = vld [vmem:[#allocation2 + $0x9a0] sm:$0xff] }
 0x238   :  { %1013 = vst [vmem:[#allocation5 + $0x6f0] sm:$0xff] %v722_v44  ;;  %885 = vst [vmem:[#allocation5 + $0x2f0] sm:$0xff] %v690_v45 }
 0x23b   :  { %1347 = vxpose.xlu1.b32.cont [12/16] %v1071_v46, 128  ;;  %v723_v48 = vpop.trf.xlu1  ;;  %1315 = vxpose.xlu0.b32.cont [12/16] %v1070_v47, 128  ;;  %v691_v49 = vpop.trf.xlu0  ;;  %v1103_v46 = vld [vmem:[#allocation2 + $0x9b8] sm:$0xff]  ;;  %v1102_v47 = vld [vmem:[#allocation2 + $0x9b0] sm:$0xff] }
 0x23c   :  { %1021 = vst [vmem:[#allocation5 + $0x730] sm:$0xff] %v723_v48  ;;  %893 = vst [vmem:[#allocation5 + $0x330] sm:$0xff] %v691_v49 }
 0x23f   :  { %1348 = vxpose.xlu1.b32.cont [13/16] %v1073_v50, 128  ;;  %v724_v52 = vpop.trf.xlu1  ;;  %1316 = vxpose.xlu0.b32.cont [13/16] %v1072_v51, 128  ;;  %v692_v53 = vpop.trf.xlu0  ;;  %v1105_v50 = vld [vmem:[#allocation2 + $0x9c8] sm:$0xff]  ;;  %v1104_v51 = vld [vmem:[#allocation2 + $0x9c0] sm:$0xff] }
 0x240   :  { %1029 = vst [vmem:[#allocation5 + $0x770] sm:$0xff] %v724_v52  ;;  %901 = vst [vmem:[#allocation5 + $0x370] sm:$0xff] %v692_v53 }
 0x243   :  { %1349 = vxpose.xlu1.b32.cont [14/16] %v1075_v54, 128  ;;  %v725_v56 = vpop.trf.xlu1  ;;  %1317 = vxpose.xlu0.b32.cont [14/16] %v1074_v55, 128  ;;  %v693_v57 = vpop.trf.xlu0  ;;  %v1107_v54 = vld [vmem:[#allocation2 + $0x9d8] sm:$0xff]  ;;  %v1106_v55 = vld [vmem:[#allocation2 + $0x9d0] sm:$0xff] }
 0x244   :  { %1037 = vst [vmem:[#allocation5 + $0x7b0] sm:$0xff] %v725_v56  ;;  %909 = vst [vmem:[#allocation5 + $0x3b0] sm:$0xff] %v693_v57 }
 0x247   :  { %1350 = vxpose.xlu1.b32.cont [15/16] %v1077_v58, 128  ;;  %v726_v60 = vpop.trf.xlu1  ;;  %1318 = vxpose.xlu0.b32.cont [15/16] %v1076_v59, 128  ;;  %v694_v61 = vpop.trf.xlu0  ;;  %v1109_v58 = vld [vmem:[#allocation2 + $0x9e8] sm:$0xff]  ;;  %v1108_v59 = vld [vmem:[#allocation2 + $0x9e0] sm:$0xff] }
 0x248   :  { %1045 = vst [vmem:[#allocation5 + $0x7f0] sm:$0xff] %v726_v60  ;;  %917 = vst [vmem:[#allocation5 + $0x3f0] sm:$0xff] %v694_v61 }
 0x24b   :  { %1351 = vxpose.xlu1.b32.end [16/16] %v1079_v62, 128  ;;  %v775_v0 = vpop.trf.xlu1  ;;  %1319 = vxpose.xlu0.b32.end [16/16] %v1078_v63, 128  ;;  %v743_v1 = vpop.trf.xlu0  ;;  %v1111_v62 = vld [vmem:[#allocation2 + $0x9f8] sm:$0xff]  ;;  %v1110_v63 = vld [vmem:[#allocation2 + $0x9f0] sm:$0xff] }
 0x24c   :  { %926 = vst [vmem:[#allocation5 + $0x438] sm:$0xff] %v775_v0  ;;  %798 = vst [vmem:[#allocation5 + $0x38] sm:$0xff] %v743_v1 }
 0x24f   :  { %1400 = vxpose.xlu1.b32.start [1/16] %v1081_v2, 128  ;;  %v776_v4 = vpop.trf.xlu1  ;;  %1368 = vxpose.xlu0.b32.start [1/16] %v1080_v3, 128  ;;  %v744_v5 = vpop.trf.xlu0  ;;  %v1113_v2 = vld [vmem:[#allocation2 + $0xa08] sm:$0xff]  ;;  %v1112_v3 = vld [vmem:[#allocation2 + $0xa00] sm:$0xff] }
 0x250   :  { %934 = vst [vmem:[#allocation5 + $0x478] sm:$0xff] %v776_v4  ;;  %806 = vst [vmem:[#allocation5 + $0x78] sm:$0xff] %v744_v5 }
 0x253   :  { %1401 = vxpose.xlu1.b32.cont [2/16] %v1083_v6, 128  ;;  %v777_v8 = vpop.trf.xlu1  ;;  %1369 = vxpose.xlu0.b32.cont [2/16] %v1082_v7, 128  ;;  %v745_v9 = vpop.trf.xlu0  ;;  %v1115_v6 = vld [vmem:[#allocation2 + $0xa18] sm:$0xff]  ;;  %v1114_v7 = vld [vmem:[#allocation2 + $0xa10] sm:$0xff] }
 0x254   :  { %942 = vst [vmem:[#allocation5 + $0x4b8] sm:$0xff] %v777_v8  ;;  %814 = vst [vmem:[#allocation5 + $0xb8] sm:$0xff] %v745_v9 }
 0x257   :  { %1402 = vxpose.xlu1.b32.cont [3/16] %v1085_v10, 128  ;;  %v778_v12 = vpop.trf.xlu1  ;;  %1370 = vxpose.xlu0.b32.cont [3/16] %v1084_v11, 128  ;;  %v746_v13 = vpop.trf.xlu0  ;;  %v1117_v10 = vld [vmem:[#allocation2 + $0xa28] sm:$0xff]  ;;  %v1116_v11 = vld [vmem:[#allocation2 + $0xa20] sm:$0xff] }
 0x258   :  { %950 = vst [vmem:[#allocation5 + $0x4f8] sm:$0xff] %v778_v12  ;;  %822 = vst [vmem:[#allocation5 + $0xf8] sm:$0xff] %v746_v13 }
 0x25b   :  { %1403 = vxpose.xlu1.b32.cont [4/16] %v1087_v14, 128  ;;  %v779_v16 = vpop.trf.xlu1  ;;  %1371 = vxpose.xlu0.b32.cont [4/16] %v1086_v15, 128  ;;  %v747_v17 = vpop.trf.xlu0  ;;  %v1119_v14 = vld [vmem:[#allocation2 + $0xa38] sm:$0xff]  ;;  %v1118_v15 = vld [vmem:[#allocation2 + $0xa30] sm:$0xff] }
 0x25c   :  { %958 = vst [vmem:[#allocation5 + $0x538] sm:$0xff] %v779_v16  ;;  %830 = vst [vmem:[#allocation5 + $0x138] sm:$0xff] %v747_v17 }
 0x25f   :  { %1404 = vxpose.xlu1.b32.cont [5/16] %v1089_v18, 128  ;;  %v780_v20 = vpop.trf.xlu1  ;;  %1372 = vxpose.xlu0.b32.cont [5/16] %v1088_v19, 128  ;;  %v748_v21 = vpop.trf.xlu0  ;;  %v1121_v18 = vld [vmem:[#allocation2 + $0xa48] sm:$0xff]  ;;  %v1120_v19 = vld [vmem:[#allocation2 + $0xa40] sm:$0xff] }
 0x260   :  { %966 = vst [vmem:[#allocation5 + $0x578] sm:$0xff] %v780_v20  ;;  %838 = vst [vmem:[#allocation5 + $0x178] sm:$0xff] %v748_v21 }
 0x263   :  { %1405 = vxpose.xlu1.b32.cont [6/16] %v1091_v22, 128  ;;  %v781_v24 = vpop.trf.xlu1  ;;  %1373 = vxpose.xlu0.b32.cont [6/16] %v1090_v23, 128  ;;  %v749_v25 = vpop.trf.xlu0  ;;  %v1123_v22 = vld [vmem:[#allocation2 + $0xa58] sm:$0xff]  ;;  %v1122_v23 = vld [vmem:[#allocation2 + $0xa50] sm:$0xff] }
 0x264   :  { %974 = vst [vmem:[#allocation5 + $0x5b8] sm:$0xff] %v781_v24  ;;  %846 = vst [vmem:[#allocation5 + $0x1b8] sm:$0xff] %v749_v25 }
 0x267   :  { %1406 = vxpose.xlu1.b32.cont [7/16] %v1093_v26, 128  ;;  %v782_v28 = vpop.trf.xlu1  ;;  %1374 = vxpose.xlu0.b32.cont [7/16] %v1092_v27, 128  ;;  %v750_v29 = vpop.trf.xlu0  ;;  %v1125_v26 = vld [vmem:[#allocation2 + $0xa68] sm:$0xff]  ;;  %v1124_v27 = vld [vmem:[#allocation2 + $0xa60] sm:$0xff] }
 0x268   :  { %982 = vst [vmem:[#allocation5 + $0x5f8] sm:$0xff] %v782_v28  ;;  %854 = vst [vmem:[#allocation5 + $0x1f8] sm:$0xff] %v750_v29 }
 0x26b   :  { %1407 = vxpose.xlu1.b32.cont [8/16] %v1095_v30, 128  ;;  %v783_v32 = vpop.trf.xlu1  ;;  %1375 = vxpose.xlu0.b32.cont [8/16] %v1094_v31, 128  ;;  %v751_v33 = vpop.trf.xlu0  ;;  %v1127_v30 = vld [vmem:[#allocation2 + $0xa78] sm:$0xff]  ;;  %v1126_v31 = vld [vmem:[#allocation2 + $0xa70] sm:$0xff] }
 0x26c   :  { %990 = vst [vmem:[#allocation5 + $0x638] sm:$0xff] %v783_v32  ;;  %862 = vst [vmem:[#allocation5 + $0x238] sm:$0xff] %v751_v33 }
 0x26f   :  { %1408 = vxpose.xlu1.b32.cont [9/16] %v1097_v34, 128  ;;  %v784_v36 = vpop.trf.xlu1  ;;  %1376 = vxpose.xlu0.b32.cont [9/16] %v1096_v35, 128  ;;  %v752_v37 = vpop.trf.xlu0  ;;  %v1129_v34 = vld [vmem:[#allocation2 + $0xa88] sm:$0xff]  ;;  %v1128_v35 = vld [vmem:[#allocation2 + $0xa80] sm:$0xff] }
 0x270   :  { %998 = vst [vmem:[#allocation5 + $0x678] sm:$0xff] %v784_v36  ;;  %870 = vst [vmem:[#allocation5 + $0x278] sm:$0xff] %v752_v37 }
 0x273   :  { %1409 = vxpose.xlu1.b32.cont [10/16] %v1099_v38, 128  ;;  %v785_v40 = vpop.trf.xlu1  ;;  %1377 = vxpose.xlu0.b32.cont [10/16] %v1098_v39, 128  ;;  %v753_v41 = vpop.trf.xlu0  ;;  %v1131_v38 = vld [vmem:[#allocation2 + $0xa98] sm:$0xff]  ;;  %v1130_v39 = vld [vmem:[#allocation2 + $0xa90] sm:$0xff] }
 0x274   :  { %1006 = vst [vmem:[#allocation5 + $0x6b8] sm:$0xff] %v785_v40  ;;  %878 = vst [vmem:[#allocation5 + $0x2b8] sm:$0xff] %v753_v41 }
 0x277   :  { %1410 = vxpose.xlu1.b32.cont [11/16] %v1101_v42, 128  ;;  %v786_v44 = vpop.trf.xlu1  ;;  %1378 = vxpose.xlu0.b32.cont [11/16] %v1100_v43, 128  ;;  %v754_v45 = vpop.trf.xlu0  ;;  %v1133_v42 = vld [vmem:[#allocation2 + $0xaa8] sm:$0xff]  ;;  %v1132_v43 = vld [vmem:[#allocation2 + $0xaa0] sm:$0xff] }
 0x278   :  { %1014 = vst [vmem:[#allocation5 + $0x6f8] sm:$0xff] %v786_v44  ;;  %886 = vst [vmem:[#allocation5 + $0x2f8] sm:$0xff] %v754_v45 }
 0x27b   :  { %1411 = vxpose.xlu1.b32.cont [12/16] %v1103_v46, 128  ;;  %v787_v48 = vpop.trf.xlu1  ;;  %1379 = vxpose.xlu0.b32.cont [12/16] %v1102_v47, 128  ;;  %v755_v49 = vpop.trf.xlu0  ;;  %v1135_v46 = vld [vmem:[#allocation2 + $0xab8] sm:$0xff]  ;;  %v1134_v47 = vld [vmem:[#allocation2 + $0xab0] sm:$0xff] }
 0x27c   :  { %1022 = vst [vmem:[#allocation5 + $0x738] sm:$0xff] %v787_v48  ;;  %894 = vst [vmem:[#allocation5 + $0x338] sm:$0xff] %v755_v49 }
 0x27f   :  { %1412 = vxpose.xlu1.b32.cont [13/16] %v1105_v50, 128  ;;  %v788_v52 = vpop.trf.xlu1  ;;  %1380 = vxpose.xlu0.b32.cont [13/16] %v1104_v51, 128  ;;  %v756_v53 = vpop.trf.xlu0  ;;  %v1137_v50 = vld [vmem:[#allocation2 + $0xac8] sm:$0xff]  ;;  %v1136_v51 = vld [vmem:[#allocation2 + $0xac0] sm:$0xff] }
 0x280   :  { %1030 = vst [vmem:[#allocation5 + $0x778] sm:$0xff] %v788_v52  ;;  %902 = vst [vmem:[#allocation5 + $0x378] sm:$0xff] %v756_v53 }
 0x283   :  { %1413 = vxpose.xlu1.b32.cont [14/16] %v1107_v54, 128  ;;  %v789_v56 = vpop.trf.xlu1  ;;  %1381 = vxpose.xlu0.b32.cont [14/16] %v1106_v55, 128  ;;  %v757_v57 = vpop.trf.xlu0  ;;  %v1139_v54 = vld [vmem:[#allocation2 + $0xad8] sm:$0xff]  ;;  %v1138_v55 = vld [vmem:[#allocation2 + $0xad0] sm:$0xff] }
 0x284   :  { %1038 = vst [vmem:[#allocation5 + $0x7b8] sm:$0xff] %v789_v56  ;;  %910 = vst [vmem:[#allocation5 + $0x3b8] sm:$0xff] %v757_v57 }
 0x287   :  { %1414 = vxpose.xlu1.b32.cont [15/16] %v1109_v58, 128  ;;  %v790_v60 = vpop.trf.xlu1  ;;  %1382 = vxpose.xlu0.b32.cont [15/16] %v1108_v59, 128  ;;  %v758_v61 = vpop.trf.xlu0  ;;  %v1141_v58 = vld [vmem:[#allocation2 + $0xae8] sm:$0xff]  ;;  %v1140_v59 = vld [vmem:[#allocation2 + $0xae0] sm:$0xff] }
 0x288   :  { %1046 = vst [vmem:[#allocation5 + $0x7f8] sm:$0xff] %v790_v60  ;;  %918 = vst [vmem:[#allocation5 + $0x3f8] sm:$0xff] %v758_v61 }
 0x28b   :  { %1415 = vxpose.xlu1.b32.end [16/16] %v1111_v62, 128  ;;  %v1352_v0 = vpop.trf.xlu1  ;;  %1383 = vxpose.xlu0.b32.end [16/16] %v1110_v63, 128  ;;  %v1320_v1 = vpop.trf.xlu0  ;;  %v1143_v62 = vld [vmem:[#allocation2 + $0xaf8] sm:$0xff]  ;;  %v1142_v63 = vld [vmem:[#allocation2 + $0xaf0] sm:$0xff] }
 0x28c   :  { %1945 = vst [vmem:[#allocation5 + $0xc00] sm:$0xff] %v1352_v0  ;;  %1817 = vst [vmem:[#allocation5 + $0x800] sm:$0xff] %v1320_v1 }
 0x28f   :  { %1464 = vxpose.xlu1.b32.start [1/16] %v1113_v2, 128  ;;  %v1353_v4 = vpop.trf.xlu1  ;;  %1432 = vxpose.xlu0.b32.start [1/16] %v1112_v3, 128  ;;  %v1321_v5 = vpop.trf.xlu0  ;;  %v1145_v2 = vld [vmem:[#allocation2 + $0xb08] sm:$0xff]  ;;  %v1144_v3 = vld [vmem:[#allocation2 + $0xb00] sm:$0xff] }
 0x290   :  { %1953 = vst [vmem:[#allocation5 + $0xc40] sm:$0xff] %v1353_v4  ;;  %1825 = vst [vmem:[#allocation5 + $0x840] sm:$0xff] %v1321_v5 }
 0x293   :  { %1465 = vxpose.xlu1.b32.cont [2/16] %v1115_v6, 128  ;;  %v1354_v8 = vpop.trf.xlu1  ;;  %1433 = vxpose.xlu0.b32.cont [2/16] %v1114_v7, 128  ;;  %v1322_v9 = vpop.trf.xlu0  ;;  %v1147_v6 = vld [vmem:[#allocation2 + $0xb18] sm:$0xff]  ;;  %v1146_v7 = vld [vmem:[#allocation2 + $0xb10] sm:$0xff] }
 0x294   :  { %1961 = vst [vmem:[#allocation5 + $0xc80] sm:$0xff] %v1354_v8  ;;  %1833 = vst [vmem:[#allocation5 + $0x880] sm:$0xff] %v1322_v9 }
 0x297   :  { %1466 = vxpose.xlu1.b32.cont [3/16] %v1117_v10, 128  ;;  %v1355_v12 = vpop.trf.xlu1  ;;  %1434 = vxpose.xlu0.b32.cont [3/16] %v1116_v11, 128  ;;  %v1323_v13 = vpop.trf.xlu0  ;;  %v1149_v10 = vld [vmem:[#allocation2 + $0xb28] sm:$0xff]  ;;  %v1148_v11 = vld [vmem:[#allocation2 + $0xb20] sm:$0xff] }
 0x298   :  { %1969 = vst [vmem:[#allocation5 + $0xcc0] sm:$0xff] %v1355_v12  ;;  %1841 = vst [vmem:[#allocation5 + $0x8c0] sm:$0xff] %v1323_v13 }
 0x29b   :  { %1467 = vxpose.xlu1.b32.cont [4/16] %v1119_v14, 128  ;;  %v1356_v16 = vpop.trf.xlu1  ;;  %1435 = vxpose.xlu0.b32.cont [4/16] %v1118_v15, 128  ;;  %v1324_v17 = vpop.trf.xlu0  ;;  %v1151_v14 = vld [vmem:[#allocation2 + $0xb38] sm:$0xff]  ;;  %v1150_v15 = vld [vmem:[#allocation2 + $0xb30] sm:$0xff] }
 0x29c   :  { %1977 = vst [vmem:[#allocation5 + $0xd00] sm:$0xff] %v1356_v16  ;;  %1849 = vst [vmem:[#allocation5 + $0x900] sm:$0xff] %v1324_v17 }
 0x29f   :  { %1468 = vxpose.xlu1.b32.cont [5/16] %v1121_v18, 128  ;;  %v1357_v20 = vpop.trf.xlu1  ;;  %1436 = vxpose.xlu0.b32.cont [5/16] %v1120_v19, 128  ;;  %v1325_v21 = vpop.trf.xlu0  ;;  %v1153_v18 = vld [vmem:[#allocation2 + $0xb48] sm:$0xff]  ;;  %v1152_v19 = vld [vmem:[#allocation2 + $0xb40] sm:$0xff] }
 0x2a0   :  { %1985 = vst [vmem:[#allocation5 + $0xd40] sm:$0xff] %v1357_v20  ;;  %1857 = vst [vmem:[#allocation5 + $0x940] sm:$0xff] %v1325_v21 }
 0x2a3   :  { %1469 = vxpose.xlu1.b32.cont [6/16] %v1123_v22, 128  ;;  %v1358_v24 = vpop.trf.xlu1  ;;  %1437 = vxpose.xlu0.b32.cont [6/16] %v1122_v23, 128  ;;  %v1326_v25 = vpop.trf.xlu0  ;;  %v1155_v22 = vld [vmem:[#allocation2 + $0xb58] sm:$0xff]  ;;  %v1154_v23 = vld [vmem:[#allocation2 + $0xb50] sm:$0xff] }
 0x2a4   :  { %1993 = vst [vmem:[#allocation5 + $0xd80] sm:$0xff] %v1358_v24  ;;  %1865 = vst [vmem:[#allocation5 + $0x980] sm:$0xff] %v1326_v25 }
 0x2a7   :  { %1470 = vxpose.xlu1.b32.cont [7/16] %v1125_v26, 128  ;;  %v1359_v28 = vpop.trf.xlu1  ;;  %1438 = vxpose.xlu0.b32.cont [7/16] %v1124_v27, 128  ;;  %v1327_v29 = vpop.trf.xlu0  ;;  %v1157_v26 = vld [vmem:[#allocation2 + $0xb68] sm:$0xff]  ;;  %v1156_v27 = vld [vmem:[#allocation2 + $0xb60] sm:$0xff] }
 0x2a8   :  { %2001 = vst [vmem:[#allocation5 + $0xdc0] sm:$0xff] %v1359_v28  ;;  %1873 = vst [vmem:[#allocation5 + $0x9c0] sm:$0xff] %v1327_v29 }
 0x2ab   :  { %1471 = vxpose.xlu1.b32.cont [8/16] %v1127_v30, 128  ;;  %v1360_v32 = vpop.trf.xlu1  ;;  %1439 = vxpose.xlu0.b32.cont [8/16] %v1126_v31, 128  ;;  %v1328_v33 = vpop.trf.xlu0  ;;  %v1159_v30 = vld [vmem:[#allocation2 + $0xb78] sm:$0xff]  ;;  %v1158_v31 = vld [vmem:[#allocation2 + $0xb70] sm:$0xff] }
 0x2ac   :  { %2009 = vst [vmem:[#allocation5 + $0xe00] sm:$0xff] %v1360_v32  ;;  %1881 = vst [vmem:[#allocation5 + $0xa00] sm:$0xff] %v1328_v33 }
 0x2af   :  { %1472 = vxpose.xlu1.b32.cont [9/16] %v1129_v34, 128  ;;  %v1361_v36 = vpop.trf.xlu1  ;;  %1440 = vxpose.xlu0.b32.cont [9/16] %v1128_v35, 128  ;;  %v1329_v37 = vpop.trf.xlu0  ;;  %v1161_v34 = vld [vmem:[#allocation2 + $0xb88] sm:$0xff]  ;;  %v1160_v35 = vld [vmem:[#allocation2 + $0xb80] sm:$0xff] }
 0x2b0   :  { %2017 = vst [vmem:[#allocation5 + $0xe40] sm:$0xff] %v1361_v36  ;;  %1889 = vst [vmem:[#allocation5 + $0xa40] sm:$0xff] %v1329_v37 }
 0x2b3   :  { %1473 = vxpose.xlu1.b32.cont [10/16] %v1131_v38, 128  ;;  %v1362_v40 = vpop.trf.xlu1  ;;  %1441 = vxpose.xlu0.b32.cont [10/16] %v1130_v39, 128  ;;  %v1330_v41 = vpop.trf.xlu0  ;;  %v1163_v38 = vld [vmem:[#allocation2 + $0xb98] sm:$0xff]  ;;  %v1162_v39 = vld [vmem:[#allocation2 + $0xb90] sm:$0xff] }
 0x2b4   :  { %2025 = vst [vmem:[#allocation5 + $0xe80] sm:$0xff] %v1362_v40  ;;  %1897 = vst [vmem:[#allocation5 + $0xa80] sm:$0xff] %v1330_v41 }
 0x2b7   :  { %1474 = vxpose.xlu1.b32.cont [11/16] %v1133_v42, 128  ;;  %v1363_v44 = vpop.trf.xlu1  ;;  %1442 = vxpose.xlu0.b32.cont [11/16] %v1132_v43, 128  ;;  %v1331_v45 = vpop.trf.xlu0  ;;  %v1165_v42 = vld [vmem:[#allocation2 + $0xba8] sm:$0xff]  ;;  %v1164_v43 = vld [vmem:[#allocation2 + $0xba0] sm:$0xff] }
 0x2b8   :  { %2033 = vst [vmem:[#allocation5 + $0xec0] sm:$0xff] %v1363_v44  ;;  %1905 = vst [vmem:[#allocation5 + $0xac0] sm:$0xff] %v1331_v45 }
 0x2bb   :  { %1475 = vxpose.xlu1.b32.cont [12/16] %v1135_v46, 128  ;;  %v1364_v48 = vpop.trf.xlu1  ;;  %1443 = vxpose.xlu0.b32.cont [12/16] %v1134_v47, 128  ;;  %v1332_v49 = vpop.trf.xlu0  ;;  %v1167_v46 = vld [vmem:[#allocation2 + $0xbb8] sm:$0xff]  ;;  %v1166_v47 = vld [vmem:[#allocation2 + $0xbb0] sm:$0xff] }
 0x2bc   :  { %2041 = vst [vmem:[#allocation5 + $0xf00] sm:$0xff] %v1364_v48  ;;  %1913 = vst [vmem:[#allocation5 + $0xb00] sm:$0xff] %v1332_v49 }
 0x2bf   :  { %1476 = vxpose.xlu1.b32.cont [13/16] %v1137_v50, 128  ;;  %v1365_v52 = vpop.trf.xlu1  ;;  %1444 = vxpose.xlu0.b32.cont [13/16] %v1136_v51, 128  ;;  %v1333_v53 = vpop.trf.xlu0  ;;  %v1169_v50 = vld [vmem:[#allocation2 + $0xbc8] sm:$0xff]  ;;  %v1168_v51 = vld [vmem:[#allocation2 + $0xbc0] sm:$0xff] }
 0x2c0   :  { %2049 = vst [vmem:[#allocation5 + $0xf40] sm:$0xff] %v1365_v52  ;;  %1921 = vst [vmem:[#allocation5 + $0xb40] sm:$0xff] %v1333_v53 }
 0x2c3   :  { %1477 = vxpose.xlu1.b32.cont [14/16] %v1139_v54, 128  ;;  %v1366_v56 = vpop.trf.xlu1  ;;  %1445 = vxpose.xlu0.b32.cont [14/16] %v1138_v55, 128  ;;  %v1334_v57 = vpop.trf.xlu0  ;;  %v1171_v54 = vld [vmem:[#allocation2 + $0xbd8] sm:$0xff]  ;;  %v1170_v55 = vld [vmem:[#allocation2 + $0xbd0] sm:$0xff] }
 0x2c4   :  { %2057 = vst [vmem:[#allocation5 + $0xf80] sm:$0xff] %v1366_v56  ;;  %1929 = vst [vmem:[#allocation5 + $0xb80] sm:$0xff] %v1334_v57 }
 0x2c7   :  { %1478 = vxpose.xlu1.b32.cont [15/16] %v1141_v58, 128  ;;  %v1367_v60 = vpop.trf.xlu1  ;;  %1446 = vxpose.xlu0.b32.cont [15/16] %v1140_v59, 128  ;;  %v1335_v61 = vpop.trf.xlu0  ;;  %v1173_v58 = vld [vmem:[#allocation2 + $0xbe8] sm:$0xff]  ;;  %v1172_v59 = vld [vmem:[#allocation2 + $0xbe0] sm:$0xff] }
 0x2c8   :  { %2065 = vst [vmem:[#allocation5 + $0xfc0] sm:$0xff] %v1367_v60  ;;  %1937 = vst [vmem:[#allocation5 + $0xbc0] sm:$0xff] %v1335_v61 }
 0x2cb   :  { %1479 = vxpose.xlu1.b32.end [16/16] %v1143_v62, 128  ;;  %v1416_v0 = vpop.trf.xlu1  ;;  %1447 = vxpose.xlu0.b32.end [16/16] %v1142_v63, 128  ;;  %v1384_v1 = vpop.trf.xlu0  ;;  %v1175_v62 = vld [vmem:[#allocation2 + $0xbf8] sm:$0xff]  ;;  %v1174_v63 = vld [vmem:[#allocation2 + $0xbf0] sm:$0xff] }
 0x2cc   :  { %1946 = vst [vmem:[#allocation5 + $0xc08] sm:$0xff] %v1416_v0  ;;  %1818 = vst [vmem:[#allocation5 + $0x808] sm:$0xff] %v1384_v1 }
 0x2cf   :  { %1528 = vxpose.xlu1.b32.start [1/16] %v1145_v2, 128  ;;  %v1417_v4 = vpop.trf.xlu1  ;;  %1496 = vxpose.xlu0.b32.start [1/16] %v1144_v3, 128  ;;  %v1385_v5 = vpop.trf.xlu0  ;;  %v1177_v2 = vld [vmem:[#allocation2 + $0xc08] sm:$0xff]  ;;  %v1176_v3 = vld [vmem:[#allocation2 + $0xc00] sm:$0xff] }
 0x2d0   :  { %1954 = vst [vmem:[#allocation5 + $0xc48] sm:$0xff] %v1417_v4  ;;  %1826 = vst [vmem:[#allocation5 + $0x848] sm:$0xff] %v1385_v5 }
 0x2d3   :  { %1529 = vxpose.xlu1.b32.cont [2/16] %v1147_v6, 128  ;;  %v1418_v8 = vpop.trf.xlu1  ;;  %1497 = vxpose.xlu0.b32.cont [2/16] %v1146_v7, 128  ;;  %v1386_v9 = vpop.trf.xlu0  ;;  %v1179_v6 = vld [vmem:[#allocation2 + $0xc18] sm:$0xff]  ;;  %v1178_v7 = vld [vmem:[#allocation2 + $0xc10] sm:$0xff] }
 0x2d4   :  { %1962 = vst [vmem:[#allocation5 + $0xc88] sm:$0xff] %v1418_v8  ;;  %1834 = vst [vmem:[#allocation5 + $0x888] sm:$0xff] %v1386_v9 }
 0x2d7   :  { %1530 = vxpose.xlu1.b32.cont [3/16] %v1149_v10, 128  ;;  %v1419_v12 = vpop.trf.xlu1  ;;  %1498 = vxpose.xlu0.b32.cont [3/16] %v1148_v11, 128  ;;  %v1387_v13 = vpop.trf.xlu0  ;;  %v1181_v10 = vld [vmem:[#allocation2 + $0xc28] sm:$0xff]  ;;  %v1180_v11 = vld [vmem:[#allocation2 + $0xc20] sm:$0xff] }
 0x2d8   :  { %1970 = vst [vmem:[#allocation5 + $0xcc8] sm:$0xff] %v1419_v12  ;;  %1842 = vst [vmem:[#allocation5 + $0x8c8] sm:$0xff] %v1387_v13 }
 0x2db   :  { %1531 = vxpose.xlu1.b32.cont [4/16] %v1151_v14, 128  ;;  %v1420_v16 = vpop.trf.xlu1  ;;  %1499 = vxpose.xlu0.b32.cont [4/16] %v1150_v15, 128  ;;  %v1388_v17 = vpop.trf.xlu0  ;;  %v1183_v14 = vld [vmem:[#allocation2 + $0xc38] sm:$0xff]  ;;  %v1182_v15 = vld [vmem:[#allocation2 + $0xc30] sm:$0xff] }
 0x2dc   :  { %1978 = vst [vmem:[#allocation5 + $0xd08] sm:$0xff] %v1420_v16  ;;  %1850 = vst [vmem:[#allocation5 + $0x908] sm:$0xff] %v1388_v17 }
 0x2df   :  { %1532 = vxpose.xlu1.b32.cont [5/16] %v1153_v18, 128  ;;  %v1421_v20 = vpop.trf.xlu1  ;;  %1500 = vxpose.xlu0.b32.cont [5/16] %v1152_v19, 128  ;;  %v1389_v21 = vpop.trf.xlu0  ;;  %v1185_v18 = vld [vmem:[#allocation2 + $0xc48] sm:$0xff]  ;;  %v1184_v19 = vld [vmem:[#allocation2 + $0xc40] sm:$0xff] }
 0x2e0   :  { %1986 = vst [vmem:[#allocation5 + $0xd48] sm:$0xff] %v1421_v20  ;;  %1858 = vst [vmem:[#allocation5 + $0x948] sm:$0xff] %v1389_v21 }
 0x2e3   :  { %1533 = vxpose.xlu1.b32.cont [6/16] %v1155_v22, 128  ;;  %v1422_v24 = vpop.trf.xlu1  ;;  %1501 = vxpose.xlu0.b32.cont [6/16] %v1154_v23, 128  ;;  %v1390_v25 = vpop.trf.xlu0  ;;  %v1187_v22 = vld [vmem:[#allocation2 + $0xc58] sm:$0xff]  ;;  %v1186_v23 = vld [vmem:[#allocation2 + $0xc50] sm:$0xff] }
 0x2e4   :  { %1994 = vst [vmem:[#allocation5 + $0xd88] sm:$0xff] %v1422_v24  ;;  %1866 = vst [vmem:[#allocation5 + $0x988] sm:$0xff] %v1390_v25 }
 0x2e7   :  { %1534 = vxpose.xlu1.b32.cont [7/16] %v1157_v26, 128  ;;  %v1423_v28 = vpop.trf.xlu1  ;;  %1502 = vxpose.xlu0.b32.cont [7/16] %v1156_v27, 128  ;;  %v1391_v29 = vpop.trf.xlu0  ;;  %v1189_v26 = vld [vmem:[#allocation2 + $0xc68] sm:$0xff]  ;;  %v1188_v27 = vld [vmem:[#allocation2 + $0xc60] sm:$0xff] }
 0x2e8   :  { %2002 = vst [vmem:[#allocation5 + $0xdc8] sm:$0xff] %v1423_v28  ;;  %1874 = vst [vmem:[#allocation5 + $0x9c8] sm:$0xff] %v1391_v29 }
 0x2eb   :  { %1535 = vxpose.xlu1.b32.cont [8/16] %v1159_v30, 128  ;;  %v1424_v32 = vpop.trf.xlu1  ;;  %1503 = vxpose.xlu0.b32.cont [8/16] %v1158_v31, 128  ;;  %v1392_v33 = vpop.trf.xlu0  ;;  %v1191_v30 = vld [vmem:[#allocation2 + $0xc78] sm:$0xff]  ;;  %v1190_v31 = vld [vmem:[#allocation2 + $0xc70] sm:$0xff] }
 0x2ec   :  { %2010 = vst [vmem:[#allocation5 + $0xe08] sm:$0xff] %v1424_v32  ;;  %1882 = vst [vmem:[#allocation5 + $0xa08] sm:$0xff] %v1392_v33 }
 0x2ef   :  { %1536 = vxpose.xlu1.b32.cont [9/16] %v1161_v34, 128  ;;  %v1425_v36 = vpop.trf.xlu1  ;;  %1504 = vxpose.xlu0.b32.cont [9/16] %v1160_v35, 128  ;;  %v1393_v37 = vpop.trf.xlu0  ;;  %v1193_v34 = vld [vmem:[#allocation2 + $0xc88] sm:$0xff]  ;;  %v1192_v35 = vld [vmem:[#allocation2 + $0xc80] sm:$0xff] }
 0x2f0   :  { %2018 = vst [vmem:[#allocation5 + $0xe48] sm:$0xff] %v1425_v36  ;;  %1890 = vst [vmem:[#allocation5 + $0xa48] sm:$0xff] %v1393_v37 }
 0x2f3   :  { %1537 = vxpose.xlu1.b32.cont [10/16] %v1163_v38, 128  ;;  %v1426_v40 = vpop.trf.xlu1  ;;  %1505 = vxpose.xlu0.b32.cont [10/16] %v1162_v39, 128  ;;  %v1394_v41 = vpop.trf.xlu0  ;;  %v1195_v38 = vld [vmem:[#allocation2 + $0xc98] sm:$0xff]  ;;  %v1194_v39 = vld [vmem:[#allocation2 + $0xc90] sm:$0xff] }
 0x2f4   :  { %2026 = vst [vmem:[#allocation5 + $0xe88] sm:$0xff] %v1426_v40  ;;  %1898 = vst [vmem:[#allocation5 + $0xa88] sm:$0xff] %v1394_v41 }
 0x2f7   :  { %1538 = vxpose.xlu1.b32.cont [11/16] %v1165_v42, 128  ;;  %v1427_v44 = vpop.trf.xlu1  ;;  %1506 = vxpose.xlu0.b32.cont [11/16] %v1164_v43, 128  ;;  %v1395_v45 = vpop.trf.xlu0  ;;  %v1197_v42 = vld [vmem:[#allocation2 + $0xca8] sm:$0xff]  ;;  %v1196_v43 = vld [vmem:[#allocation2 + $0xca0] sm:$0xff] }
 0x2f8   :  { %2034 = vst [vmem:[#allocation5 + $0xec8] sm:$0xff] %v1427_v44  ;;  %1906 = vst [vmem:[#allocation5 + $0xac8] sm:$0xff] %v1395_v45 }
 0x2fb   :  { %1539 = vxpose.xlu1.b32.cont [12/16] %v1167_v46, 128  ;;  %v1428_v48 = vpop.trf.xlu1  ;;  %1507 = vxpose.xlu0.b32.cont [12/16] %v1166_v47, 128  ;;  %v1396_v49 = vpop.trf.xlu0  ;;  %v1199_v46 = vld [vmem:[#allocation2 + $0xcb8] sm:$0xff]  ;;  %v1198_v47 = vld [vmem:[#allocation2 + $0xcb0] sm:$0xff] }
 0x2fc   :  { %2042 = vst [vmem:[#allocation5 + $0xf08] sm:$0xff] %v1428_v48  ;;  %1914 = vst [vmem:[#allocation5 + $0xb08] sm:$0xff] %v1396_v49 }
 0x2ff   :  { %1540 = vxpose.xlu1.b32.cont [13/16] %v1169_v50, 128  ;;  %v1429_v52 = vpop.trf.xlu1  ;;  %1508 = vxpose.xlu0.b32.cont [13/16] %v1168_v51, 128  ;;  %v1397_v53 = vpop.trf.xlu0  ;;  %v1201_v50 = vld [vmem:[#allocation2 + $0xcc8] sm:$0xff]  ;;  %v1200_v51 = vld [vmem:[#allocation2 + $0xcc0] sm:$0xff] }
 0x300   :  { %2050 = vst [vmem:[#allocation5 + $0xf48] sm:$0xff] %v1429_v52  ;;  %1922 = vst [vmem:[#allocation5 + $0xb48] sm:$0xff] %v1397_v53 }
 0x303   :  { %1541 = vxpose.xlu1.b32.cont [14/16] %v1171_v54, 128  ;;  %v1430_v56 = vpop.trf.xlu1  ;;  %1509 = vxpose.xlu0.b32.cont [14/16] %v1170_v55, 128  ;;  %v1398_v57 = vpop.trf.xlu0  ;;  %v1203_v54 = vld [vmem:[#allocation2 + $0xcd8] sm:$0xff]  ;;  %v1202_v55 = vld [vmem:[#allocation2 + $0xcd0] sm:$0xff] }
 0x304   :  { %2058 = vst [vmem:[#allocation5 + $0xf88] sm:$0xff] %v1430_v56  ;;  %1930 = vst [vmem:[#allocation5 + $0xb88] sm:$0xff] %v1398_v57 }
 0x307   :  { %1542 = vxpose.xlu1.b32.cont [15/16] %v1173_v58, 128  ;;  %v1431_v60 = vpop.trf.xlu1  ;;  %1510 = vxpose.xlu0.b32.cont [15/16] %v1172_v59, 128  ;;  %v1399_v61 = vpop.trf.xlu0  ;;  %v1205_v58 = vld [vmem:[#allocation2 + $0xce8] sm:$0xff]  ;;  %v1204_v59 = vld [vmem:[#allocation2 + $0xce0] sm:$0xff] }
 0x308   :  { %2066 = vst [vmem:[#allocation5 + $0xfc8] sm:$0xff] %v1431_v60  ;;  %1938 = vst [vmem:[#allocation5 + $0xbc8] sm:$0xff] %v1399_v61 }
 0x30b   :  { %1543 = vxpose.xlu1.b32.end [16/16] %v1175_v62, 128  ;;  %v1480_v0 = vpop.trf.xlu1  ;;  %1511 = vxpose.xlu0.b32.end [16/16] %v1174_v63, 128  ;;  %v1448_v1 = vpop.trf.xlu0  ;;  %v1207_v62 = vld [vmem:[#allocation2 + $0xcf8] sm:$0xff]  ;;  %v1206_v63 = vld [vmem:[#allocation2 + $0xcf0] sm:$0xff] }
 0x30c   :  { %1947 = vst [vmem:[#allocation5 + $0xc10] sm:$0xff] %v1480_v0  ;;  %1819 = vst [vmem:[#allocation5 + $0x810] sm:$0xff] %v1448_v1 }
 0x30f   :  { %1592 = vxpose.xlu1.b32.start [1/16] %v1177_v2, 128  ;;  %v1481_v4 = vpop.trf.xlu1  ;;  %1560 = vxpose.xlu0.b32.start [1/16] %v1176_v3, 128  ;;  %v1449_v5 = vpop.trf.xlu0  ;;  %v1209_v2 = vld [vmem:[#allocation2 + $0xd08] sm:$0xff]  ;;  %v1208_v3 = vld [vmem:[#allocation2 + $0xd00] sm:$0xff] }
 0x310   :  { %1955 = vst [vmem:[#allocation5 + $0xc50] sm:$0xff] %v1481_v4  ;;  %1827 = vst [vmem:[#allocation5 + $0x850] sm:$0xff] %v1449_v5 }
 0x313   :  { %1593 = vxpose.xlu1.b32.cont [2/16] %v1179_v6, 128  ;;  %v1482_v8 = vpop.trf.xlu1  ;;  %1561 = vxpose.xlu0.b32.cont [2/16] %v1178_v7, 128  ;;  %v1450_v9 = vpop.trf.xlu0  ;;  %v1211_v6 = vld [vmem:[#allocation2 + $0xd18] sm:$0xff]  ;;  %v1210_v7 = vld [vmem:[#allocation2 + $0xd10] sm:$0xff] }
 0x314   :  { %1963 = vst [vmem:[#allocation5 + $0xc90] sm:$0xff] %v1482_v8  ;;  %1835 = vst [vmem:[#allocation5 + $0x890] sm:$0xff] %v1450_v9 }
 0x317   :  { %1594 = vxpose.xlu1.b32.cont [3/16] %v1181_v10, 128  ;;  %v1483_v12 = vpop.trf.xlu1  ;;  %1562 = vxpose.xlu0.b32.cont [3/16] %v1180_v11, 128  ;;  %v1451_v13 = vpop.trf.xlu0  ;;  %v1213_v10 = vld [vmem:[#allocation2 + $0xd28] sm:$0xff]  ;;  %v1212_v11 = vld [vmem:[#allocation2 + $0xd20] sm:$0xff] }
 0x318   :  { %1971 = vst [vmem:[#allocation5 + $0xcd0] sm:$0xff] %v1483_v12  ;;  %1843 = vst [vmem:[#allocation5 + $0x8d0] sm:$0xff] %v1451_v13 }
 0x31b   :  { %1595 = vxpose.xlu1.b32.cont [4/16] %v1183_v14, 128  ;;  %v1484_v16 = vpop.trf.xlu1  ;;  %1563 = vxpose.xlu0.b32.cont [4/16] %v1182_v15, 128  ;;  %v1452_v17 = vpop.trf.xlu0  ;;  %v1215_v14 = vld [vmem:[#allocation2 + $0xd38] sm:$0xff]  ;;  %v1214_v15 = vld [vmem:[#allocation2 + $0xd30] sm:$0xff] }
 0x31c   :  { %1979 = vst [vmem:[#allocation5 + $0xd10] sm:$0xff] %v1484_v16  ;;  %1851 = vst [vmem:[#allocation5 + $0x910] sm:$0xff] %v1452_v17 }
 0x31f   :  { %1596 = vxpose.xlu1.b32.cont [5/16] %v1185_v18, 128  ;;  %v1485_v20 = vpop.trf.xlu1  ;;  %1564 = vxpose.xlu0.b32.cont [5/16] %v1184_v19, 128  ;;  %v1453_v21 = vpop.trf.xlu0  ;;  %v1217_v18 = vld [vmem:[#allocation2 + $0xd48] sm:$0xff]  ;;  %v1216_v19 = vld [vmem:[#allocation2 + $0xd40] sm:$0xff] }
 0x320   :  { %1987 = vst [vmem:[#allocation5 + $0xd50] sm:$0xff] %v1485_v20  ;;  %1859 = vst [vmem:[#allocation5 + $0x950] sm:$0xff] %v1453_v21 }
 0x323   :  { %1597 = vxpose.xlu1.b32.cont [6/16] %v1187_v22, 128  ;;  %v1486_v24 = vpop.trf.xlu1  ;;  %1565 = vxpose.xlu0.b32.cont [6/16] %v1186_v23, 128  ;;  %v1454_v25 = vpop.trf.xlu0  ;;  %v1219_v22 = vld [vmem:[#allocation2 + $0xd58] sm:$0xff]  ;;  %v1218_v23 = vld [vmem:[#allocation2 + $0xd50] sm:$0xff] }
 0x324   :  { %1995 = vst [vmem:[#allocation5 + $0xd90] sm:$0xff] %v1486_v24  ;;  %1867 = vst [vmem:[#allocation5 + $0x990] sm:$0xff] %v1454_v25 }
 0x327   :  { %1598 = vxpose.xlu1.b32.cont [7/16] %v1189_v26, 128  ;;  %v1487_v28 = vpop.trf.xlu1  ;;  %1566 = vxpose.xlu0.b32.cont [7/16] %v1188_v27, 128  ;;  %v1455_v29 = vpop.trf.xlu0  ;;  %v1221_v26 = vld [vmem:[#allocation2 + $0xd68] sm:$0xff]  ;;  %v1220_v27 = vld [vmem:[#allocation2 + $0xd60] sm:$0xff] }
 0x328   :  { %2003 = vst [vmem:[#allocation5 + $0xdd0] sm:$0xff] %v1487_v28  ;;  %1875 = vst [vmem:[#allocation5 + $0x9d0] sm:$0xff] %v1455_v29 }
 0x32b   :  { %1599 = vxpose.xlu1.b32.cont [8/16] %v1191_v30, 128  ;;  %v1488_v32 = vpop.trf.xlu1  ;;  %1567 = vxpose.xlu0.b32.cont [8/16] %v1190_v31, 128  ;;  %v1456_v33 = vpop.trf.xlu0  ;;  %v1223_v30 = vld [vmem:[#allocation2 + $0xd78] sm:$0xff]  ;;  %v1222_v31 = vld [vmem:[#allocation2 + $0xd70] sm:$0xff] }
 0x32c   :  { %2011 = vst [vmem:[#allocation5 + $0xe10] sm:$0xff] %v1488_v32  ;;  %1883 = vst [vmem:[#allocation5 + $0xa10] sm:$0xff] %v1456_v33 }
 0x32f   :  { %1600 = vxpose.xlu1.b32.cont [9/16] %v1193_v34, 128  ;;  %v1489_v36 = vpop.trf.xlu1  ;;  %1568 = vxpose.xlu0.b32.cont [9/16] %v1192_v35, 128  ;;  %v1457_v37 = vpop.trf.xlu0  ;;  %v1225_v34 = vld [vmem:[#allocation2 + $0xd88] sm:$0xff]  ;;  %v1224_v35 = vld [vmem:[#allocation2 + $0xd80] sm:$0xff] }
 0x330   :  { %2019 = vst [vmem:[#allocation5 + $0xe50] sm:$0xff] %v1489_v36  ;;  %1891 = vst [vmem:[#allocation5 + $0xa50] sm:$0xff] %v1457_v37 }
 0x333   :  { %1601 = vxpose.xlu1.b32.cont [10/16] %v1195_v38, 128  ;;  %v1490_v40 = vpop.trf.xlu1  ;;  %1569 = vxpose.xlu0.b32.cont [10/16] %v1194_v39, 128  ;;  %v1458_v41 = vpop.trf.xlu0  ;;  %v1227_v38 = vld [vmem:[#allocation2 + $0xd98] sm:$0xff]  ;;  %v1226_v39 = vld [vmem:[#allocation2 + $0xd90] sm:$0xff] }
 0x334   :  { %2027 = vst [vmem:[#allocation5 + $0xe90] sm:$0xff] %v1490_v40  ;;  %1899 = vst [vmem:[#allocation5 + $0xa90] sm:$0xff] %v1458_v41 }
 0x337   :  { %1602 = vxpose.xlu1.b32.cont [11/16] %v1197_v42, 128  ;;  %v1491_v44 = vpop.trf.xlu1  ;;  %1570 = vxpose.xlu0.b32.cont [11/16] %v1196_v43, 128  ;;  %v1459_v45 = vpop.trf.xlu0  ;;  %v1229_v42 = vld [vmem:[#allocation2 + $0xda8] sm:$0xff]  ;;  %v1228_v43 = vld [vmem:[#allocation2 + $0xda0] sm:$0xff] }
 0x338   :  { %2035 = vst [vmem:[#allocation5 + $0xed0] sm:$0xff] %v1491_v44  ;;  %1907 = vst [vmem:[#allocation5 + $0xad0] sm:$0xff] %v1459_v45 }
 0x33b   :  { %1603 = vxpose.xlu1.b32.cont [12/16] %v1199_v46, 128  ;;  %v1492_v48 = vpop.trf.xlu1  ;;  %1571 = vxpose.xlu0.b32.cont [12/16] %v1198_v47, 128  ;;  %v1460_v49 = vpop.trf.xlu0  ;;  %v1231_v46 = vld [vmem:[#allocation2 + $0xdb8] sm:$0xff]  ;;  %v1230_v47 = vld [vmem:[#allocation2 + $0xdb0] sm:$0xff] }
 0x33c   :  { %2043 = vst [vmem:[#allocation5 + $0xf10] sm:$0xff] %v1492_v48  ;;  %1915 = vst [vmem:[#allocation5 + $0xb10] sm:$0xff] %v1460_v49 }
 0x33f   :  { %1604 = vxpose.xlu1.b32.cont [13/16] %v1201_v50, 128  ;;  %v1493_v52 = vpop.trf.xlu1  ;;  %1572 = vxpose.xlu0.b32.cont [13/16] %v1200_v51, 128  ;;  %v1461_v53 = vpop.trf.xlu0  ;;  %v1233_v50 = vld [vmem:[#allocation2 + $0xdc8] sm:$0xff]  ;;  %v1232_v51 = vld [vmem:[#allocation2 + $0xdc0] sm:$0xff] }
 0x340   :  { %2051 = vst [vmem:[#allocation5 + $0xf50] sm:$0xff] %v1493_v52  ;;  %1923 = vst [vmem:[#allocation5 + $0xb50] sm:$0xff] %v1461_v53 }
 0x343   :  { %1605 = vxpose.xlu1.b32.cont [14/16] %v1203_v54, 128  ;;  %v1494_v56 = vpop.trf.xlu1  ;;  %1573 = vxpose.xlu0.b32.cont [14/16] %v1202_v55, 128  ;;  %v1462_v57 = vpop.trf.xlu0  ;;  %v1235_v54 = vld [vmem:[#allocation2 + $0xdd8] sm:$0xff]  ;;  %v1234_v55 = vld [vmem:[#allocation2 + $0xdd0] sm:$0xff] }
 0x344   :  { %2059 = vst [vmem:[#allocation5 + $0xf90] sm:$0xff] %v1494_v56  ;;  %1931 = vst [vmem:[#allocation5 + $0xb90] sm:$0xff] %v1462_v57 }
 0x347   :  { %1606 = vxpose.xlu1.b32.cont [15/16] %v1205_v58, 128  ;;  %v1495_v60 = vpop.trf.xlu1  ;;  %1574 = vxpose.xlu0.b32.cont [15/16] %v1204_v59, 128  ;;  %v1463_v61 = vpop.trf.xlu0  ;;  %v1237_v58 = vld [vmem:[#allocation2 + $0xde8] sm:$0xff]  ;;  %v1236_v59 = vld [vmem:[#allocation2 + $0xde0] sm:$0xff] }
 0x348   :  { %2067 = vst [vmem:[#allocation5 + $0xfd0] sm:$0xff] %v1495_v60  ;;  %1939 = vst [vmem:[#allocation5 + $0xbd0] sm:$0xff] %v1463_v61 }
 0x34b   :  { %1607 = vxpose.xlu1.b32.end [16/16] %v1207_v62, 128  ;;  %v1544_v0 = vpop.trf.xlu1  ;;  %1575 = vxpose.xlu0.b32.end [16/16] %v1206_v63, 128  ;;  %v1512_v1 = vpop.trf.xlu0  ;;  %v1239_v62 = vld [vmem:[#allocation2 + $0xdf8] sm:$0xff]  ;;  %v1238_v63 = vld [vmem:[#allocation2 + $0xdf0] sm:$0xff] }
 0x34c   :  { %1948 = vst [vmem:[#allocation5 + $0xc18] sm:$0xff] %v1544_v0  ;;  %1820 = vst [vmem:[#allocation5 + $0x818] sm:$0xff] %v1512_v1 }
 0x34f   :  { %1656 = vxpose.xlu1.b32.start [1/16] %v1209_v2, 128  ;;  %v1545_v4 = vpop.trf.xlu1  ;;  %1624 = vxpose.xlu0.b32.start [1/16] %v1208_v3, 128  ;;  %v1513_v5 = vpop.trf.xlu0  ;;  %v1241_v2 = vld [vmem:[#allocation2 + $0xe08] sm:$0xff]  ;;  %v1240_v3 = vld [vmem:[#allocation2 + $0xe00] sm:$0xff] }
 0x350   :  { %1956 = vst [vmem:[#allocation5 + $0xc58] sm:$0xff] %v1545_v4  ;;  %1828 = vst [vmem:[#allocation5 + $0x858] sm:$0xff] %v1513_v5 }
 0x353   :  { %1657 = vxpose.xlu1.b32.cont [2/16] %v1211_v6, 128  ;;  %v1546_v8 = vpop.trf.xlu1  ;;  %1625 = vxpose.xlu0.b32.cont [2/16] %v1210_v7, 128  ;;  %v1514_v9 = vpop.trf.xlu0  ;;  %v1243_v6 = vld [vmem:[#allocation2 + $0xe18] sm:$0xff]  ;;  %v1242_v7 = vld [vmem:[#allocation2 + $0xe10] sm:$0xff] }
 0x354   :  { %1964 = vst [vmem:[#allocation5 + $0xc98] sm:$0xff] %v1546_v8  ;;  %1836 = vst [vmem:[#allocation5 + $0x898] sm:$0xff] %v1514_v9 }
 0x357   :  { %1658 = vxpose.xlu1.b32.cont [3/16] %v1213_v10, 128  ;;  %v1547_v12 = vpop.trf.xlu1  ;;  %1626 = vxpose.xlu0.b32.cont [3/16] %v1212_v11, 128  ;;  %v1515_v13 = vpop.trf.xlu0  ;;  %v1245_v10 = vld [vmem:[#allocation2 + $0xe28] sm:$0xff]  ;;  %v1244_v11 = vld [vmem:[#allocation2 + $0xe20] sm:$0xff] }
 0x358   :  { %1972 = vst [vmem:[#allocation5 + $0xcd8] sm:$0xff] %v1547_v12  ;;  %1844 = vst [vmem:[#allocation5 + $0x8d8] sm:$0xff] %v1515_v13 }
 0x35b   :  { %1659 = vxpose.xlu1.b32.cont [4/16] %v1215_v14, 128  ;;  %v1548_v16 = vpop.trf.xlu1  ;;  %1627 = vxpose.xlu0.b32.cont [4/16] %v1214_v15, 128  ;;  %v1516_v17 = vpop.trf.xlu0  ;;  %v1247_v14 = vld [vmem:[#allocation2 + $0xe38] sm:$0xff]  ;;  %v1246_v15 = vld [vmem:[#allocation2 + $0xe30] sm:$0xff] }
 0x35c   :  { %1980 = vst [vmem:[#allocation5 + $0xd18] sm:$0xff] %v1548_v16  ;;  %1852 = vst [vmem:[#allocation5 + $0x918] sm:$0xff] %v1516_v17 }
 0x35f   :  { %1660 = vxpose.xlu1.b32.cont [5/16] %v1217_v18, 128  ;;  %v1549_v20 = vpop.trf.xlu1  ;;  %1628 = vxpose.xlu0.b32.cont [5/16] %v1216_v19, 128  ;;  %v1517_v21 = vpop.trf.xlu0  ;;  %v1249_v18 = vld [vmem:[#allocation2 + $0xe48] sm:$0xff]  ;;  %v1248_v19 = vld [vmem:[#allocation2 + $0xe40] sm:$0xff] }
 0x360   :  { %1988 = vst [vmem:[#allocation5 + $0xd58] sm:$0xff] %v1549_v20  ;;  %1860 = vst [vmem:[#allocation5 + $0x958] sm:$0xff] %v1517_v21 }
 0x363   :  { %1661 = vxpose.xlu1.b32.cont [6/16] %v1219_v22, 128  ;;  %v1550_v24 = vpop.trf.xlu1  ;;  %1629 = vxpose.xlu0.b32.cont [6/16] %v1218_v23, 128  ;;  %v1518_v25 = vpop.trf.xlu0  ;;  %v1251_v22 = vld [vmem:[#allocation2 + $0xe58] sm:$0xff]  ;;  %v1250_v23 = vld [vmem:[#allocation2 + $0xe50] sm:$0xff] }
 0x364   :  { %1996 = vst [vmem:[#allocation5 + $0xd98] sm:$0xff] %v1550_v24  ;;  %1868 = vst [vmem:[#allocation5 + $0x998] sm:$0xff] %v1518_v25 }
 0x367   :  { %1662 = vxpose.xlu1.b32.cont [7/16] %v1221_v26, 128  ;;  %v1551_v28 = vpop.trf.xlu1  ;;  %1630 = vxpose.xlu0.b32.cont [7/16] %v1220_v27, 128  ;;  %v1519_v29 = vpop.trf.xlu0  ;;  %v1253_v26 = vld [vmem:[#allocation2 + $0xe68] sm:$0xff]  ;;  %v1252_v27 = vld [vmem:[#allocation2 + $0xe60] sm:$0xff] }
 0x368   :  { %2004 = vst [vmem:[#allocation5 + $0xdd8] sm:$0xff] %v1551_v28  ;;  %1876 = vst [vmem:[#allocation5 + $0x9d8] sm:$0xff] %v1519_v29 }
 0x36b   :  { %1663 = vxpose.xlu1.b32.cont [8/16] %v1223_v30, 128  ;;  %v1552_v32 = vpop.trf.xlu1  ;;  %1631 = vxpose.xlu0.b32.cont [8/16] %v1222_v31, 128  ;;  %v1520_v33 = vpop.trf.xlu0  ;;  %v1255_v30 = vld [vmem:[#allocation2 + $0xe78] sm:$0xff]  ;;  %v1254_v31 = vld [vmem:[#allocation2 + $0xe70] sm:$0xff] }
 0x36c   :  { %2012 = vst [vmem:[#allocation5 + $0xe18] sm:$0xff] %v1552_v32  ;;  %1884 = vst [vmem:[#allocation5 + $0xa18] sm:$0xff] %v1520_v33 }
 0x36f   :  { %1664 = vxpose.xlu1.b32.cont [9/16] %v1225_v34, 128  ;;  %v1553_v36 = vpop.trf.xlu1  ;;  %1632 = vxpose.xlu0.b32.cont [9/16] %v1224_v35, 128  ;;  %v1521_v37 = vpop.trf.xlu0  ;;  %v1257_v34 = vld [vmem:[#allocation2 + $0xe88] sm:$0xff]  ;;  %v1256_v35 = vld [vmem:[#allocation2 + $0xe80] sm:$0xff] }
 0x370   :  { %2020 = vst [vmem:[#allocation5 + $0xe58] sm:$0xff] %v1553_v36  ;;  %1892 = vst [vmem:[#allocation5 + $0xa58] sm:$0xff] %v1521_v37 }
 0x373   :  { %1665 = vxpose.xlu1.b32.cont [10/16] %v1227_v38, 128  ;;  %v1554_v40 = vpop.trf.xlu1  ;;  %1633 = vxpose.xlu0.b32.cont [10/16] %v1226_v39, 128  ;;  %v1522_v41 = vpop.trf.xlu0  ;;  %v1259_v38 = vld [vmem:[#allocation2 + $0xe98] sm:$0xff]  ;;  %v1258_v39 = vld [vmem:[#allocation2 + $0xe90] sm:$0xff] }
 0x374   :  { %2028 = vst [vmem:[#allocation5 + $0xe98] sm:$0xff] %v1554_v40  ;;  %1900 = vst [vmem:[#allocation5 + $0xa98] sm:$0xff] %v1522_v41 }
 0x377   :  { %1666 = vxpose.xlu1.b32.cont [11/16] %v1229_v42, 128  ;;  %v1555_v44 = vpop.trf.xlu1  ;;  %1634 = vxpose.xlu0.b32.cont [11/16] %v1228_v43, 128  ;;  %v1523_v45 = vpop.trf.xlu0  ;;  %v1261_v42 = vld [vmem:[#allocation2 + $0xea8] sm:$0xff]  ;;  %v1260_v43 = vld [vmem:[#allocation2 + $0xea0] sm:$0xff] }
 0x378   :  { %2036 = vst [vmem:[#allocation5 + $0xed8] sm:$0xff] %v1555_v44  ;;  %1908 = vst [vmem:[#allocation5 + $0xad8] sm:$0xff] %v1523_v45 }
 0x37b   :  { %1667 = vxpose.xlu1.b32.cont [12/16] %v1231_v46, 128  ;;  %v1556_v48 = vpop.trf.xlu1  ;;  %1635 = vxpose.xlu0.b32.cont [12/16] %v1230_v47, 128  ;;  %v1524_v49 = vpop.trf.xlu0  ;;  %v1263_v46 = vld [vmem:[#allocation2 + $0xeb8] sm:$0xff]  ;;  %v1262_v47 = vld [vmem:[#allocation2 + $0xeb0] sm:$0xff] }
 0x37c   :  { %2044 = vst [vmem:[#allocation5 + $0xf18] sm:$0xff] %v1556_v48  ;;  %1916 = vst [vmem:[#allocation5 + $0xb18] sm:$0xff] %v1524_v49 }
 0x37f   :  { %1668 = vxpose.xlu1.b32.cont [13/16] %v1233_v50, 128  ;;  %v1557_v52 = vpop.trf.xlu1  ;;  %1636 = vxpose.xlu0.b32.cont [13/16] %v1232_v51, 128  ;;  %v1525_v53 = vpop.trf.xlu0  ;;  %v1265_v50 = vld [vmem:[#allocation2 + $0xec8] sm:$0xff]  ;;  %v1264_v51 = vld [vmem:[#allocation2 + $0xec0] sm:$0xff] }
 0x380   :  { %2052 = vst [vmem:[#allocation5 + $0xf58] sm:$0xff] %v1557_v52  ;;  %1924 = vst [vmem:[#allocation5 + $0xb58] sm:$0xff] %v1525_v53 }
 0x383   :  { %1669 = vxpose.xlu1.b32.cont [14/16] %v1235_v54, 128  ;;  %v1558_v56 = vpop.trf.xlu1  ;;  %1637 = vxpose.xlu0.b32.cont [14/16] %v1234_v55, 128  ;;  %v1526_v57 = vpop.trf.xlu0  ;;  %v1267_v54 = vld [vmem:[#allocation2 + $0xed8] sm:$0xff]  ;;  %v1266_v55 = vld [vmem:[#allocation2 + $0xed0] sm:$0xff] }
 0x384   :  { %2060 = vst [vmem:[#allocation5 + $0xf98] sm:$0xff] %v1558_v56  ;;  %1932 = vst [vmem:[#allocation5 + $0xb98] sm:$0xff] %v1526_v57 }
 0x387   :  { %1670 = vxpose.xlu1.b32.cont [15/16] %v1237_v58, 128  ;;  %v1559_v60 = vpop.trf.xlu1  ;;  %1638 = vxpose.xlu0.b32.cont [15/16] %v1236_v59, 128  ;;  %v1527_v61 = vpop.trf.xlu0  ;;  %v1269_v58 = vld [vmem:[#allocation2 + $0xee8] sm:$0xff]  ;;  %v1268_v59 = vld [vmem:[#allocation2 + $0xee0] sm:$0xff] }
 0x388   :  { %2068 = vst [vmem:[#allocation5 + $0xfd8] sm:$0xff] %v1559_v60  ;;  %1940 = vst [vmem:[#allocation5 + $0xbd8] sm:$0xff] %v1527_v61 }
 0x38b   :  { %1671 = vxpose.xlu1.b32.end [16/16] %v1239_v62, 128  ;;  %v1608_v0 = vpop.trf.xlu1  ;;  %1639 = vxpose.xlu0.b32.end [16/16] %v1238_v63, 128  ;;  %v1576_v1 = vpop.trf.xlu0  ;;  %v1271_v62 = vld [vmem:[#allocation2 + $0xef8] sm:$0xff]  ;;  %v1270_v63 = vld [vmem:[#allocation2 + $0xef0] sm:$0xff] }
 0x38c   :  { %1949 = vst [vmem:[#allocation5 + $0xc20] sm:$0xff] %v1608_v0  ;;  %1821 = vst [vmem:[#allocation5 + $0x820] sm:$0xff] %v1576_v1 }
 0x38f   :  { %1720 = vxpose.xlu1.b32.start [1/16] %v1241_v2, 128  ;;  %v1609_v4 = vpop.trf.xlu1  ;;  %1688 = vxpose.xlu0.b32.start [1/16] %v1240_v3, 128  ;;  %v1577_v5 = vpop.trf.xlu0  ;;  %v1273_v2 = vld [vmem:[#allocation2 + $0xf08] sm:$0xff]  ;;  %v1272_v3 = vld [vmem:[#allocation2 + $0xf00] sm:$0xff] }
 0x390   :  { %1957 = vst [vmem:[#allocation5 + $0xc60] sm:$0xff] %v1609_v4  ;;  %1829 = vst [vmem:[#allocation5 + $0x860] sm:$0xff] %v1577_v5 }
 0x393   :  { %1721 = vxpose.xlu1.b32.cont [2/16] %v1243_v6, 128  ;;  %v1610_v8 = vpop.trf.xlu1  ;;  %1689 = vxpose.xlu0.b32.cont [2/16] %v1242_v7, 128  ;;  %v1578_v9 = vpop.trf.xlu0  ;;  %v1275_v6 = vld [vmem:[#allocation2 + $0xf18] sm:$0xff]  ;;  %v1274_v7 = vld [vmem:[#allocation2 + $0xf10] sm:$0xff] }
 0x394   :  { %1965 = vst [vmem:[#allocation5 + $0xca0] sm:$0xff] %v1610_v8  ;;  %1837 = vst [vmem:[#allocation5 + $0x8a0] sm:$0xff] %v1578_v9 }
 0x397   :  { %1722 = vxpose.xlu1.b32.cont [3/16] %v1245_v10, 128  ;;  %v1611_v12 = vpop.trf.xlu1  ;;  %1690 = vxpose.xlu0.b32.cont [3/16] %v1244_v11, 128  ;;  %v1579_v13 = vpop.trf.xlu0  ;;  %v1277_v10 = vld [vmem:[#allocation2 + $0xf28] sm:$0xff]  ;;  %v1276_v11 = vld [vmem:[#allocation2 + $0xf20] sm:$0xff] }
 0x398   :  { %1973 = vst [vmem:[#allocation5 + $0xce0] sm:$0xff] %v1611_v12  ;;  %1845 = vst [vmem:[#allocation5 + $0x8e0] sm:$0xff] %v1579_v13 }
 0x39b   :  { %1723 = vxpose.xlu1.b32.cont [4/16] %v1247_v14, 128  ;;  %v1612_v16 = vpop.trf.xlu1  ;;  %1691 = vxpose.xlu0.b32.cont [4/16] %v1246_v15, 128  ;;  %v1580_v17 = vpop.trf.xlu0  ;;  %v1279_v14 = vld [vmem:[#allocation2 + $0xf38] sm:$0xff]  ;;  %v1278_v15 = vld [vmem:[#allocation2 + $0xf30] sm:$0xff] }
 0x39c   :  { %1981 = vst [vmem:[#allocation5 + $0xd20] sm:$0xff] %v1612_v16  ;;  %1853 = vst [vmem:[#allocation5 + $0x920] sm:$0xff] %v1580_v17 }
 0x39f   :  { %1724 = vxpose.xlu1.b32.cont [5/16] %v1249_v18, 128  ;;  %v1613_v20 = vpop.trf.xlu1  ;;  %1692 = vxpose.xlu0.b32.cont [5/16] %v1248_v19, 128  ;;  %v1581_v21 = vpop.trf.xlu0  ;;  %v1281_v18 = vld [vmem:[#allocation2 + $0xf48] sm:$0xff]  ;;  %v1280_v19 = vld [vmem:[#allocation2 + $0xf40] sm:$0xff] }
 0x3a0   :  { %1989 = vst [vmem:[#allocation5 + $0xd60] sm:$0xff] %v1613_v20  ;;  %1861 = vst [vmem:[#allocation5 + $0x960] sm:$0xff] %v1581_v21 }
 0x3a3   :  { %1725 = vxpose.xlu1.b32.cont [6/16] %v1251_v22, 128  ;;  %v1614_v24 = vpop.trf.xlu1  ;;  %1693 = vxpose.xlu0.b32.cont [6/16] %v1250_v23, 128  ;;  %v1582_v25 = vpop.trf.xlu0  ;;  %v1283_v22 = vld [vmem:[#allocation2 + $0xf58] sm:$0xff]  ;;  %v1282_v23 = vld [vmem:[#allocation2 + $0xf50] sm:$0xff] }
 0x3a4   :  { %1997 = vst [vmem:[#allocation5 + $0xda0] sm:$0xff] %v1614_v24  ;;  %1869 = vst [vmem:[#allocation5 + $0x9a0] sm:$0xff] %v1582_v25 }
 0x3a7   :  { %1726 = vxpose.xlu1.b32.cont [7/16] %v1253_v26, 128  ;;  %v1615_v28 = vpop.trf.xlu1  ;;  %1694 = vxpose.xlu0.b32.cont [7/16] %v1252_v27, 128  ;;  %v1583_v29 = vpop.trf.xlu0  ;;  %v1285_v26 = vld [vmem:[#allocation2 + $0xf68] sm:$0xff]  ;;  %v1284_v27 = vld [vmem:[#allocation2 + $0xf60] sm:$0xff] }
 0x3a8   :  { %2005 = vst [vmem:[#allocation5 + $0xde0] sm:$0xff] %v1615_v28  ;;  %1877 = vst [vmem:[#allocation5 + $0x9e0] sm:$0xff] %v1583_v29 }
 0x3ab   :  { %1727 = vxpose.xlu1.b32.cont [8/16] %v1255_v30, 128  ;;  %v1616_v32 = vpop.trf.xlu1  ;;  %1695 = vxpose.xlu0.b32.cont [8/16] %v1254_v31, 128  ;;  %v1584_v33 = vpop.trf.xlu0  ;;  %v1287_v30 = vld [vmem:[#allocation2 + $0xf78] sm:$0xff]  ;;  %v1286_v31 = vld [vmem:[#allocation2 + $0xf70] sm:$0xff] }
 0x3ac   :  { %2013 = vst [vmem:[#allocation5 + $0xe20] sm:$0xff] %v1616_v32  ;;  %1885 = vst [vmem:[#allocation5 + $0xa20] sm:$0xff] %v1584_v33 }
 0x3af   :  { %1728 = vxpose.xlu1.b32.cont [9/16] %v1257_v34, 128  ;;  %v1617_v36 = vpop.trf.xlu1  ;;  %1696 = vxpose.xlu0.b32.cont [9/16] %v1256_v35, 128  ;;  %v1585_v37 = vpop.trf.xlu0  ;;  %v1289_v34 = vld [vmem:[#allocation2 + $0xf88] sm:$0xff]  ;;  %v1288_v35 = vld [vmem:[#allocation2 + $0xf80] sm:$0xff] }
 0x3b0   :  { %2021 = vst [vmem:[#allocation5 + $0xe60] sm:$0xff] %v1617_v36  ;;  %1893 = vst [vmem:[#allocation5 + $0xa60] sm:$0xff] %v1585_v37 }
 0x3b3   :  { %1729 = vxpose.xlu1.b32.cont [10/16] %v1259_v38, 128  ;;  %v1618_v40 = vpop.trf.xlu1  ;;  %1697 = vxpose.xlu0.b32.cont [10/16] %v1258_v39, 128  ;;  %v1586_v41 = vpop.trf.xlu0  ;;  %v1291_v38 = vld [vmem:[#allocation2 + $0xf98] sm:$0xff]  ;;  %v1290_v39 = vld [vmem:[#allocation2 + $0xf90] sm:$0xff] }
 0x3b4   :  { %2029 = vst [vmem:[#allocation5 + $0xea0] sm:$0xff] %v1618_v40  ;;  %1901 = vst [vmem:[#allocation5 + $0xaa0] sm:$0xff] %v1586_v41 }
 0x3b7   :  { %1730 = vxpose.xlu1.b32.cont [11/16] %v1261_v42, 128  ;;  %v1619_v44 = vpop.trf.xlu1  ;;  %1698 = vxpose.xlu0.b32.cont [11/16] %v1260_v43, 128  ;;  %v1587_v45 = vpop.trf.xlu0  ;;  %v1293_v42 = vld [vmem:[#allocation2 + $0xfa8] sm:$0xff]  ;;  %v1292_v43 = vld [vmem:[#allocation2 + $0xfa0] sm:$0xff] }
 0x3b8   :  { %2037 = vst [vmem:[#allocation5 + $0xee0] sm:$0xff] %v1619_v44  ;;  %1909 = vst [vmem:[#allocation5 + $0xae0] sm:$0xff] %v1587_v45 }
 0x3bb   :  { %1731 = vxpose.xlu1.b32.cont [12/16] %v1263_v46, 128  ;;  %v1620_v48 = vpop.trf.xlu1  ;;  %1699 = vxpose.xlu0.b32.cont [12/16] %v1262_v47, 128  ;;  %v1588_v49 = vpop.trf.xlu0  ;;  %v1295_v46 = vld [vmem:[#allocation2 + $0xfb8] sm:$0xff]  ;;  %v1294_v47 = vld [vmem:[#allocation2 + $0xfb0] sm:$0xff] }
 0x3bc   :  { %2045 = vst [vmem:[#allocation5 + $0xf20] sm:$0xff] %v1620_v48  ;;  %1917 = vst [vmem:[#allocation5 + $0xb20] sm:$0xff] %v1588_v49 }
 0x3bf   :  { %1732 = vxpose.xlu1.b32.cont [13/16] %v1265_v50, 128  ;;  %v1621_v52 = vpop.trf.xlu1  ;;  %1700 = vxpose.xlu0.b32.cont [13/16] %v1264_v51, 128  ;;  %v1589_v53 = vpop.trf.xlu0  ;;  %v1297_v50 = vld [vmem:[#allocation2 + $0xfc8] sm:$0xff]  ;;  %v1296_v51 = vld [vmem:[#allocation2 + $0xfc0] sm:$0xff] }
 0x3c0   :  { %2053 = vst [vmem:[#allocation5 + $0xf60] sm:$0xff] %v1621_v52  ;;  %1925 = vst [vmem:[#allocation5 + $0xb60] sm:$0xff] %v1589_v53 }
 0x3c3   :  { %1733 = vxpose.xlu1.b32.cont [14/16] %v1267_v54, 128  ;;  %v1622_v56 = vpop.trf.xlu1  ;;  %1701 = vxpose.xlu0.b32.cont [14/16] %v1266_v55, 128  ;;  %v1590_v57 = vpop.trf.xlu0  ;;  %v1299_v54 = vld [vmem:[#allocation2 + $0xfd8] sm:$0xff]  ;;  %v1298_v55 = vld [vmem:[#allocation2 + $0xfd0] sm:$0xff] }
 0x3c4   :  { %2061 = vst [vmem:[#allocation5 + $0xfa0] sm:$0xff] %v1622_v56  ;;  %1933 = vst [vmem:[#allocation5 + $0xba0] sm:$0xff] %v1590_v57 }
 0x3c7   :  { %1734 = vxpose.xlu1.b32.cont [15/16] %v1269_v58, 128  ;;  %v1623_v60 = vpop.trf.xlu1  ;;  %1702 = vxpose.xlu0.b32.cont [15/16] %v1268_v59, 128  ;;  %v1591_v61 = vpop.trf.xlu0  ;;  %v1301_v58 = vld [vmem:[#allocation2 + $0xfe8] sm:$0xff]  ;;  %v1300_v59 = vld [vmem:[#allocation2 + $0xfe0] sm:$0xff] }
 0x3c8   :  { %2069 = vst [vmem:[#allocation5 + $0xfe0] sm:$0xff] %v1623_v60  ;;  %1941 = vst [vmem:[#allocation5 + $0xbe0] sm:$0xff] %v1591_v61 }
 0x3cb   :  { %1735 = vxpose.xlu1.b32.end [16/16] %v1271_v62, 128  ;;  %v1672_v0 = vpop.trf.xlu1  ;;  %1703 = vxpose.xlu0.b32.end [16/16] %v1270_v63, 128  ;;  %v1640_v1 = vpop.trf.xlu0  ;;  %v1303_v62 = vld [vmem:[#allocation2 + $0xff8] sm:$0xff]  ;;  %v1302_v63 = vld [vmem:[#allocation2 + $0xff0] sm:$0xff] }
 0x3cc   :  { %1950 = vst [vmem:[#allocation5 + $0xc28] sm:$0xff] %v1672_v0  ;;  %1822 = vst [vmem:[#allocation5 + $0x828] sm:$0xff] %v1640_v1 }
 0x3cf   :  { %1784 = vxpose.xlu1.b32.start [1/16] %v1273_v2, 128  ;;  %v1673_v4 = vpop.trf.xlu1  ;;  %1752 = vxpose.xlu0.b32.start [1/16] %v1272_v3, 128  ;;  %v1641_v5 = vpop.trf.xlu0 }
 0x3d0   :  { %1958 = vst [vmem:[#allocation5 + $0xc68] sm:$0xff] %v1673_v4  ;;  %1830 = vst [vmem:[#allocation5 + $0x868] sm:$0xff] %v1641_v5 }
 0x3d3   :  { %1785 = vxpose.xlu1.b32.cont [2/16] %v1275_v6, 128  ;;  %v1674_v8 = vpop.trf.xlu1  ;;  %1753 = vxpose.xlu0.b32.cont [2/16] %v1274_v7, 128  ;;  %v1642_v9 = vpop.trf.xlu0 }
 0x3d4   :  { %1966 = vst [vmem:[#allocation5 + $0xca8] sm:$0xff] %v1674_v8  ;;  %1838 = vst [vmem:[#allocation5 + $0x8a8] sm:$0xff] %v1642_v9 }
 0x3d7   :  { %1786 = vxpose.xlu1.b32.cont [3/16] %v1277_v10, 128  ;;  %v1675_v12 = vpop.trf.xlu1  ;;  %1754 = vxpose.xlu0.b32.cont [3/16] %v1276_v11, 128  ;;  %v1643_v13 = vpop.trf.xlu0 }
 0x3d8   :  { %1974 = vst [vmem:[#allocation5 + $0xce8] sm:$0xff] %v1675_v12  ;;  %1846 = vst [vmem:[#allocation5 + $0x8e8] sm:$0xff] %v1643_v13 }
 0x3db   :  { %1787 = vxpose.xlu1.b32.cont [4/16] %v1279_v14, 128  ;;  %v1676_v16 = vpop.trf.xlu1  ;;  %1755 = vxpose.xlu0.b32.cont [4/16] %v1278_v15, 128  ;;  %v1644_v17 = vpop.trf.xlu0 }
 0x3dc   :  { %1982 = vst [vmem:[#allocation5 + $0xd28] sm:$0xff] %v1676_v16  ;;  %1854 = vst [vmem:[#allocation5 + $0x928] sm:$0xff] %v1644_v17 }
 0x3df   :  { %1788 = vxpose.xlu1.b32.cont [5/16] %v1281_v18, 128  ;;  %v1677_v20 = vpop.trf.xlu1  ;;  %1756 = vxpose.xlu0.b32.cont [5/16] %v1280_v19, 128  ;;  %v1645_v21 = vpop.trf.xlu0 }
 0x3e0   :  { %1990 = vst [vmem:[#allocation5 + $0xd68] sm:$0xff] %v1677_v20  ;;  %1862 = vst [vmem:[#allocation5 + $0x968] sm:$0xff] %v1645_v21 }
 0x3e3   :  { %1789 = vxpose.xlu1.b32.cont [6/16] %v1283_v22, 128  ;;  %v1678_v24 = vpop.trf.xlu1  ;;  %1757 = vxpose.xlu0.b32.cont [6/16] %v1282_v23, 128  ;;  %v1646_v25 = vpop.trf.xlu0 }
 0x3e4   :  { %1998 = vst [vmem:[#allocation5 + $0xda8] sm:$0xff] %v1678_v24  ;;  %1870 = vst [vmem:[#allocation5 + $0x9a8] sm:$0xff] %v1646_v25 }
 0x3e7   :  { %1790 = vxpose.xlu1.b32.cont [7/16] %v1285_v26, 128  ;;  %v1679_v28 = vpop.trf.xlu1  ;;  %1758 = vxpose.xlu0.b32.cont [7/16] %v1284_v27, 128  ;;  %v1647_v29 = vpop.trf.xlu0 }
 0x3e8   :  { %2006 = vst [vmem:[#allocation5 + $0xde8] sm:$0xff] %v1679_v28  ;;  %1878 = vst [vmem:[#allocation5 + $0x9e8] sm:$0xff] %v1647_v29 }
 0x3eb   :  { %1791 = vxpose.xlu1.b32.cont [8/16] %v1287_v30, 128  ;;  %v1680_v32 = vpop.trf.xlu1  ;;  %1759 = vxpose.xlu0.b32.cont [8/16] %v1286_v31, 128  ;;  %v1648_v33 = vpop.trf.xlu0 }
 0x3ec   :  { %2014 = vst [vmem:[#allocation5 + $0xe28] sm:$0xff] %v1680_v32  ;;  %1886 = vst [vmem:[#allocation5 + $0xa28] sm:$0xff] %v1648_v33 }
 0x3ef   :  { %1792 = vxpose.xlu1.b32.cont [9/16] %v1289_v34, 128  ;;  %v1681_v36 = vpop.trf.xlu1  ;;  %1760 = vxpose.xlu0.b32.cont [9/16] %v1288_v35, 128  ;;  %v1649_v37 = vpop.trf.xlu0 }
 0x3f0   :  { %2022 = vst [vmem:[#allocation5 + $0xe68] sm:$0xff] %v1681_v36  ;;  %1894 = vst [vmem:[#allocation5 + $0xa68] sm:$0xff] %v1649_v37 }
 0x3f3   :  { %1793 = vxpose.xlu1.b32.cont [10/16] %v1291_v38, 128  ;;  %v1682_v40 = vpop.trf.xlu1  ;;  %1761 = vxpose.xlu0.b32.cont [10/16] %v1290_v39, 128  ;;  %v1650_v41 = vpop.trf.xlu0 }
 0x3f4   :  { %2030 = vst [vmem:[#allocation5 + $0xea8] sm:$0xff] %v1682_v40  ;;  %1902 = vst [vmem:[#allocation5 + $0xaa8] sm:$0xff] %v1650_v41 }
 0x3f7   :  { %1794 = vxpose.xlu1.b32.cont [11/16] %v1293_v42, 128  ;;  %v1683_v44 = vpop.trf.xlu1  ;;  %1762 = vxpose.xlu0.b32.cont [11/16] %v1292_v43, 128  ;;  %v1651_v45 = vpop.trf.xlu0 }
 0x3f8   :  { %2038 = vst [vmem:[#allocation5 + $0xee8] sm:$0xff] %v1683_v44  ;;  %1910 = vst [vmem:[#allocation5 + $0xae8] sm:$0xff] %v1651_v45 }
 0x3fb   :  { %1795 = vxpose.xlu1.b32.cont [12/16] %v1295_v46, 128  ;;  %v1684_v48 = vpop.trf.xlu1  ;;  %1763 = vxpose.xlu0.b32.cont [12/16] %v1294_v47, 128  ;;  %v1652_v49 = vpop.trf.xlu0 }
 0x3fc   :  { %2046 = vst [vmem:[#allocation5 + $0xf28] sm:$0xff] %v1684_v48  ;;  %1918 = vst [vmem:[#allocation5 + $0xb28] sm:$0xff] %v1652_v49 }
 0x3ff   :  { %1796 = vxpose.xlu1.b32.cont [13/16] %v1297_v50, 128  ;;  %v1685_v52 = vpop.trf.xlu1  ;;  %1764 = vxpose.xlu0.b32.cont [13/16] %v1296_v51, 128  ;;  %v1653_v53 = vpop.trf.xlu0 }
 0x400   :  { %2054 = vst [vmem:[#allocation5 + $0xf68] sm:$0xff] %v1685_v52  ;;  %1926 = vst [vmem:[#allocation5 + $0xb68] sm:$0xff] %v1653_v53 }
 0x403   :  { %1797 = vxpose.xlu1.b32.cont [14/16] %v1299_v54, 128  ;;  %v1686_v56 = vpop.trf.xlu1  ;;  %1765 = vxpose.xlu0.b32.cont [14/16] %v1298_v55, 128  ;;  %v1654_v57 = vpop.trf.xlu0 }
 0x404   :  { %2062 = vst [vmem:[#allocation5 + $0xfa8] sm:$0xff] %v1686_v56  ;;  %1934 = vst [vmem:[#allocation5 + $0xba8] sm:$0xff] %v1654_v57 }
 0x407   :  { %1798 = vxpose.xlu1.b32.cont [15/16] %v1301_v58, 128  ;;  %v1687_v60 = vpop.trf.xlu1  ;;  %1766 = vxpose.xlu0.b32.cont [15/16] %v1300_v59, 128  ;;  %v1655_v61 = vpop.trf.xlu0 }
 0x408   :  { %2070 = vst [vmem:[#allocation5 + $0xfe8] sm:$0xff] %v1687_v60  ;;  %1942 = vst [vmem:[#allocation5 + $0xbe8] sm:$0xff] %v1655_v61 }
 0x40b   :  { %1799 = vxpose.xlu1.b32.end [16/16] %v1303_v62, 128  ;;  %v1736_v0 = vpop.trf.xlu1  ;;  %1767 = vxpose.xlu0.b32.end [16/16] %v1302_v63, 128  ;;  %v1704_v1 = vpop.trf.xlu0 }
 0x40c   :  { %1951 = vst [vmem:[#allocation5 + $0xc30] sm:$0xff] %v1736_v0  ;;  %1823 = vst [vmem:[#allocation5 + $0x830] sm:$0xff] %v1704_v1 }
 0x40f   :  { %v1737_v2 = vpop.trf.xlu1  ;;  %v1705_v3 = vpop.trf.xlu0 }
 0x410   :  { %1959 = vst [vmem:[#allocation5 + $0xc70] sm:$0xff] %v1737_v2  ;;  %1831 = vst [vmem:[#allocation5 + $0x870] sm:$0xff] %v1705_v3 }
 0x413   :  { %v1738_v4 = vpop.trf.xlu1  ;;  %v1706_v5 = vpop.trf.xlu0 }
 0x414   :  { %1967 = vst [vmem:[#allocation5 + $0xcb0] sm:$0xff] %v1738_v4  ;;  %1839 = vst [vmem:[#allocation5 + $0x8b0] sm:$0xff] %v1706_v5 }
 0x417   :  { %v1739_v6 = vpop.trf.xlu1  ;;  %v1707_v7 = vpop.trf.xlu0 }
 0x418   :  { %1975 = vst [vmem:[#allocation5 + $0xcf0] sm:$0xff] %v1739_v6  ;;  %1847 = vst [vmem:[#allocation5 + $0x8f0] sm:$0xff] %v1707_v7 }
 0x41b   :  { %v1740_v8 = vpop.trf.xlu1  ;;  %v1708_v9 = vpop.trf.xlu0 }
 0x41c   :  { %1983 = vst [vmem:[#allocation5 + $0xd30] sm:$0xff] %v1740_v8  ;;  %1855 = vst [vmem:[#allocation5 + $0x930] sm:$0xff] %v1708_v9 }
 0x41f   :  { %v1741_v10 = vpop.trf.xlu1  ;;  %v1709_v11 = vpop.trf.xlu0 }
 0x420   :  { %1991 = vst [vmem:[#allocation5 + $0xd70] sm:$0xff] %v1741_v10  ;;  %1863 = vst [vmem:[#allocation5 + $0x970] sm:$0xff] %v1709_v11 }
 0x423   :  { %v1742_v12 = vpop.trf.xlu1  ;;  %v1710_v13 = vpop.trf.xlu0 }
 0x424   :  { %1999 = vst [vmem:[#allocation5 + $0xdb0] sm:$0xff] %v1742_v12  ;;  %1871 = vst [vmem:[#allocation5 + $0x9b0] sm:$0xff] %v1710_v13 }
 0x427   :  { %v1743_v14 = vpop.trf.xlu1  ;;  %v1711_v15 = vpop.trf.xlu0 }
 0x428   :  { %2007 = vst [vmem:[#allocation5 + $0xdf0] sm:$0xff] %v1743_v14  ;;  %1879 = vst [vmem:[#allocation5 + $0x9f0] sm:$0xff] %v1711_v15 }
 0x42b   :  { %v1744_v16 = vpop.trf.xlu1  ;;  %v1712_v17 = vpop.trf.xlu0 }
 0x42c   :  { %2015 = vst [vmem:[#allocation5 + $0xe30] sm:$0xff] %v1744_v16  ;;  %1887 = vst [vmem:[#allocation5 + $0xa30] sm:$0xff] %v1712_v17 }
 0x42f   :  { %v1745_v18 = vpop.trf.xlu1  ;;  %v1713_v19 = vpop.trf.xlu0 }
 0x430   :  { %2023 = vst [vmem:[#allocation5 + $0xe70] sm:$0xff] %v1745_v18  ;;  %1895 = vst [vmem:[#allocation5 + $0xa70] sm:$0xff] %v1713_v19 }
 0x433   :  { %v1746_v20 = vpop.trf.xlu1  ;;  %v1714_v21 = vpop.trf.xlu0 }
 0x434   :  { %2031 = vst [vmem:[#allocation5 + $0xeb0] sm:$0xff] %v1746_v20  ;;  %1903 = vst [vmem:[#allocation5 + $0xab0] sm:$0xff] %v1714_v21 }
 0x437   :  { %v1747_v22 = vpop.trf.xlu1  ;;  %v1715_v23 = vpop.trf.xlu0 }
 0x438   :  { %2039 = vst [vmem:[#allocation5 + $0xef0] sm:$0xff] %v1747_v22  ;;  %1911 = vst [vmem:[#allocation5 + $0xaf0] sm:$0xff] %v1715_v23 }
 0x43b   :  { %v1748_v24 = vpop.trf.xlu1  ;;  %v1716_v25 = vpop.trf.xlu0 }
 0x43c   :  { %2047 = vst [vmem:[#allocation5 + $0xf30] sm:$0xff] %v1748_v24  ;;  %1919 = vst [vmem:[#allocation5 + $0xb30] sm:$0xff] %v1716_v25 }
 0x43f   :  { %v1749_v26 = vpop.trf.xlu1  ;;  %v1717_v27 = vpop.trf.xlu0 }
 0x440   :  { %2055 = vst [vmem:[#allocation5 + $0xf70] sm:$0xff] %v1749_v26  ;;  %1927 = vst [vmem:[#allocation5 + $0xb70] sm:$0xff] %v1717_v27 }
 0x443   :  { %v1750_v28 = vpop.trf.xlu1  ;;  %v1718_v29 = vpop.trf.xlu0 }
 0x444   :  { %2063 = vst [vmem:[#allocation5 + $0xfb0] sm:$0xff] %v1750_v28  ;;  %1935 = vst [vmem:[#allocation5 + $0xbb0] sm:$0xff] %v1718_v29 }
 0x447   :  { %v1751_v30 = vpop.trf.xlu1  ;;  %v1719_v31 = vpop.trf.xlu0 }
 0x448   :  { %2071 = vst [vmem:[#allocation5 + $0xff0] sm:$0xff] %v1751_v30  ;;  %1943 = vst [vmem:[#allocation5 + $0xbf0] sm:$0xff] %v1719_v31 }
 0x44b   :  { %v1800_v32 = vpop.trf.xlu1  ;;  %v1768_v33 = vpop.trf.xlu0 }
 0x44c   :  { %1952 = vst [vmem:[#allocation5 + $0xc38] sm:$0xff] %v1800_v32  ;;  %1824 = vst [vmem:[#allocation5 + $0x838] sm:$0xff] %v1768_v33 }
 0x44f   :  { %v1801_v34 = vpop.trf.xlu1  ;;  %v1769_v35 = vpop.trf.xlu0 }
 0x450   :  { %1960 = vst [vmem:[#allocation5 + $0xc78] sm:$0xff] %v1801_v34  ;;  %1832 = vst [vmem:[#allocation5 + $0x878] sm:$0xff] %v1769_v35 }
 0x453   :  { %v1802_v36 = vpop.trf.xlu1  ;;  %v1770_v37 = vpop.trf.xlu0 }
 0x454   :  { %1968 = vst [vmem:[#allocation5 + $0xcb8] sm:$0xff] %v1802_v36  ;;  %1840 = vst [vmem:[#allocation5 + $0x8b8] sm:$0xff] %v1770_v37 }
 0x457   :  { %v1803_v38 = vpop.trf.xlu1  ;;  %v1771_v39 = vpop.trf.xlu0 }
 0x458   :  { %1976 = vst [vmem:[#allocation5 + $0xcf8] sm:$0xff] %v1803_v38  ;;  %1848 = vst [vmem:[#allocation5 + $0x8f8] sm:$0xff] %v1771_v39 }
 0x45b   :  { %v1804_v40 = vpop.trf.xlu1  ;;  %v1772_v41 = vpop.trf.xlu0 }
 0x45c   :  { %1984 = vst [vmem:[#allocation5 + $0xd38] sm:$0xff] %v1804_v40  ;;  %1856 = vst [vmem:[#allocation5 + $0x938] sm:$0xff] %v1772_v41 }
 0x45f   :  { %v1805_v42 = vpop.trf.xlu1  ;;  %v1773_v43 = vpop.trf.xlu0 }
 0x460   :  { %1992 = vst [vmem:[#allocation5 + $0xd78] sm:$0xff] %v1805_v42  ;;  %1864 = vst [vmem:[#allocation5 + $0x978] sm:$0xff] %v1773_v43 }
 0x463   :  { %v1806_v44 = vpop.trf.xlu1  ;;  %v1774_v45 = vpop.trf.xlu0 }
 0x464   :  { %2000 = vst [vmem:[#allocation5 + $0xdb8] sm:$0xff] %v1806_v44  ;;  %1872 = vst [vmem:[#allocation5 + $0x9b8] sm:$0xff] %v1774_v45 }
 0x467   :  { %v1807_v46 = vpop.trf.xlu1  ;;  %v1775_v47 = vpop.trf.xlu0 }
 0x468   :  { %2008 = vst [vmem:[#allocation5 + $0xdf8] sm:$0xff] %v1807_v46  ;;  %1880 = vst [vmem:[#allocation5 + $0x9f8] sm:$0xff] %v1775_v47 }
 0x46b   :  { %v1808_v48 = vpop.trf.xlu1  ;;  %v1776_v49 = vpop.trf.xlu0 }
 0x46c   :  { %2016 = vst [vmem:[#allocation5 + $0xe38] sm:$0xff] %v1808_v48  ;;  %1888 = vst [vmem:[#allocation5 + $0xa38] sm:$0xff] %v1776_v49 }
 0x46f   :  { %v1809_v50 = vpop.trf.xlu1  ;;  %v1777_v51 = vpop.trf.xlu0 }
 0x470   :  { %2024 = vst [vmem:[#allocation5 + $0xe78] sm:$0xff] %v1809_v50  ;;  %1896 = vst [vmem:[#allocation5 + $0xa78] sm:$0xff] %v1777_v51 }
 0x473   :  { %v1810_v52 = vpop.trf.xlu1  ;;  %v1778_v53 = vpop.trf.xlu0 }
 0x474   :  { %2032 = vst [vmem:[#allocation5 + $0xeb8] sm:$0xff] %v1810_v52  ;;  %1904 = vst [vmem:[#allocation5 + $0xab8] sm:$0xff] %v1778_v53 }
 0x477   :  { %v1811_v54 = vpop.trf.xlu1  ;;  %v1779_v55 = vpop.trf.xlu0 }
 0x478   :  { %2040 = vst [vmem:[#allocation5 + $0xef8] sm:$0xff] %v1811_v54  ;;  %1912 = vst [vmem:[#allocation5 + $0xaf8] sm:$0xff] %v1779_v55 }
 0x47b   :  { %v1812_v56 = vpop.trf.xlu1  ;;  %v1780_v57 = vpop.trf.xlu0 }
 0x47c   :  { %2048 = vst [vmem:[#allocation5 + $0xf38] sm:$0xff] %v1812_v56  ;;  %1920 = vst [vmem:[#allocation5 + $0xb38] sm:$0xff] %v1780_v57 }
 0x47f   :  { %v1813_v58 = vpop.trf.xlu1  ;;  %v1781_v59 = vpop.trf.xlu0 }
 0x480   :  { %2056 = vst [vmem:[#allocation5 + $0xf78] sm:$0xff] %v1813_v58  ;;  %1928 = vst [vmem:[#allocation5 + $0xb78] sm:$0xff] %v1781_v59 }
 0x483   :  { %v1814_v60 = vpop.trf.xlu1  ;;  %v1782_v61 = vpop.trf.xlu0 }
 0x484   :  { %2064 = vst [vmem:[#allocation5 + $0xfb8] sm:$0xff] %v1814_v60  ;;  %1936 = vst [vmem:[#allocation5 + $0xbb8] sm:$0xff] %v1782_v61 }
 0x487   :  { %v1815_v62 = vpop.trf.xlu1  ;;  %v1783_v63 = vpop.trf.xlu0 }
 0x488   :  { %2072 = vst [vmem:[#allocation5 + $0xff8] sm:$0xff] %v1815_v62  ;;  %1944 = vst [vmem:[#allocation5 + $0xbf8] sm:$0xff] %v1783_v63 }
 0x489   :  { %2127 = shalt.err (!%p2124_p9)
}
 0x48a   :  { %s2144_s15 = smov 1024   ;;  %s2145_s16 = smov 64  }
 0x48b   :  { %2084 = dma.vmem_to_hbm [thread:$0]  %s2079_s13, 65536, %s2163_s1, [#allocation4], %s2144_s15, %s2144_s15, %s2145_s16  }
 0x48c   :  { %2138 = dma.done.wait [#allocation4], 65536  }
 0x48d   :  { %2139 = vsyncadd [#allocation4], 4294901760 }
 0x48e   :  { %2088 = vsyncpa [#allocation3], 1 }
 0x48f   :  { %2089 = vsyncpa [#allocation4], 1 }

</bundles_post_ra>
